<compile_context>
chip_gen: v5e
topology: v5e:2x2
jax: 0.10.0
libtpu: 0.0.40
codegen_flags: <defaults>
</compile_context>

<pallas_src>
import math
import jax
import jax.numpy as jnp
from jax.experimental import pallas as pl
from jax.experimental.pallas import tpu as pltpu

# --- model hyper-parameters (small, consistent with MixerModel defaults) ----
D_MODEL = 32
N_LAYER = 2
VOCAB = 80                 # must be > padding_idx=75
PAD_IDX = 75
EXPAND = 2
D_INNER = EXPAND * D_MODEL           # 64
D_STATE = 16
D_CONV = 4
DT_RANK = math.ceil(D_MODEL / 16)    # 2
EPS = 1e-5

BATCH = 2
SEQ = 8


# ----------------------------- shared math ---------------------------------
def _layernorm(x, w, b):
    mean = jnp.mean(x, axis=-1, keepdims=True)
    var = jnp.mean(jnp.square(x - mean), axis=-1, keepdims=True)
    return (x - mean) * jax.lax.rsqrt(var + EPS) * w + b


def _softplus(x):
    xs = jnp.minimum(x, 20.0)
    return jnp.where(x > 20.0, x, jnp.log(1.0 + jnp.exp(xs)))


def _silu_kernel(x):
    # numerically-safe exact sigmoid: exp(-|x|) <= 1 (no overflow), exact divide
    ex = jnp.exp(-jnp.abs(x))
    return x * (jnp.where(x >= 0.0, 1.0, ex) / (1.0 + ex))


def _silu_ref(x):
    return x * (1.0 / (1.0 + jnp.exp(-x)))


# ----------------------------- fused Pallas kernel --------------------------
def fused_mixer_kernel(ids_ref, emb_ref,
                       ln_w_ref, ln_b_ref, in_w_ref,
                       conv_w_ref, conv_b_ref,
                       xbc_w_ref, dt_b_ref,
                       A_neg_ref, D_ref, out_w_ref,
                       nf_w_ref, nf_b_ref,
                       out_ref):
    BB = out_ref.shape[0]                 # batch (packed into lanes)
    L = out_ref.shape[1] // D_MODEL       # sequence length
    M = BB * L                            # flattened rows for the MXU matmuls
    W = conv_w_ref.shape[-1]              # BB * D_INNER  (packed lane width)
    assert W == BB * D_INNER
    b_off = W                             # B columns in fused x_proj output
    c_off = W + BB * D_STATE              # C columns in fused x_proj output

    # hoisted once: time-step iota for the conv causal masks
    row_idx = jax.lax.broadcasted_iota(jnp.int32, (L, W), 0)

    # ---- embedding gather as one-hot matmul (pad row 75 is zero) + tanh ----
    onehot = (ids_ref[...] ==
              jax.lax.broadcasted_iota(jnp.int32, (M, VOCAB), 1)).astype(jnp.float32)
    hidden = jnp.tanh(jnp.dot(onehot, emb_ref[...],
                              preferred_element_type=jnp.float32))      # (M, D)
    residual = jnp.zeros_like(hidden)                                   # residual=None -> 0

    for l in range(N_LAYER):
        # residual add + pre-norm LayerNorm
        residual = hidden + residual
        xn = _layernorm(residual, ln_w_ref[l], ln_b_ref[l])             # (M, D)

        # in_proj (rows = b*L + t): (M, D) @ (D, 2*Di) -> x | z
        xz = jnp.dot(xn, in_w_ref[l], preferred_element_type=jnp.float32)
        z = xz[:, D_INNER:]                                             # (M, Di)

        # lane-pack the batch: x_p[t, b*Di + c] = x[b, t, c]  -> (L, W=128)
        x_p = jnp.concatenate(
            [xz[b * L:(b + 1) * L, :D_INNER] for b in range(BB)], axis=1)

        # causal depthwise conv1d: XLU sublane rolls + causal mask, then SiLU
        w_l = conv_w_ref[l]                                             # (K, W)
        acc = x_p * w_l[D_CONV - 1:D_CONV, :]                           # tap j=0
        for j in range(1, D_CONV):
            shifted = pltpu.roll(x_p, shift=j, axis=0)                  # x[t - j] (wrapped)
            shifted = jnp.where(row_idx >= j, shifted, 0.0)             # causal zero fill
            acc = acc + shifted * w_l[D_CONV - 1 - j:D_CONV - j, :]
        xc_p = _silu_kernel(acc + conv_b_ref[l])                        # (L, W)

        # fused x_proj (+ host-folded dt_proj), batch-block-diagonal weight:
        # output columns = [ delta packed (W) | B per batch | C per batch | pad ]
        xbc = jnp.dot(xc_p, xbc_w_ref[l], preferred_element_type=jnp.float32)
        delta_p = _softplus(xbc[:, :W] + dt_b_ref[l])                   # (L, W) packed

        # ---- hoisted scan pre-compute (all off the serial recurrence) ----
        dA_all = jnp.exp(delta_p[:, None, :] * A_neg_ref[l][None, :, :])  # (L, N, W)
        dx = delta_p * xc_p                                             # (L, W)
        BT = [jnp.swapaxes(xbc[:, b_off + b * D_STATE: b_off + (b + 1) * D_STATE], 0, 1)
              for b in range(BB)]                                       # (N, L) per batch
        CT = [jnp.swapaxes(xbc[:, c_off + b * D_STATE: c_off + (b + 1) * D_STATE], 0, 1)
              for b in range(BB)]
        dBx_all, C_all = [], []
        for t in range(L):
            dBx_all.append(jnp.concatenate(
                [BT[b][:, t:t + 1] * dx[t:t + 1, b * D_INNER:(b + 1) * D_INNER]
                 for b in range(BB)], axis=1))                          # (N, W)
            C_all.append(jnp.concatenate(
                [jnp.broadcast_to(CT[b][:, t:t + 1], (D_STATE, D_INNER))
                 for b in range(BB)], axis=1))                          # (N, W)

        # ---- serial recurrence: one 2-vreg FMA per step (+ off-path reduce) ----
        # TODO(synk): for SEQ beyond ~32 switch to lax.fori_loop with a small
        # VMEM-carried state to bound vreg live ranges.
        h = jnp.zeros((D_STATE, W), jnp.float32)
        ys = []
        for t in range(L):
            h = dA_all[t] * h + dBx_all[t]
            ys.append(jnp.sum(h * C_all[t], axis=0, keepdims=True))     # (1, W)
        y_p = jnp.concatenate(ys, axis=0) + xc_p * D_ref[l]             # (L, W)

        # unpack back to rows, SiLU gate, out_proj
        y_rows = jnp.concatenate(
            [y_p[:, b * D_INNER:(b + 1) * D_INNER] for b in range(BB)], axis=0)  # (M, Di)
        y_g = y_rows * _silu_kernel(z)
        hidden = jnp.dot(y_g, out_w_ref[l], preferred_element_type=jnp.float32)  # (M, D)

    # final residual add + LayerNorm; written lane-dense as (BB, L*D)
    out = _layernorm(hidden + residual, nf_w_ref[...], nf_b_ref[...])   # (M, D)
    out3 = out.reshape(BB, L, D_MODEL)                                  # leading-split only
    out_ref[...] = jnp.concatenate([out3[:, t, :] for t in range(L)], axis=1)


# ------------------------------ wrappers ------------------------------------
def prepare_kernel_params(params, batch):
    """Stack per-layer weights, tile channel params across the packed batch
    lanes, and build the batch-block-diagonal fused x_proj(+dt_proj) weight."""
    layers = params["layers"]
    bb = batch

    def tile(w):                          # (r, Di) -> (r, bb*Di)
        return jnp.concatenate([w] * bb, axis=-1)

    ln_w = jnp.stack([lp[0] for lp in layers])
    ln_b = jnp.stack([lp[1] for lp in layers])
    in_w = jnp.stack([lp[2] for lp in layers])
    conv_w = jnp.stack([tile(lp[3]) for lp in layers])
    conv_b = jnp.stack([tile(lp[4]) for lp in layers])
    dt_b = jnp.stack([tile(lp[9]) for lp in layers])
    A_neg = jnp.stack([tile(-jnp.exp(lp[10])) for lp in layers])
    D_par = jnp.stack([tile(lp[11]) for lp in layers])
    out_w = jnp.stack([lp[12] for lp in layers])

    def fuse(lp):
        xw_dt, xw_B, xw_C, dt_w = lp[5], lp[6], lp[7], lp[8]
        w_dt = xw_dt @ dt_w                                   # (Di, Di), exact fold
        di, n = D_INNER, D_STATE
        ncol = bb * di + 2 * bb * n
        ncol_pad = ((ncol + 127) // 128) * 128
        w = jnp.zeros((bb * di, ncol_pad), jnp.float32)
        for b in range(bb):
            r = b * di
            w = w.at[r:r + di, b * di:(b + 1) * di].set(w_dt)                       # delta (packed)
            w = w.at[r:r + di, bb * di + b * n: bb * di + (b + 1) * n].set(xw_B)    # B per batch
            w = w.at[r:r + di, bb * (di + n) + b * n: bb * (di + n) + (b + 1) * n].set(xw_C)  # C
        return w

    xbc_w = jnp.stack([fuse(lp) for lp in layers])
    nf_w, nf_b = params["norm_f"]
    return (params["emb"], ln_w, ln_b, in_w, conv_w, conv_b,
            xbc_w, dt_b, A_neg, D_par, out_w, nf_w, nf_b)


def mixer_model_forward(type_seq, time_seq, kernel_params):
    del time_seq  # accepted but unused, matching the PyTorch forward
    bsz, seq = type_seq.shape
    ids = type_seq.reshape(bsz * seq, 1).astype(jnp.int32)

    def _const_spec(arr):
        nd = arr.ndim
        return pl.BlockSpec(arr.shape, lambda g, _nd=nd: (0,) * _nd)

    out_flat = pl.pallas_call(
        fused_mixer_kernel,
        out_shape=jax.ShapeDtypeStruct((bsz, seq * D_MODEL), jnp.float32),
        grid_spec=pltpu.PrefetchScalarGridSpec(
            num_scalar_prefetch=0,
            grid=(1,),
            in_specs=[pl.BlockSpec((bsz * seq, 1), lambda g: (0, 0))]
                     + [_const_spec(a) for a in kernel_params],
            out_specs=pl.BlockSpec((bsz, seq * D_MODEL), lambda g: (0, 0))),
        compiler_params=pltpu.CompilerParams(
            dimension_semantics=("arbitrary",)),
    )(ids, *kernel_params)
    return out_flat.reshape(bsz, seq, D_MODEL)


# ------------------------- deterministic parameters -------------------------
def init_params(key):
    keys = jax.random.split(key, 1 + N_LAYER)
    emb = 0.02 * jax.random.normal(keys[0], (VOCAB, D_MODEL), jnp.float32)
    emb = emb.at[PAD_IDX].set(0.0)

    def uni(k, shape, bound):
        return jax.random.uniform(k, shape, jnp.float32, -bound, bound)

    layers = []
    for l in range(N_LAYER):
        ks = jax.random.split(keys[1 + l], 9)
        ln_w = jnp.ones((1, D_MODEL), jnp.float32)
        ln_b = jnp.zeros((1, D_MODEL), jnp.float32)
        in_w = uni(ks[0], (D_MODEL, 2 * D_INNER), 1.0 / math.sqrt(D_MODEL))
        conv_w = uni(ks[1], (D_CONV, D_INNER), 1.0 / math.sqrt(D_CONV))
        conv_b = uni(ks[2], (1, D_INNER), 1.0 / math.sqrt(D_CONV))
        bx = 1.0 / math.sqrt(D_INNER)
        xw_dt = uni(ks[3], (D_INNER, DT_RANK), bx)
        xw_B = uni(ks[4], (D_INNER, D_STATE), bx)
        xw_C = uni(ks[5], (D_INNER, D_STATE), bx)
        dt_w = uni(ks[6], (DT_RANK, D_INNER), DT_RANK ** -0.5)
        # Mamba-style dt bias: inverse softplus of dt sampled in [1e-3, 0.1]
        dt = jnp.exp(jax.random.uniform(ks[7], (1, D_INNER), jnp.float32)
                     * (math.log(0.1) - math.log(1e-3)) + math.log(1e-3))
        dt = jnp.maximum(dt, 1e-4)
        dt_b = dt + jnp.log(-jnp.expm1(-dt))
        A_log = (jnp.log(jnp.arange(1, D_STATE + 1, dtype=jnp.float32))[:, None]
                 * jnp.ones((1, D_INNER), jnp.float32))        # (N, Di)
        D_par = jnp.ones((1, D_INNER), jnp.float32)
        out_w = uni(ks[8], (D_INNER, D_MODEL), bx) / math.sqrt(N_LAYER)
        layers.append((ln_w, ln_b, in_w, conv_w, conv_b,
                       xw_dt, xw_B, xw_C, dt_w, dt_b, A_log, D_par, out_w))
    return {"emb": emb,
            "layers": layers,
            "norm_f": (jnp.ones((1, D_MODEL), jnp.float32),
                       jnp.zeros((1, D_MODEL), jnp.float32))}


# ------------------------------ pure-JAX reference --------------------------
def _mamba_ref(xn, in_w, conv_w, conv_b, xw_dt, xw_B, xw_C,
               dt_w, dt_b, A_log, D_par, out_w):
    bsz, seq, _ = xn.shape
    xz = xn @ in_w
    x, z = xz[..., :D_INNER], xz[..., D_INNER:]
    x_pad = jnp.pad(x, ((0, 0), (D_CONV - 1, 0), (0, 0)))
    xc = sum(x_pad[:, k:k + seq, :] * conv_w[k][None, None, :] for k in range(D_CONV))
    xc = _silu_ref(xc + conv_b[0][None, None, :])
    delta = _softplus(xc @ xw_dt @ dt_w + dt_b[0][None, None, :])   # (B, L, Di)
    Bc = xc @ xw_B
    Cc = xc @ xw_C
    A_neg = -jnp.exp(A_log)                                         # (N, Di)
    h = jnp.zeros((bsz, D_STATE, D_INNER), jnp.float32)
    ys = []
    for t in range(seq):
        dA = jnp.exp(delta[:, t, None, :] * A_neg[None, :, :])
        dBx = Bc[:, t, :, None] * (delta[:, t, :] * xc[:, t, :])[:, None, :]
        h = dA * h + dBx
        ys.append(jnp.sum(h * Cc[:, t, :, None], axis=1))
    y = jnp.stack(ys, axis=1) + xc * D_par[0][None, None, :]
    y = y * _silu_ref(z)
    return y @ out_w


def mixer_model_ref(type_seq, params):
    hidden = jnp.tanh(jnp.take(params["emb"], type_seq, axis=0))
    residual = jnp.zeros_like(hidden)
    for lp in params["layers"]:
        (ln_w, ln_b, in_w, conv_w, conv_b, xw_dt, xw_B, xw_C,
         dt_w, dt_b, A_log, D_par, out_w) = lp
        residual = hidden + residual
        xn = _layernorm(residual, ln_w[0], ln_b[0])
        hidden = _mamba_ref(xn, in_w, conv_w, conv_b, xw_dt, xw_B, xw_C,
                            dt_w, dt_b, A_log, D_par, out_w)
    w, b = params["norm_f"]
    return _layernorm(hidden + residual, w[0], b[0])


# ---------------------------------- main -------------------------------------
if __name__ == "__main__":
    key = jax.random.PRNGKey(0)
    k_tok, k_time = jax.random.split(key)
    type_seq = jax.random.randint(k_tok, (BATCH, SEQ), 0, VOCAB, dtype=jnp.int32)
    time_seq = jax.random.uniform(k_time, (BATCH, SEQ), jnp.float32)  # unused by forward
    params = init_params(jax.random.PRNGKey(42))
    kparams = prepare_kernel_params(params, BATCH)   # one-time host-side weight prep

    fwd = jax.jit(mixer_model_forward)
    out = jax.block_until_ready(fwd(type_seq, time_seq, kparams))

    ref = mixer_model_ref(type_seq, params)
    err = float(jnp.max(jnp.abs(out - ref)))
    if out.shape != (BATCH, SEQ, D_MODEL) or not (err < 2e-2):
        raise AssertionError(f"mismatch: shape={out.shape} max_err={err}")
    # TODO(synk): allocate_inference_cache / inference_params (step-mode decode) not implemented.
    print("KERNEL_OK")
</pallas_src>

<mosaic_0001>
module attributes {stable_mosaic.version = 11 : i64} {
  func.func @fused_mixer_kernel(%arg0: i32, %arg1: memref<16x1xi32, #tpu.memory_space<vmem>>, %arg2: memref<80x32xf32, #tpu.memory_space<vmem>>, %arg3: memref<2x1x32xf32, #tpu.memory_space<vmem>>, %arg4: memref<2x1x32xf32, #tpu.memory_space<vmem>>, %arg5: memref<2x32x128xf32, #tpu.memory_space<vmem>>, %arg6: memref<2x4x128xf32, #tpu.memory_space<vmem>>, %arg7: memref<2x1x128xf32, #tpu.memory_space<vmem>>, %arg8: memref<2x128x256xf32, #tpu.memory_space<vmem>>, %arg9: memref<2x1x128xf32, #tpu.memory_space<vmem>>, %arg10: memref<2x16x128xf32, #tpu.memory_space<vmem>>, %arg11: memref<2x1x128xf32, #tpu.memory_space<vmem>>, %arg12: memref<2x64x32xf32, #tpu.memory_space<vmem>>, %arg13: memref<1x32xf32, #tpu.memory_space<vmem>>, %arg14: memref<1x32xf32, #tpu.memory_space<vmem>>, %arg15: memref<2x256xf32, #tpu.memory_space<vmem>>) attributes {dimension_semantics = [#tpu.dimension_semantics<arbitrary>], iteration_bounds = array<i64: 1>, scalar_prefetch = 0 : i64, scratch_operands = 0 : i64, tpu.core_type = #tpu.core_type<tc>, window_params = [{pipeline_mode = #tpu.pipeline_mode<synchronous>, transform_indices = @transform_0, window_bounds = array<i64: 16, 1>}, {pipeline_mode = #tpu.pipeline_mode<synchronous>, transform_indices = @transform_1, window_bounds = array<i64: 80, 32>}, {pipeline_mode = #tpu.pipeline_mode<synchronous>, transform_indices = @transform_2, window_bounds = array<i64: 2, 1, 32>}, {pipeline_mode = #tpu.pipeline_mode<synchronous>, transform_indices = @transform_3, window_bounds = array<i64: 2, 1, 32>}, {pipeline_mode = #tpu.pipeline_mode<synchronous>, transform_indices = @transform_4, window_bounds = array<i64: 2, 32, 128>}, {pipeline_mode = #tpu.pipeline_mode<synchronous>, transform_indices = @transform_5, window_bounds = array<i64: 2, 4, 128>}, {pipeline_mode = #tpu.pipeline_mode<synchronous>, transform_indices = @transform_6, window_bounds = array<i64: 2, 1, 128>}, {pipeline_mode = #tpu.pipeline_mode<synchronous>, transform_indices = @transform_7, window_bounds = array<i64: 2, 128, 256>}, {pipeline_mode = #tpu.pipeline_mode<synchronous>, transform_indices = @transform_8, window_bounds = array<i64: 2, 1, 128>}, {pipeline_mode = #tpu.pipeline_mode<synchronous>, transform_indices = @transform_9, window_bounds = array<i64: 2, 16, 128>}, {pipeline_mode = #tpu.pipeline_mode<synchronous>, transform_indices = @transform_10, window_bounds = array<i64: 2, 1, 128>}, {pipeline_mode = #tpu.pipeline_mode<synchronous>, transform_indices = @transform_11, window_bounds = array<i64: 2, 64, 32>}, {pipeline_mode = #tpu.pipeline_mode<synchronous>, transform_indices = @transform_12, window_bounds = array<i64: 1, 32>}, {pipeline_mode = #tpu.pipeline_mode<synchronous>, transform_indices = @transform_13, window_bounds = array<i64: 1, 32>}, {pipeline_mode = #tpu.pipeline_mode<synchronous>, transform_indices = @transform_14, window_bounds = array<i64: 2, 256>}]} {
    %0 = tpu.iota {dimensions = array<i32: 0>} : vector<8x128xi32>
    %c0 = arith.constant 0 : index
    %c0_0 = arith.constant 0 : index
    %1 = vector.load %arg1[%c0, %c0_0] : memref<16x1xi32, #tpu.memory_space<vmem>>, vector<16x1xi32>
    %2 = tpu.iota {dimensions = array<i32: 1>} : vector<16x80xi32>
    %3 = vector.broadcast %1 : vector<16x1xi32> to vector<16x80xi32>
    %4 = arith.cmpi eq, %3, %2 : vector<16x80xi32>
    %5 = arith.extui %4 : vector<16x80xi1> to vector<16x80xi32>
    %6 = arith.sitofp %5 : vector<16x80xi32> to vector<16x80xf32>
    %c0_1 = arith.constant 0 : index
    %c0_2 = arith.constant 0 : index
    %7 = vector.load %arg2[%c0_1, %c0_2] : memref<80x32xf32, #tpu.memory_space<vmem>>, vector<80x32xf32>
    %cst = arith.constant dense<0.000000e+00> : vector<16x32xf32>
    %8 = tpu.matmul %6, %7, %cst {dimension_numbers = #tpu.dot_dimension_numbers<[1], [0], [0], [1], [0, 0, 1, 1], [], []>} : vector<16x80xf32>, vector<80x32xf32>, vector<16x32xf32> -> vector<16x32xf32>
    %9 = math.tanh %8 : vector<16x32xf32>
    %cst_3 = arith.constant 0.000000e+00 : f32
    %10 = vector.broadcast %cst_3 : f32 to vector<16x32xf32>
    %11 = arith.addf %9, %10 : vector<16x32xf32>
    %c0_4 = arith.constant 0 : index
    %c0_5 = arith.constant 0 : index
    %c0_6 = arith.constant 0 : index
    %12 = vector.load %arg3[%c0_4, %c0_5, %c0_6] : memref<2x1x32xf32, #tpu.memory_space<vmem>>, vector<1x1x32xf32>
    %13 = vector.shape_cast %12 : vector<1x1x32xf32> to vector<1x32xf32>
    %c0_7 = arith.constant 0 : index
    %c0_8 = arith.constant 0 : index
    %c0_9 = arith.constant 0 : index
    %14 = vector.load %arg4[%c0_7, %c0_8, %c0_9] : memref<2x1x32xf32, #tpu.memory_space<vmem>>, vector<1x1x32xf32>
    %15 = vector.shape_cast %14 : vector<1x1x32xf32> to vector<1x32xf32>
    %cst_10 = arith.constant dense<0.000000e+00> : vector<16xf32>
    %16 = vector.multi_reduction <add>, %11, %cst_10 [1] : vector<16x32xf32> to vector<16xf32>
    %17 = vector.shape_cast %16 : vector<16xf32> to vector<16x1xf32>
    %cst_11 = arith.constant 3.200000e+01 : f32
    %18 = vector.broadcast %cst_11 : f32 to vector<16x1xf32>
    %19 = arith.divf %17, %18 : vector<16x1xf32>
    %20 = vector.broadcast %19 : vector<16x1xf32> to vector<16x32xf32>
    %21 = arith.subf %11, %20 : vector<16x32xf32>
    %22 = arith.mulf %21, %21 : vector<16x32xf32>
    %cst_12 = arith.constant dense<0.000000e+00> : vector<16xf32>
    %23 = vector.multi_reduction <add>, %22, %cst_12 [1] : vector<16x32xf32> to vector<16xf32>
    %24 = vector.shape_cast %23 : vector<16xf32> to vector<16x1xf32>
    %cst_13 = arith.constant 3.200000e+01 : f32
    %25 = vector.broadcast %cst_13 : f32 to vector<16x1xf32>
    %26 = arith.divf %24, %25 : vector<16x1xf32>
    %27 = vector.broadcast %19 : vector<16x1xf32> to vector<16x32xf32>
    %28 = arith.subf %11, %27 : vector<16x32xf32>
    %cst_14 = arith.constant 9.99999974E-6 : f32
    %29 = vector.broadcast %cst_14 : f32 to vector<16x1xf32>
    %30 = arith.addf %26, %29 : vector<16x1xf32>
    %31 = math.rsqrt %30 : vector<16x1xf32>
    %32 = vector.broadcast %31 : vector<16x1xf32> to vector<16x32xf32>
    %33 = arith.mulf %28, %32 : vector<16x32xf32>
    %34 = vector.broadcast %13 : vector<1x32xf32> to vector<16x32xf32>
    %35 = arith.mulf %33, %34 : vector<16x32xf32>
    %36 = vector.broadcast %15 : vector<1x32xf32> to vector<16x32xf32>
    %37 = arith.addf %35, %36 : vector<16x32xf32>
    %c0_15 = arith.constant 0 : index
    %c0_16 = arith.constant 0 : index
    %c0_17 = arith.constant 0 : index
    %38 = vector.load %arg5[%c0_15, %c0_16, %c0_17] : memref<2x32x128xf32, #tpu.memory_space<vmem>>, vector<1x32x128xf32>
    %39 = vector.shape_cast %38 : vector<1x32x128xf32> to vector<32x128xf32>
    %cst_18 = arith.constant dense<0.000000e+00> : vector<16x128xf32>
    %40 = tpu.matmul %37, %39, %cst_18 {dimension_numbers = #tpu.dot_dimension_numbers<[1], [0], [0], [1], [0, 0, 1, 1], [], []>} : vector<16x32xf32>, vector<32x128xf32>, vector<16x128xf32> -> vector<16x128xf32>
    %41 = vector.extract_strided_slice %40 {offsets = [0, 64], sizes = [16, 64], strides = [1, 1]} : vector<16x128xf32> to vector<16x64xf32>
    %42 = vector.extract_strided_slice %40 {offsets = [0, 0], sizes = [8, 64], strides = [1, 1]} : vector<16x128xf32> to vector<8x64xf32>
    %43 = vector.extract_strided_slice %40 {offsets = [8, 0], sizes = [8, 64], strides = [1, 1]} : vector<16x128xf32> to vector<8x64xf32>
    %44 = tpu.concatenate %42, %43 in 1 : vector<8x64xf32>, vector<8x64xf32> -> vector<8x128xf32>
    %c0_19 = arith.constant 0 : index
    %c0_20 = arith.constant 0 : index
    %c0_21 = arith.constant 0 : index
    %45 = vector.load %arg6[%c0_19, %c0_20, %c0_21] : memref<2x4x128xf32, #tpu.memory_space<vmem>>, vector<1x4x128xf32>
    %46 = vector.shape_cast %45 : vector<1x4x128xf32> to vector<4x128xf32>
    %47 = vector.extract_strided_slice %46 {offsets = [3, 0], sizes = [1, 128], strides = [1, 1]} : vector<4x128xf32> to vector<1x128xf32>
    %48 = vector.broadcast %47 : vector<1x128xf32> to vector<8x128xf32>
    %49 = arith.mulf %44, %48 : vector<8x128xf32>
    %c1_i32 = arith.constant 1 : i32
    %50 = tpu.dynamic_rotate %44 by %c1_i32 dim 0 : vector<8x128xf32>, i32 -> vector<8x128xf32>
    %c1_i32_22 = arith.constant 1 : i32
    %51 = vector.broadcast %c1_i32_22 : i32 to vector<8x128xi32>
    %52 = arith.cmpi sge, %0, %51 : vector<8x128xi32>
    %cst_23 = arith.constant 0.000000e+00 : f32
    %53 = vector.broadcast %cst_23 : f32 to vector<8x128xf32>
    %54 = arith.select %52, %50, %53 : vector<8x128xi1>, vector<8x128xf32>
    %55 = vector.extract_strided_slice %46 {offsets = [2, 0], sizes = [1, 128], strides = [1, 1]} : vector<4x128xf32> to vector<1x128xf32>
    %56 = vector.broadcast %55 : vector<1x128xf32> to vector<8x128xf32>
    %57 = arith.mulf %54, %56 : vector<8x128xf32>
    %58 = arith.addf %49, %57 : vector<8x128xf32>
    %c2_i32 = arith.constant 2 : i32
    %59 = tpu.dynamic_rotate %44 by %c2_i32 dim 0 : vector<8x128xf32>, i32 -> vector<8x128xf32>
    %c2_i32_24 = arith.constant 2 : i32
    %60 = vector.broadcast %c2_i32_24 : i32 to vector<8x128xi32>
    %61 = arith.cmpi sge, %0, %60 : vector<8x128xi32>
    %cst_25 = arith.constant 0.000000e+00 : f32
    %62 = vector.broadcast %cst_25 : f32 to vector<8x128xf32>
    %63 = arith.select %61, %59, %62 : vector<8x128xi1>, vector<8x128xf32>
    %64 = vector.extract_strided_slice %46 {offsets = [1, 0], sizes = [1, 128], strides = [1, 1]} : vector<4x128xf32> to vector<1x128xf32>
    %65 = vector.broadcast %64 : vector<1x128xf32> to vector<8x128xf32>
    %66 = arith.mulf %63, %65 : vector<8x128xf32>
    %67 = arith.addf %58, %66 : vector<8x128xf32>
    %c3_i32 = arith.constant 3 : i32
    %68 = tpu.dynamic_rotate %44 by %c3_i32 dim 0 : vector<8x128xf32>, i32 -> vector<8x128xf32>
    %c3_i32_26 = arith.constant 3 : i32
    %69 = vector.broadcast %c3_i32_26 : i32 to vector<8x128xi32>
    %70 = arith.cmpi sge, %0, %69 : vector<8x128xi32>
    %cst_27 = arith.constant 0.000000e+00 : f32
    %71 = vector.broadcast %cst_27 : f32 to vector<8x128xf32>
    %72 = arith.select %70, %68, %71 : vector<8x128xi1>, vector<8x128xf32>
    %73 = vector.extract_strided_slice %46 {offsets = [0, 0], sizes = [1, 128], strides = [1, 1]} : vector<4x128xf32> to vector<1x128xf32>
    %74 = vector.broadcast %73 : vector<1x128xf32> to vector<8x128xf32>
    %75 = arith.mulf %72, %74 : vector<8x128xf32>
    %76 = arith.addf %67, %75 : vector<8x128xf32>
    %c0_28 = arith.constant 0 : index
    %c0_29 = arith.constant 0 : index
    %c0_30 = arith.constant 0 : index
    %77 = vector.load %arg7[%c0_28, %c0_29, %c0_30] : memref<2x1x128xf32, #tpu.memory_space<vmem>>, vector<1x1x128xf32>
    %78 = vector.shape_cast %77 : vector<1x1x128xf32> to vector<1x128xf32>
    %79 = vector.broadcast %78 : vector<1x128xf32> to vector<8x128xf32>
    %80 = arith.addf %76, %79 : vector<8x128xf32>
    %81 = math.absf %80 : vector<8x128xf32>
    %cst_31 = arith.constant 0.000000e+00 : f32
    %82 = vector.broadcast %cst_31 : f32 to vector<8x128xf32>
    %83 = arith.subf %82, %81 : vector<8x128xf32>
    %84 = math.exp %83 : vector<8x128xf32>
    %cst_32 = arith.constant 0.000000e+00 : f32
    %85 = vector.broadcast %cst_32 : f32 to vector<8x128xf32>
    %86 = arith.cmpf oge, %80, %85 : vector<8x128xf32>
    %cst_33 = arith.constant 1.000000e+00 : f32
    %87 = vector.broadcast %cst_33 : f32 to vector<8x128xf32>
    %88 = arith.select %86, %87, %84 : vector<8x128xi1>, vector<8x128xf32>
    %cst_34 = arith.constant 1.000000e+00 : f32
    %89 = vector.broadcast %cst_34 : f32 to vector<8x128xf32>
    %90 = arith.addf %89, %84 : vector<8x128xf32>
    %91 = arith.divf %88, %90 : vector<8x128xf32>
    %92 = arith.mulf %80, %91 : vector<8x128xf32>
    %c0_35 = arith.constant 0 : index
    %c0_36 = arith.constant 0 : index
    %c0_37 = arith.constant 0 : index
    %93 = vector.load %arg8[%c0_35, %c0_36, %c0_37] : memref<2x128x256xf32, #tpu.memory_space<vmem>>, vector<1x128x256xf32>
    %94 = vector.shape_cast %93 : vector<1x128x256xf32> to vector<128x256xf32>
    %cst_38 = arith.constant dense<0.000000e+00> : vector<8x256xf32>
    %95 = tpu.matmul %92, %94, %cst_38 {dimension_numbers = #tpu.dot_dimension_numbers<[1], [0], [0], [1], [0, 0, 1, 1], [], []>} : vector<8x128xf32>, vector<128x256xf32>, vector<8x256xf32> -> vector<8x256xf32>
    %96 = vector.extract_strided_slice %95 {offsets = [0, 0], sizes = [8, 128], strides = [1, 1]} : vector<8x256xf32> to vector<8x128xf32>
    %c0_39 = arith.constant 0 : index
    %c0_40 = arith.constant 0 : index
    %c0_41 = arith.constant 0 : index
    %97 = vector.load %arg9[%c0_39, %c0_40, %c0_41] : memref<2x1x128xf32, #tpu.memory_space<vmem>>, vector<1x1x128xf32>
    %98 = vector.shape_cast %97 : vector<1x1x128xf32> to vector<1x128xf32>
    %99 = vector.broadcast %98 : vector<1x128xf32> to vector<8x128xf32>
    %100 = arith.addf %96, %99 : vector<8x128xf32>
    %cst_42 = arith.constant 2.000000e+01 : f32
    %101 = vector.broadcast %cst_42 : f32 to vector<8x128xf32>
    %102 = arith.minimumf %100, %101 : vector<8x128xf32>
    %cst_43 = arith.constant 2.000000e+01 : f32
    %103 = vector.broadcast %cst_43 : f32 to vector<8x128xf32>
    %104 = arith.cmpf ogt, %100, %103 : vector<8x128xf32>
    %105 = math.exp %102 : vector<8x128xf32>
    %cst_44 = arith.constant 1.000000e+00 : f32
    %106 = vector.broadcast %cst_44 : f32 to vector<8x128xf32>
    %107 = arith.addf %106, %105 : vector<8x128xf32>
    %108 = math.log %107 : vector<8x128xf32>
    %109 = arith.select %104, %100, %108 : vector<8x128xi1>, vector<8x128xf32>
    %110 = vector.shape_cast %109 : vector<8x128xf32> to vector<8x1x128xf32>
    %c0_45 = arith.constant 0 : index
    %c0_46 = arith.constant 0 : index
    %c0_47 = arith.constant 0 : index
    %111 = vector.load %arg10[%c0_45, %c0_46, %c0_47] : memref<2x16x128xf32, #tpu.memory_space<vmem>>, vector<1x16x128xf32>
    %112 = vector.shape_cast %111 : vector<1x16x128xf32> to vector<16x128xf32>
    %113 = vector.shape_cast %112 : vector<16x128xf32> to vector<1x16x128xf32>
    %114 = vector.broadcast %110 : vector<8x1x128xf32> to vector<8x16x128xf32>
    %115 = vector.broadcast %113 : vector<1x16x128xf32> to vector<8x16x128xf32>
    %116 = arith.mulf %114, %115 : vector<8x16x128xf32>
    %117 = math.exp %116 : vector<8x16x128xf32>
    %118 = arith.mulf %109, %92 : vector<8x128xf32>
    %119 = vector.extract_strided_slice %95 {offsets = [0, 128], sizes = [8, 16], strides = [1, 1]} : vector<8x256xf32> to vector<8x16xf32>
    %120 = tpu.transpose %119, [1, 0] : vector<8x16xf32> -> vector<16x8xf32>
    %121 = vector.extract_strided_slice %95 {offsets = [0, 144], sizes = [8, 16], strides = [1, 1]} : vector<8x256xf32> to vector<8x16xf32>
    %122 = tpu.transpose %121, [1, 0] : vector<8x16xf32> -> vector<16x8xf32>
    %123 = vector.extract_strided_slice %95 {offsets = [0, 160], sizes = [8, 16], strides = [1, 1]} : vector<8x256xf32> to vector<8x16xf32>
    %124 = tpu.transpose %123, [1, 0] : vector<8x16xf32> -> vector<16x8xf32>
    %125 = vector.extract_strided_slice %95 {offsets = [0, 176], sizes = [8, 16], strides = [1, 1]} : vector<8x256xf32> to vector<8x16xf32>
    %126 = tpu.transpose %125, [1, 0] : vector<8x16xf32> -> vector<16x8xf32>
    %127 = vector.extract_strided_slice %120 {offsets = [0, 0], sizes = [16, 1], strides = [1, 1]} : vector<16x8xf32> to vector<16x1xf32>
    %128 = vector.extract_strided_slice %118 {offsets = [0, 0], sizes = [1, 64], strides = [1, 1]} : vector<8x128xf32> to vector<1x64xf32>
    %129 = vector.broadcast %127 : vector<16x1xf32> to vector<16x64xf32>
    %130 = vector.broadcast %128 : vector<1x64xf32> to vector<16x64xf32>
    %131 = arith.mulf %129, %130 : vector<16x64xf32>
    %132 = vector.extract_strided_slice %122 {offsets = [0, 0], sizes = [16, 1], strides = [1, 1]} : vector<16x8xf32> to vector<16x1xf32>
    %133 = vector.extract_strided_slice %118 {offsets = [0, 64], sizes = [1, 64], strides = [1, 1]} : vector<8x128xf32> to vector<1x64xf32>
    %134 = vector.broadcast %132 : vector<16x1xf32> to vector<16x64xf32>
    %135 = vector.broadcast %133 : vector<1x64xf32> to vector<16x64xf32>
    %136 = arith.mulf %134, %135 : vector<16x64xf32>
    %137 = tpu.concatenate %131, %136 in 1 : vector<16x64xf32>, vector<16x64xf32> -> vector<16x128xf32>
    %138 = vector.extract_strided_slice %124 {offsets = [0, 0], sizes = [16, 1], strides = [1, 1]} : vector<16x8xf32> to vector<16x1xf32>
    %139 = vector.shape_cast %138 : vector<16x1xf32> to vector<16x1xf32>
    %140 = vector.broadcast %139 : vector<16x1xf32> to vector<16x64xf32>
    %141 = vector.extract_strided_slice %126 {offsets = [0, 0], sizes = [16, 1], strides = [1, 1]} : vector<16x8xf32> to vector<16x1xf32>
    %142 = vector.shape_cast %141 : vector<16x1xf32> to vector<16x1xf32>
    %143 = vector.broadcast %142 : vector<16x1xf32> to vector<16x64xf32>
    %144 = tpu.concatenate %140, %143 in 1 : vector<16x64xf32>, vector<16x64xf32> -> vector<16x128xf32>
    %145 = vector.extract_strided_slice %120 {offsets = [0, 1], sizes = [16, 1], strides = [1, 1]} : vector<16x8xf32> to vector<16x1xf32>
    %146 = vector.extract_strided_slice %118 {offsets = [1, 0], sizes = [1, 64], strides = [1, 1]} : vector<8x128xf32> to vector<1x64xf32>
    %147 = vector.broadcast %145 : vector<16x1xf32> to vector<16x64xf32>
    %148 = vector.broadcast %146 : vector<1x64xf32> to vector<16x64xf32>
    %149 = arith.mulf %147, %148 : vector<16x64xf32>
    %150 = vector.extract_strided_slice %122 {offsets = [0, 1], sizes = [16, 1], strides = [1, 1]} : vector<16x8xf32> to vector<16x1xf32>
    %151 = vector.extract_strided_slice %118 {offsets = [1, 64], sizes = [1, 64], strides = [1, 1]} : vector<8x128xf32> to vector<1x64xf32>
    %152 = vector.broadcast %150 : vector<16x1xf32> to vector<16x64xf32>
    %153 = vector.broadcast %151 : vector<1x64xf32> to vector<16x64xf32>
    %154 = arith.mulf %152, %153 : vector<16x64xf32>
    %155 = tpu.concatenate %149, %154 in 1 : vector<16x64xf32>, vector<16x64xf32> -> vector<16x128xf32>
    %156 = vector.extract_strided_slice %124 {offsets = [0, 1], sizes = [16, 1], strides = [1, 1]} : vector<16x8xf32> to vector<16x1xf32>
    %157 = vector.shape_cast %156 : vector<16x1xf32> to vector<16x1xf32>
    %158 = vector.broadcast %157 : vector<16x1xf32> to vector<16x64xf32>
    %159 = vector.extract_strided_slice %126 {offsets = [0, 1], sizes = [16, 1], strides = [1, 1]} : vector<16x8xf32> to vector<16x1xf32>
    %160 = vector.shape_cast %159 : vector<16x1xf32> to vector<16x1xf32>
    %161 = vector.broadcast %160 : vector<16x1xf32> to vector<16x64xf32>
    %162 = tpu.concatenate %158, %161 in 1 : vector<16x64xf32>, vector<16x64xf32> -> vector<16x128xf32>
    %163 = vector.extract_strided_slice %120 {offsets = [0, 2], sizes = [16, 1], strides = [1, 1]} : vector<16x8xf32> to vector<16x1xf32>
    %164 = vector.extract_strided_slice %118 {offsets = [2, 0], sizes = [1, 64], strides = [1, 1]} : vector<8x128xf32> to vector<1x64xf32>
    %165 = vector.broadcast %163 : vector<16x1xf32> to vector<16x64xf32>
    %166 = vector.broadcast %164 : vector<1x64xf32> to vector<16x64xf32>
    %167 = arith.mulf %165, %166 : vector<16x64xf32>
    %168 = vector.extract_strided_slice %122 {offsets = [0, 2], sizes = [16, 1], strides = [1, 1]} : vector<16x8xf32> to vector<16x1xf32>
    %169 = vector.extract_strided_slice %118 {offsets = [2, 64], sizes = [1, 64], strides = [1, 1]} : vector<8x128xf32> to vector<1x64xf32>
    %170 = vector.broadcast %168 : vector<16x1xf32> to vector<16x64xf32>
    %171 = vector.broadcast %169 : vector<1x64xf32> to vector<16x64xf32>
    %172 = arith.mulf %170, %171 : vector<16x64xf32>
    %173 = tpu.concatenate %167, %172 in 1 : vector<16x64xf32>, vector<16x64xf32> -> vector<16x128xf32>
    %174 = vector.extract_strided_slice %124 {offsets = [0, 2], sizes = [16, 1], strides = [1, 1]} : vector<16x8xf32> to vector<16x1xf32>
    %175 = vector.shape_cast %174 : vector<16x1xf32> to vector<16x1xf32>
    %176 = vector.broadcast %175 : vector<16x1xf32> to vector<16x64xf32>
    %177 = vector.extract_strided_slice %126 {offsets = [0, 2], sizes = [16, 1], strides = [1, 1]} : vector<16x8xf32> to vector<16x1xf32>
    %178 = vector.shape_cast %177 : vector<16x1xf32> to vector<16x1xf32>
    %179 = vector.broadcast %178 : vector<16x1xf32> to vector<16x64xf32>
    %180 = tpu.concatenate %176, %179 in 1 : vector<16x64xf32>, vector<16x64xf32> -> vector<16x128xf32>
    %181 = vector.extract_strided_slice %120 {offsets = [0, 3], sizes = [16, 1], strides = [1, 1]} : vector<16x8xf32> to vector<16x1xf32>
    %182 = vector.extract_strided_slice %118 {offsets = [3, 0], sizes = [1, 64], strides = [1, 1]} : vector<8x128xf32> to vector<1x64xf32>
    %183 = vector.broadcast %181 : vector<16x1xf32> to vector<16x64xf32>
    %184 = vector.broadcast %182 : vector<1x64xf32> to vector<16x64xf32>
    %185 = arith.mulf %183, %184 : vector<16x64xf32>
    %186 = vector.extract_strided_slice %122 {offsets = [0, 3], sizes = [16, 1], strides = [1, 1]} : vector<16x8xf32> to vector<16x1xf32>
    %187 = vector.extract_strided_slice %118 {offsets = [3, 64], sizes = [1, 64], strides = [1, 1]} : vector<8x128xf32> to vector<1x64xf32>
    %188 = vector.broadcast %186 : vector<16x1xf32> to vector<16x64xf32>
    %189 = vector.broadcast %187 : vector<1x64xf32> to vector<16x64xf32>
    %190 = arith.mulf %188, %189 : vector<16x64xf32>
    %191 = tpu.concatenate %185, %190 in 1 : vector<16x64xf32>, vector<16x64xf32> -> vector<16x128xf32>
    %192 = vector.extract_strided_slice %124 {offsets = [0, 3], sizes = [16, 1], strides = [1, 1]} : vector<16x8xf32> to vector<16x1xf32>
    %193 = vector.shape_cast %192 : vector<16x1xf32> to vector<16x1xf32>
    %194 = vector.broadcast %193 : vector<16x1xf32> to vector<16x64xf32>
    %195 = vector.extract_strided_slice %126 {offsets = [0, 3], sizes = [16, 1], strides = [1, 1]} : vector<16x8xf32> to vector<16x1xf32>
    %196 = vector.shape_cast %195 : vector<16x1xf32> to vector<16x1xf32>
    %197 = vector.broadcast %196 : vector<16x1xf32> to vector<16x64xf32>
    %198 = tpu.concatenate %194, %197 in 1 : vector<16x64xf32>, vector<16x64xf32> -> vector<16x128xf32>
    %199 = vector.extract_strided_slice %120 {offsets = [0, 4], sizes = [16, 1], strides = [1, 1]} : vector<16x8xf32> to vector<16x1xf32>
    %200 = vector.extract_strided_slice %118 {offsets = [4, 0], sizes = [1, 64], strides = [1, 1]} : vector<8x128xf32> to vector<1x64xf32>
    %201 = vector.broadcast %199 : vector<16x1xf32> to vector<16x64xf32>
    %202 = vector.broadcast %200 : vector<1x64xf32> to vector<16x64xf32>
    %203 = arith.mulf %201, %202 : vector<16x64xf32>
    %204 = vector.extract_strided_slice %122 {offsets = [0, 4], sizes = [16, 1], strides = [1, 1]} : vector<16x8xf32> to vector<16x1xf32>
    %205 = vector.extract_strided_slice %118 {offsets = [4, 64], sizes = [1, 64], strides = [1, 1]} : vector<8x128xf32> to vector<1x64xf32>
    %206 = vector.broadcast %204 : vector<16x1xf32> to vector<16x64xf32>
    %207 = vector.broadcast %205 : vector<1x64xf32> to vector<16x64xf32>
    %208 = arith.mulf %206, %207 : vector<16x64xf32>
    %209 = tpu.concatenate %203, %208 in 1 : vector<16x64xf32>, vector<16x64xf32> -> vector<16x128xf32>
    %210 = vector.extract_strided_slice %124 {offsets = [0, 4], sizes = [16, 1], strides = [1, 1]} : vector<16x8xf32> to vector<16x1xf32>
    %211 = vector.shape_cast %210 : vector<16x1xf32> to vector<16x1xf32>
    %212 = vector.broadcast %211 : vector<16x1xf32> to vector<16x64xf32>
    %213 = vector.extract_strided_slice %126 {offsets = [0, 4], sizes = [16, 1], strides = [1, 1]} : vector<16x8xf32> to vector<16x1xf32>
    %214 = vector.shape_cast %213 : vector<16x1xf32> to vector<16x1xf32>
    %215 = vector.broadcast %214 : vector<16x1xf32> to vector<16x64xf32>
    %216 = tpu.concatenate %212, %215 in 1 : vector<16x64xf32>, vector<16x64xf32> -> vector<16x128xf32>
    %217 = vector.extract_strided_slice %120 {offsets = [0, 5], sizes = [16, 1], strides = [1, 1]} : vector<16x8xf32> to vector<16x1xf32>
    %218 = vector.extract_strided_slice %118 {offsets = [5, 0], sizes = [1, 64], strides = [1, 1]} : vector<8x128xf32> to vector<1x64xf32>
    %219 = vector.broadcast %217 : vector<16x1xf32> to vector<16x64xf32>
    %220 = vector.broadcast %218 : vector<1x64xf32> to vector<16x64xf32>
    %221 = arith.mulf %219, %220 : vector<16x64xf32>
    %222 = vector.extract_strided_slice %122 {offsets = [0, 5], sizes = [16, 1], strides = [1, 1]} : vector<16x8xf32> to vector<16x1xf32>
    %223 = vector.extract_strided_slice %118 {offsets = [5, 64], sizes = [1, 64], strides = [1, 1]} : vector<8x128xf32> to vector<1x64xf32>
    %224 = vector.broadcast %222 : vector<16x1xf32> to vector<16x64xf32>
    %225 = vector.broadcast %223 : vector<1x64xf32> to vector<16x64xf32>
    %226 = arith.mulf %224, %225 : vector<16x64xf32>
    %227 = tpu.concatenate %221, %226 in 1 : vector<16x64xf32>, vector<16x64xf32> -> vector<16x128xf32>
    %228 = vector.extract_strided_slice %124 {offsets = [0, 5], sizes = [16, 1], strides = [1, 1]} : vector<16x8xf32> to vector<16x1xf32>
    %229 = vector.shape_cast %228 : vector<16x1xf32> to vector<16x1xf32>
    %230 = vector.broadcast %229 : vector<16x1xf32> to vector<16x64xf32>
    %231 = vector.extract_strided_slice %126 {offsets = [0, 5], sizes = [16, 1], strides = [1, 1]} : vector<16x8xf32> to vector<16x1xf32>
    %232 = vector.shape_cast %231 : vector<16x1xf32> to vector<16x1xf32>
    %233 = vector.broadcast %232 : vector<16x1xf32> to vector<16x64xf32>
    %234 = tpu.concatenate %230, %233 in 1 : vector<16x64xf32>, vector<16x64xf32> -> vector<16x128xf32>
    %235 = vector.extract_strided_slice %120 {offsets = [0, 6], sizes = [16, 1], strides = [1, 1]} : vector<16x8xf32> to vector<16x1xf32>
    %236 = vector.extract_strided_slice %118 {offsets = [6, 0], sizes = [1, 64], strides = [1, 1]} : vector<8x128xf32> to vector<1x64xf32>
    %237 = vector.broadcast %235 : vector<16x1xf32> to vector<16x64xf32>
    %238 = vector.broadcast %236 : vector<1x64xf32> to vector<16x64xf32>
    %239 = arith.mulf %237, %238 : vector<16x64xf32>
    %240 = vector.extract_strided_slice %122 {offsets = [0, 6], sizes = [16, 1], strides = [1, 1]} : vector<16x8xf32> to vector<16x1xf32>
    %241 = vector.extract_strided_slice %118 {offsets = [6, 64], sizes = [1, 64], strides = [1, 1]} : vector<8x128xf32> to vector<1x64xf32>
    %242 = vector.broadcast %240 : vector<16x1xf32> to vector<16x64xf32>
    %243 = vector.broadcast %241 : vector<1x64xf32> to vector<16x64xf32>
    %244 = arith.mulf %242, %243 : vector<16x64xf32>
    %245 = tpu.concatenate %239, %244 in 1 : vector<16x64xf32>, vector<16x64xf32> -> vector<16x128xf32>
    %246 = vector.extract_strided_slice %124 {offsets = [0, 6], sizes = [16, 1], strides = [1, 1]} : vector<16x8xf32> to vector<16x1xf32>
    %247 = vector.shape_cast %246 : vector<16x1xf32> to vector<16x1xf32>
    %248 = vector.broadcast %247 : vector<16x1xf32> to vector<16x64xf32>
    %249 = vector.extract_strided_slice %126 {offsets = [0, 6], sizes = [16, 1], strides = [1, 1]} : vector<16x8xf32> to vector<16x1xf32>
    %250 = vector.shape_cast %249 : vector<16x1xf32> to vector<16x1xf32>
    %251 = vector.broadcast %250 : vector<16x1xf32> to vector<16x64xf32>
    %252 = tpu.concatenate %248, %251 in 1 : vector<16x64xf32>, vector<16x64xf32> -> vector<16x128xf32>
    %253 = vector.extract_strided_slice %120 {offsets = [0, 7], sizes = [16, 1], strides = [1, 1]} : vector<16x8xf32> to vector<16x1xf32>
    %254 = vector.extract_strided_slice %118 {offsets = [7, 0], sizes = [1, 64], strides = [1, 1]} : vector<8x128xf32> to vector<1x64xf32>
    %255 = vector.broadcast %253 : vector<16x1xf32> to vector<16x64xf32>
    %256 = vector.broadcast %254 : vector<1x64xf32> to vector<16x64xf32>
    %257 = arith.mulf %255, %256 : vector<16x64xf32>
    %258 = vector.extract_strided_slice %122 {offsets = [0, 7], sizes = [16, 1], strides = [1, 1]} : vector<16x8xf32> to vector<16x1xf32>
    %259 = vector.extract_strided_slice %118 {offsets = [7, 64], sizes = [1, 64], strides = [1, 1]} : vector<8x128xf32> to vector<1x64xf32>
    %260 = vector.broadcast %258 : vector<16x1xf32> to vector<16x64xf32>
    %261 = vector.broadcast %259 : vector<1x64xf32> to vector<16x64xf32>
    %262 = arith.mulf %260, %261 : vector<16x64xf32>
    %263 = tpu.concatenate %257, %262 in 1 : vector<16x64xf32>, vector<16x64xf32> -> vector<16x128xf32>
    %264 = vector.extract_strided_slice %124 {offsets = [0, 7], sizes = [16, 1], strides = [1, 1]} : vector<16x8xf32> to vector<16x1xf32>
    %265 = vector.shape_cast %264 : vector<16x1xf32> to vector<16x1xf32>
    %266 = vector.broadcast %265 : vector<16x1xf32> to vector<16x64xf32>
    %267 = vector.extract_strided_slice %126 {offsets = [0, 7], sizes = [16, 1], strides = [1, 1]} : vector<16x8xf32> to vector<16x1xf32>
    %268 = vector.shape_cast %267 : vector<16x1xf32> to vector<16x1xf32>
    %269 = vector.broadcast %268 : vector<16x1xf32> to vector<16x64xf32>
    %270 = tpu.concatenate %266, %269 in 1 : vector<16x64xf32>, vector<16x64xf32> -> vector<16x128xf32>
    %cst_48 = arith.constant 0.000000e+00 : f32
    %271 = vector.broadcast %cst_48 : f32 to vector<16x128xf32>
    %272 = vector.extract_strided_slice %117 {offsets = [0, 0, 0], sizes = [1, 16, 128], strides = [1, 1, 1]} : vector<8x16x128xf32> to vector<1x16x128xf32>
    %273 = vector.shape_cast %272 : vector<1x16x128xf32> to vector<16x128xf32>
    %274 = arith.mulf %273, %271 : vector<16x128xf32>
    %275 = arith.addf %274, %137 : vector<16x128xf32>
    %276 = arith.mulf %275, %144 : vector<16x128xf32>
    %cst_49 = arith.constant dense<0.000000e+00> : vector<128xf32>
    %277 = vector.multi_reduction <add>, %276, %cst_49 [0] : vector<16x128xf32> to vector<128xf32>
    %278 = vector.shape_cast %277 : vector<128xf32> to vector<1x128xf32>
    %279 = vector.extract_strided_slice %117 {offsets = [1, 0, 0], sizes = [1, 16, 128], strides = [1, 1, 1]} : vector<8x16x128xf32> to vector<1x16x128xf32>
    %280 = vector.shape_cast %279 : vector<1x16x128xf32> to vector<16x128xf32>
    %281 = arith.mulf %280, %275 : vector<16x128xf32>
    %282 = arith.addf %281, %155 : vector<16x128xf32>
    %283 = arith.mulf %282, %162 : vector<16x128xf32>
    %cst_50 = arith.constant dense<0.000000e+00> : vector<128xf32>
    %284 = vector.multi_reduction <add>, %283, %cst_50 [0] : vector<16x128xf32> to vector<128xf32>
    %285 = vector.shape_cast %284 : vector<128xf32> to vector<1x128xf32>
    %286 = vector.extract_strided_slice %117 {offsets = [2, 0, 0], sizes = [1, 16, 128], strides = [1, 1, 1]} : vector<8x16x128xf32> to vector<1x16x128xf32>
    %287 = vector.shape_cast %286 : vector<1x16x128xf32> to vector<16x128xf32>
    %288 = arith.mulf %287, %282 : vector<16x128xf32>
    %289 = arith.addf %288, %173 : vector<16x128xf32>
    %290 = arith.mulf %289, %180 : vector<16x128xf32>
    %cst_51 = arith.constant dense<0.000000e+00> : vector<128xf32>
    %291 = vector.multi_reduction <add>, %290, %cst_51 [0] : vector<16x128xf32> to vector<128xf32>
    %292 = vector.shape_cast %291 : vector<128xf32> to vector<1x128xf32>
    %293 = vector.extract_strided_slice %117 {offsets = [3, 0, 0], sizes = [1, 16, 128], strides = [1, 1, 1]} : vector<8x16x128xf32> to vector<1x16x128xf32>
    %294 = vector.shape_cast %293 : vector<1x16x128xf32> to vector<16x128xf32>
    %295 = arith.mulf %294, %289 : vector<16x128xf32>
    %296 = arith.addf %295, %191 : vector<16x128xf32>
    %297 = arith.mulf %296, %198 : vector<16x128xf32>
    %cst_52 = arith.constant dense<0.000000e+00> : vector<128xf32>
    %298 = vector.multi_reduction <add>, %297, %cst_52 [0] : vector<16x128xf32> to vector<128xf32>
    %299 = vector.shape_cast %298 : vector<128xf32> to vector<1x128xf32>
    %300 = vector.extract_strided_slice %117 {offsets = [4, 0, 0], sizes = [1, 16, 128], strides = [1, 1, 1]} : vector<8x16x128xf32> to vector<1x16x128xf32>
    %301 = vector.shape_cast %300 : vector<1x16x128xf32> to vector<16x128xf32>
    %302 = arith.mulf %301, %296 : vector<16x128xf32>
    %303 = arith.addf %302, %209 : vector<16x128xf32>
    %304 = arith.mulf %303, %216 : vector<16x128xf32>
    %cst_53 = arith.constant dense<0.000000e+00> : vector<128xf32>
    %305 = vector.multi_reduction <add>, %304, %cst_53 [0] : vector<16x128xf32> to vector<128xf32>
    %306 = vector.shape_cast %305 : vector<128xf32> to vector<1x128xf32>
    %307 = vector.extract_strided_slice %117 {offsets = [5, 0, 0], sizes = [1, 16, 128], strides = [1, 1, 1]} : vector<8x16x128xf32> to vector<1x16x128xf32>
    %308 = vector.shape_cast %307 : vector<1x16x128xf32> to vector<16x128xf32>
    %309 = arith.mulf %308, %303 : vector<16x128xf32>
    %310 = arith.addf %309, %227 : vector<16x128xf32>
    %311 = arith.mulf %310, %234 : vector<16x128xf32>
    %cst_54 = arith.constant dense<0.000000e+00> : vector<128xf32>
    %312 = vector.multi_reduction <add>, %311, %cst_54 [0] : vector<16x128xf32> to vector<128xf32>
    %313 = vector.shape_cast %312 : vector<128xf32> to vector<1x128xf32>
    %314 = vector.extract_strided_slice %117 {offsets = [6, 0, 0], sizes = [1, 16, 128], strides = [1, 1, 1]} : vector<8x16x128xf32> to vector<1x16x128xf32>
    %315 = vector.shape_cast %314 : vector<1x16x128xf32> to vector<16x128xf32>
    %316 = arith.mulf %315, %310 : vector<16x128xf32>
    %317 = arith.addf %316, %245 : vector<16x128xf32>
    %318 = arith.mulf %317, %252 : vector<16x128xf32>
    %cst_55 = arith.constant dense<0.000000e+00> : vector<128xf32>
    %319 = vector.multi_reduction <add>, %318, %cst_55 [0] : vector<16x128xf32> to vector<128xf32>
    %320 = vector.shape_cast %319 : vector<128xf32> to vector<1x128xf32>
    %321 = vector.extract_strided_slice %117 {offsets = [7, 0, 0], sizes = [1, 16, 128], strides = [1, 1, 1]} : vector<8x16x128xf32> to vector<1x16x128xf32>
    %322 = vector.shape_cast %321 : vector<1x16x128xf32> to vector<16x128xf32>
    %323 = arith.mulf %322, %317 : vector<16x128xf32>
    %324 = arith.addf %323, %263 : vector<16x128xf32>
    %325 = arith.mulf %324, %270 : vector<16x128xf32>
    %cst_56 = arith.constant dense<0.000000e+00> : vector<128xf32>
    %326 = vector.multi_reduction <add>, %325, %cst_56 [0] : vector<16x128xf32> to vector<128xf32>
    %327 = vector.shape_cast %326 : vector<128xf32> to vector<1x128xf32>
    %328 = tpu.concatenate %278, %285, %292, %299, %306, %313, %320, %327 in 0 : vector<1x128xf32>, vector<1x128xf32>, vector<1x128xf32>, vector<1x128xf32>, vector<1x128xf32>, vector<1x128xf32>, vector<1x128xf32>, vector<1x128xf32> -> vector<8x128xf32>
    %c0_57 = arith.constant 0 : index
    %c0_58 = arith.constant 0 : index
    %c0_59 = arith.constant 0 : index
    %329 = vector.load %arg11[%c0_57, %c0_58, %c0_59] : memref<2x1x128xf32, #tpu.memory_space<vmem>>, vector<1x1x128xf32>
    %330 = vector.shape_cast %329 : vector<1x1x128xf32> to vector<1x128xf32>
    %331 = vector.broadcast %330 : vector<1x128xf32> to vector<8x128xf32>
    %332 = arith.mulf %92, %331 : vector<8x128xf32>
    %333 = arith.addf %328, %332 : vector<8x128xf32>
    %334 = vector.extract_strided_slice %333 {offsets = [0, 0], sizes = [8, 64], strides = [1, 1]} : vector<8x128xf32> to vector<8x64xf32>
    %335 = vector.extract_strided_slice %333 {offsets = [0, 64], sizes = [8, 64], strides = [1, 1]} : vector<8x128xf32> to vector<8x64xf32>
    %336 = tpu.concatenate %334, %335 in 0 : vector<8x64xf32>, vector<8x64xf32> -> vector<16x64xf32>
    %337 = math.absf %41 : vector<16x64xf32>
    %cst_60 = arith.constant 0.000000e+00 : f32
    %338 = vector.broadcast %cst_60 : f32 to vector<16x64xf32>
    %339 = arith.subf %338, %337 : vector<16x64xf32>
    %340 = math.exp %339 : vector<16x64xf32>
    %cst_61 = arith.constant 0.000000e+00 : f32
    %341 = vector.broadcast %cst_61 : f32 to vector<16x64xf32>
    %342 = arith.cmpf oge, %41, %341 : vector<16x64xf32>
    %cst_62 = arith.constant 1.000000e+00 : f32
    %343 = vector.broadcast %cst_62 : f32 to vector<16x64xf32>
    %344 = arith.select %342, %343, %340 : vector<16x64xi1>, vector<16x64xf32>
    %cst_63 = arith.constant 1.000000e+00 : f32
    %345 = vector.broadcast %cst_63 : f32 to vector<16x64xf32>
    %346 = arith.addf %345, %340 : vector<16x64xf32>
    %347 = arith.divf %344, %346 : vector<16x64xf32>
    %348 = arith.mulf %41, %347 : vector<16x64xf32>
    %349 = arith.mulf %336, %348 : vector<16x64xf32>
    %c0_64 = arith.constant 0 : index
    %c0_65 = arith.constant 0 : index
    %c0_66 = arith.constant 0 : index
    %350 = vector.load %arg12[%c0_64, %c0_65, %c0_66] : memref<2x64x32xf32, #tpu.memory_space<vmem>>, vector<1x64x32xf32>
    %351 = vector.shape_cast %350 : vector<1x64x32xf32> to vector<64x32xf32>
    %cst_67 = arith.constant dense<0.000000e+00> : vector<16x32xf32>
    %352 = tpu.matmul %349, %351, %cst_67 {dimension_numbers = #tpu.dot_dimension_numbers<[1], [0], [0], [1], [0, 0, 1, 1], [], []>} : vector<16x64xf32>, vector<64x32xf32>, vector<16x32xf32> -> vector<16x32xf32>
    %353 = arith.addf %352, %11 : vector<16x32xf32>
    %c1 = arith.constant 1 : index
    %c0_68 = arith.constant 0 : index
    %c0_69 = arith.constant 0 : index
    %354 = vector.load %arg3[%c1, %c0_68, %c0_69] : memref<2x1x32xf32, #tpu.memory_space<vmem>>, vector<1x1x32xf32>
    %355 = vector.shape_cast %354 : vector<1x1x32xf32> to vector<1x32xf32>
    %c1_70 = arith.constant 1 : index
    %c0_71 = arith.constant 0 : index
    %c0_72 = arith.constant 0 : index
    %356 = vector.load %arg4[%c1_70, %c0_71, %c0_72] : memref<2x1x32xf32, #tpu.memory_space<vmem>>, vector<1x1x32xf32>
    %357 = vector.shape_cast %356 : vector<1x1x32xf32> to vector<1x32xf32>
    %cst_73 = arith.constant dense<0.000000e+00> : vector<16xf32>
    %358 = vector.multi_reduction <add>, %353, %cst_73 [1] : vector<16x32xf32> to vector<16xf32>
    %359 = vector.shape_cast %358 : vector<16xf32> to vector<16x1xf32>
    %cst_74 = arith.constant 3.200000e+01 : f32
    %360 = vector.broadcast %cst_74 : f32 to vector<16x1xf32>
    %361 = arith.divf %359, %360 : vector<16x1xf32>
    %362 = vector.broadcast %361 : vector<16x1xf32> to vector<16x32xf32>
    %363 = arith.subf %353, %362 : vector<16x32xf32>
    %364 = arith.mulf %363, %363 : vector<16x32xf32>
    %cst_75 = arith.constant dense<0.000000e+00> : vector<16xf32>
    %365 = vector.multi_reduction <add>, %364, %cst_75 [1] : vector<16x32xf32> to vector<16xf32>
    %366 = vector.shape_cast %365 : vector<16xf32> to vector<16x1xf32>
    %cst_76 = arith.constant 3.200000e+01 : f32
    %367 = vector.broadcast %cst_76 : f32 to vector<16x1xf32>
    %368 = arith.divf %366, %367 : vector<16x1xf32>
    %369 = vector.broadcast %361 : vector<16x1xf32> to vector<16x32xf32>
    %370 = arith.subf %353, %369 : vector<16x32xf32>
    %cst_77 = arith.constant 9.99999974E-6 : f32
    %371 = vector.broadcast %cst_77 : f32 to vector<16x1xf32>
    %372 = arith.addf %368, %371 : vector<16x1xf32>
    %373 = math.rsqrt %372 : vector<16x1xf32>
    %374 = vector.broadcast %373 : vector<16x1xf32> to vector<16x32xf32>
    %375 = arith.mulf %370, %374 : vector<16x32xf32>
    %376 = vector.broadcast %355 : vector<1x32xf32> to vector<16x32xf32>
    %377 = arith.mulf %375, %376 : vector<16x32xf32>
    %378 = vector.broadcast %357 : vector<1x32xf32> to vector<16x32xf32>
    %379 = arith.addf %377, %378 : vector<16x32xf32>
    %c1_78 = arith.constant 1 : index
    %c0_79 = arith.constant 0 : index
    %c0_80 = arith.constant 0 : index
    %380 = vector.load %arg5[%c1_78, %c0_79, %c0_80] : memref<2x32x128xf32, #tpu.memory_space<vmem>>, vector<1x32x128xf32>
    %381 = vector.shape_cast %380 : vector<1x32x128xf32> to vector<32x128xf32>
    %cst_81 = arith.constant dense<0.000000e+00> : vector<16x128xf32>
    %382 = tpu.matmul %379, %381, %cst_81 {dimension_numbers = #tpu.dot_dimension_numbers<[1], [0], [0], [1], [0, 0, 1, 1], [], []>} : vector<16x32xf32>, vector<32x128xf32>, vector<16x128xf32> -> vector<16x128xf32>
    %383 = vector.extract_strided_slice %382 {offsets = [0, 64], sizes = [16, 64], strides = [1, 1]} : vector<16x128xf32> to vector<16x64xf32>
    %384 = vector.extract_strided_slice %382 {offsets = [0, 0], sizes = [8, 64], strides = [1, 1]} : vector<16x128xf32> to vector<8x64xf32>
    %385 = vector.extract_strided_slice %382 {offsets = [8, 0], sizes = [8, 64], strides = [1, 1]} : vector<16x128xf32> to vector<8x64xf32>
    %386 = tpu.concatenate %384, %385 in 1 : vector<8x64xf32>, vector<8x64xf32> -> vector<8x128xf32>
    %c1_82 = arith.constant 1 : index
    %c0_83 = arith.constant 0 : index
    %c0_84 = arith.constant 0 : index
    %387 = vector.load %arg6[%c1_82, %c0_83, %c0_84] : memref<2x4x128xf32, #tpu.memory_space<vmem>>, vector<1x4x128xf32>
    %388 = vector.shape_cast %387 : vector<1x4x128xf32> to vector<4x128xf32>
    %389 = vector.extract_strided_slice %388 {offsets = [3, 0], sizes = [1, 128], strides = [1, 1]} : vector<4x128xf32> to vector<1x128xf32>
    %390 = vector.broadcast %389 : vector<1x128xf32> to vector<8x128xf32>
    %391 = arith.mulf %386, %390 : vector<8x128xf32>
    %c1_i32_85 = arith.constant 1 : i32
    %392 = tpu.dynamic_rotate %386 by %c1_i32_85 dim 0 : vector<8x128xf32>, i32 -> vector<8x128xf32>
    %c1_i32_86 = arith.constant 1 : i32
    %393 = vector.broadcast %c1_i32_86 : i32 to vector<8x128xi32>
    %394 = arith.cmpi sge, %0, %393 : vector<8x128xi32>
    %cst_87 = arith.constant 0.000000e+00 : f32
    %395 = vector.broadcast %cst_87 : f32 to vector<8x128xf32>
    %396 = arith.select %394, %392, %395 : vector<8x128xi1>, vector<8x128xf32>
    %397 = vector.extract_strided_slice %388 {offsets = [2, 0], sizes = [1, 128], strides = [1, 1]} : vector<4x128xf32> to vector<1x128xf32>
    %398 = vector.broadcast %397 : vector<1x128xf32> to vector<8x128xf32>
    %399 = arith.mulf %396, %398 : vector<8x128xf32>
    %400 = arith.addf %391, %399 : vector<8x128xf32>
    %c2_i32_88 = arith.constant 2 : i32
    %401 = tpu.dynamic_rotate %386 by %c2_i32_88 dim 0 : vector<8x128xf32>, i32 -> vector<8x128xf32>
    %c2_i32_89 = arith.constant 2 : i32
    %402 = vector.broadcast %c2_i32_89 : i32 to vector<8x128xi32>
    %403 = arith.cmpi sge, %0, %402 : vector<8x128xi32>
    %cst_90 = arith.constant 0.000000e+00 : f32
    %404 = vector.broadcast %cst_90 : f32 to vector<8x128xf32>
    %405 = arith.select %403, %401, %404 : vector<8x128xi1>, vector<8x128xf32>
    %406 = vector.extract_strided_slice %388 {offsets = [1, 0], sizes = [1, 128], strides = [1, 1]} : vector<4x128xf32> to vector<1x128xf32>
    %407 = vector.broadcast %406 : vector<1x128xf32> to vector<8x128xf32>
    %408 = arith.mulf %405, %407 : vector<8x128xf32>
    %409 = arith.addf %400, %408 : vector<8x128xf32>
    %c3_i32_91 = arith.constant 3 : i32
    %410 = tpu.dynamic_rotate %386 by %c3_i32_91 dim 0 : vector<8x128xf32>, i32 -> vector<8x128xf32>
    %c3_i32_92 = arith.constant 3 : i32
    %411 = vector.broadcast %c3_i32_92 : i32 to vector<8x128xi32>
    %412 = arith.cmpi sge, %0, %411 : vector<8x128xi32>
    %cst_93 = arith.constant 0.000000e+00 : f32
    %413 = vector.broadcast %cst_93 : f32 to vector<8x128xf32>
    %414 = arith.select %412, %410, %413 : vector<8x128xi1>, vector<8x128xf32>
    %415 = vector.extract_strided_slice %388 {offsets = [0, 0], sizes = [1, 128], strides = [1, 1]} : vector<4x128xf32> to vector<1x128xf32>
    %416 = vector.broadcast %415 : vector<1x128xf32> to vector<8x128xf32>
    %417 = arith.mulf %414, %416 : vector<8x128xf32>
    %418 = arith.addf %409, %417 : vector<8x128xf32>
    %c1_94 = arith.constant 1 : index
    %c0_95 = arith.constant 0 : index
    %c0_96 = arith.constant 0 : index
    %419 = vector.load %arg7[%c1_94, %c0_95, %c0_96] : memref<2x1x128xf32, #tpu.memory_space<vmem>>, vector<1x1x128xf32>
    %420 = vector.shape_cast %419 : vector<1x1x128xf32> to vector<1x128xf32>
    %421 = vector.broadcast %420 : vector<1x128xf32> to vector<8x128xf32>
    %422 = arith.addf %418, %421 : vector<8x128xf32>
    %423 = math.absf %422 : vector<8x128xf32>
    %cst_97 = arith.constant 0.000000e+00 : f32
    %424 = vector.broadcast %cst_97 : f32 to vector<8x128xf32>
    %425 = arith.subf %424, %423 : vector<8x128xf32>
    %426 = math.exp %425 : vector<8x128xf32>
    %cst_98 = arith.constant 0.000000e+00 : f32
    %427 = vector.broadcast %cst_98 : f32 to vector<8x128xf32>
    %428 = arith.cmpf oge, %422, %427 : vector<8x128xf32>
    %cst_99 = arith.constant 1.000000e+00 : f32
    %429 = vector.broadcast %cst_99 : f32 to vector<8x128xf32>
    %430 = arith.select %428, %429, %426 : vector<8x128xi1>, vector<8x128xf32>
    %cst_100 = arith.constant 1.000000e+00 : f32
    %431 = vector.broadcast %cst_100 : f32 to vector<8x128xf32>
    %432 = arith.addf %431, %426 : vector<8x128xf32>
    %433 = arith.divf %430, %432 : vector<8x128xf32>
    %434 = arith.mulf %422, %433 : vector<8x128xf32>
    %c1_101 = arith.constant 1 : index
    %c0_102 = arith.constant 0 : index
    %c0_103 = arith.constant 0 : index
    %435 = vector.load %arg8[%c1_101, %c0_102, %c0_103] : memref<2x128x256xf32, #tpu.memory_space<vmem>>, vector<1x128x256xf32>
    %436 = vector.shape_cast %435 : vector<1x128x256xf32> to vector<128x256xf32>
    %cst_104 = arith.constant dense<0.000000e+00> : vector<8x256xf32>
    %437 = tpu.matmul %434, %436, %cst_104 {dimension_numbers = #tpu.dot_dimension_numbers<[1], [0], [0], [1], [0, 0, 1, 1], [], []>} : vector<8x128xf32>, vector<128x256xf32>, vector<8x256xf32> -> vector<8x256xf32>
    %438 = vector.extract_strided_slice %437 {offsets = [0, 0], sizes = [8, 128], strides = [1, 1]} : vector<8x256xf32> to vector<8x128xf32>
    %c1_105 = arith.constant 1 : index
    %c0_106 = arith.constant 0 : index
    %c0_107 = arith.constant 0 : index
    %439 = vector.load %arg9[%c1_105, %c0_106, %c0_107] : memref<2x1x128xf32, #tpu.memory_space<vmem>>, vector<1x1x128xf32>
    %440 = vector.shape_cast %439 : vector<1x1x128xf32> to vector<1x128xf32>
    %441 = vector.broadcast %440 : vector<1x128xf32> to vector<8x128xf32>
    %442 = arith.addf %438, %441 : vector<8x128xf32>
    %cst_108 = arith.constant 2.000000e+01 : f32
    %443 = vector.broadcast %cst_108 : f32 to vector<8x128xf32>
    %444 = arith.minimumf %442, %443 : vector<8x128xf32>
    %cst_109 = arith.constant 2.000000e+01 : f32
    %445 = vector.broadcast %cst_109 : f32 to vector<8x128xf32>
    %446 = arith.cmpf ogt, %442, %445 : vector<8x128xf32>
    %447 = math.exp %444 : vector<8x128xf32>
    %cst_110 = arith.constant 1.000000e+00 : f32
    %448 = vector.broadcast %cst_110 : f32 to vector<8x128xf32>
    %449 = arith.addf %448, %447 : vector<8x128xf32>
    %450 = math.log %449 : vector<8x128xf32>
    %451 = arith.select %446, %442, %450 : vector<8x128xi1>, vector<8x128xf32>
    %452 = vector.shape_cast %451 : vector<8x128xf32> to vector<8x1x128xf32>
    %c1_111 = arith.constant 1 : index
    %c0_112 = arith.constant 0 : index
    %c0_113 = arith.constant 0 : index
    %453 = vector.load %arg10[%c1_111, %c0_112, %c0_113] : memref<2x16x128xf32, #tpu.memory_space<vmem>>, vector<1x16x128xf32>
    %454 = vector.shape_cast %453 : vector<1x16x128xf32> to vector<16x128xf32>
    %455 = vector.shape_cast %454 : vector<16x128xf32> to vector<1x16x128xf32>
    %456 = vector.broadcast %452 : vector<8x1x128xf32> to vector<8x16x128xf32>
    %457 = vector.broadcast %455 : vector<1x16x128xf32> to vector<8x16x128xf32>
    %458 = arith.mulf %456, %457 : vector<8x16x128xf32>
    %459 = math.exp %458 : vector<8x16x128xf32>
    %460 = arith.mulf %451, %434 : vector<8x128xf32>
    %461 = vector.extract_strided_slice %437 {offsets = [0, 128], sizes = [8, 16], strides = [1, 1]} : vector<8x256xf32> to vector<8x16xf32>
    %462 = tpu.transpose %461, [1, 0] : vector<8x16xf32> -> vector<16x8xf32>
    %463 = vector.extract_strided_slice %437 {offsets = [0, 144], sizes = [8, 16], strides = [1, 1]} : vector<8x256xf32> to vector<8x16xf32>
    %464 = tpu.transpose %463, [1, 0] : vector<8x16xf32> -> vector<16x8xf32>
    %465 = vector.extract_strided_slice %437 {offsets = [0, 160], sizes = [8, 16], strides = [1, 1]} : vector<8x256xf32> to vector<8x16xf32>
    %466 = tpu.transpose %465, [1, 0] : vector<8x16xf32> -> vector<16x8xf32>
    %467 = vector.extract_strided_slice %437 {offsets = [0, 176], sizes = [8, 16], strides = [1, 1]} : vector<8x256xf32> to vector<8x16xf32>
    %468 = tpu.transpose %467, [1, 0] : vector<8x16xf32> -> vector<16x8xf32>
    %469 = vector.extract_strided_slice %462 {offsets = [0, 0], sizes = [16, 1], strides = [1, 1]} : vector<16x8xf32> to vector<16x1xf32>
    %470 = vector.extract_strided_slice %460 {offsets = [0, 0], sizes = [1, 64], strides = [1, 1]} : vector<8x128xf32> to vector<1x64xf32>
    %471 = vector.broadcast %469 : vector<16x1xf32> to vector<16x64xf32>
    %472 = vector.broadcast %470 : vector<1x64xf32> to vector<16x64xf32>
    %473 = arith.mulf %471, %472 : vector<16x64xf32>
    %474 = vector.extract_strided_slice %464 {offsets = [0, 0], sizes = [16, 1], strides = [1, 1]} : vector<16x8xf32> to vector<16x1xf32>
    %475 = vector.extract_strided_slice %460 {offsets = [0, 64], sizes = [1, 64], strides = [1, 1]} : vector<8x128xf32> to vector<1x64xf32>
    %476 = vector.broadcast %474 : vector<16x1xf32> to vector<16x64xf32>
    %477 = vector.broadcast %475 : vector<1x64xf32> to vector<16x64xf32>
    %478 = arith.mulf %476, %477 : vector<16x64xf32>
    %479 = tpu.concatenate %473, %478 in 1 : vector<16x64xf32>, vector<16x64xf32> -> vector<16x128xf32>
    %480 = vector.extract_strided_slice %466 {offsets = [0, 0], sizes = [16, 1], strides = [1, 1]} : vector<16x8xf32> to vector<16x1xf32>
    %481 = vector.shape_cast %480 : vector<16x1xf32> to vector<16x1xf32>
    %482 = vector.broadcast %481 : vector<16x1xf32> to vector<16x64xf32>
    %483 = vector.extract_strided_slice %468 {offsets = [0, 0], sizes = [16, 1], strides = [1, 1]} : vector<16x8xf32> to vector<16x1xf32>
    %484 = vector.shape_cast %483 : vector<16x1xf32> to vector<16x1xf32>
    %485 = vector.broadcast %484 : vector<16x1xf32> to vector<16x64xf32>
    %486 = tpu.concatenate %482, %485 in 1 : vector<16x64xf32>, vector<16x64xf32> -> vector<16x128xf32>
    %487 = vector.extract_strided_slice %462 {offsets = [0, 1], sizes = [16, 1], strides = [1, 1]} : vector<16x8xf32> to vector<16x1xf32>
    %488 = vector.extract_strided_slice %460 {offsets = [1, 0], sizes = [1, 64], strides = [1, 1]} : vector<8x128xf32> to vector<1x64xf32>
    %489 = vector.broadcast %487 : vector<16x1xf32> to vector<16x64xf32>
    %490 = vector.broadcast %488 : vector<1x64xf32> to vector<16x64xf32>
    %491 = arith.mulf %489, %490 : vector<16x64xf32>
    %492 = vector.extract_strided_slice %464 {offsets = [0, 1], sizes = [16, 1], strides = [1, 1]} : vector<16x8xf32> to vector<16x1xf32>
    %493 = vector.extract_strided_slice %460 {offsets = [1, 64], sizes = [1, 64], strides = [1, 1]} : vector<8x128xf32> to vector<1x64xf32>
    %494 = vector.broadcast %492 : vector<16x1xf32> to vector<16x64xf32>
    %495 = vector.broadcast %493 : vector<1x64xf32> to vector<16x64xf32>
    %496 = arith.mulf %494, %495 : vector<16x64xf32>
    %497 = tpu.concatenate %491, %496 in 1 : vector<16x64xf32>, vector<16x64xf32> -> vector<16x128xf32>
    %498 = vector.extract_strided_slice %466 {offsets = [0, 1], sizes = [16, 1], strides = [1, 1]} : vector<16x8xf32> to vector<16x1xf32>
    %499 = vector.shape_cast %498 : vector<16x1xf32> to vector<16x1xf32>
    %500 = vector.broadcast %499 : vector<16x1xf32> to vector<16x64xf32>
    %501 = vector.extract_strided_slice %468 {offsets = [0, 1], sizes = [16, 1], strides = [1, 1]} : vector<16x8xf32> to vector<16x1xf32>
    %502 = vector.shape_cast %501 : vector<16x1xf32> to vector<16x1xf32>
    %503 = vector.broadcast %502 : vector<16x1xf32> to vector<16x64xf32>
    %504 = tpu.concatenate %500, %503 in 1 : vector<16x64xf32>, vector<16x64xf32> -> vector<16x128xf32>
    %505 = vector.extract_strided_slice %462 {offsets = [0, 2], sizes = [16, 1], strides = [1, 1]} : vector<16x8xf32> to vector<16x1xf32>
    %506 = vector.extract_strided_slice %460 {offsets = [2, 0], sizes = [1, 64], strides = [1, 1]} : vector<8x128xf32> to vector<1x64xf32>
    %507 = vector.broadcast %505 : vector<16x1xf32> to vector<16x64xf32>
    %508 = vector.broadcast %506 : vector<1x64xf32> to vector<16x64xf32>
    %509 = arith.mulf %507, %508 : vector<16x64xf32>
    %510 = vector.extract_strided_slice %464 {offsets = [0, 2], sizes = [16, 1], strides = [1, 1]} : vector<16x8xf32> to vector<16x1xf32>
    %511 = vector.extract_strided_slice %460 {offsets = [2, 64], sizes = [1, 64], strides = [1, 1]} : vector<8x128xf32> to vector<1x64xf32>
    %512 = vector.broadcast %510 : vector<16x1xf32> to vector<16x64xf32>
    %513 = vector.broadcast %511 : vector<1x64xf32> to vector<16x64xf32>
    %514 = arith.mulf %512, %513 : vector<16x64xf32>
    %515 = tpu.concatenate %509, %514 in 1 : vector<16x64xf32>, vector<16x64xf32> -> vector<16x128xf32>
    %516 = vector.extract_strided_slice %466 {offsets = [0, 2], sizes = [16, 1], strides = [1, 1]} : vector<16x8xf32> to vector<16x1xf32>
    %517 = vector.shape_cast %516 : vector<16x1xf32> to vector<16x1xf32>
    %518 = vector.broadcast %517 : vector<16x1xf32> to vector<16x64xf32>
    %519 = vector.extract_strided_slice %468 {offsets = [0, 2], sizes = [16, 1], strides = [1, 1]} : vector<16x8xf32> to vector<16x1xf32>
    %520 = vector.shape_cast %519 : vector<16x1xf32> to vector<16x1xf32>
    %521 = vector.broadcast %520 : vector<16x1xf32> to vector<16x64xf32>
    %522 = tpu.concatenate %518, %521 in 1 : vector<16x64xf32>, vector<16x64xf32> -> vector<16x128xf32>
    %523 = vector.extract_strided_slice %462 {offsets = [0, 3], sizes = [16, 1], strides = [1, 1]} : vector<16x8xf32> to vector<16x1xf32>
    %524 = vector.extract_strided_slice %460 {offsets = [3, 0], sizes = [1, 64], strides = [1, 1]} : vector<8x128xf32> to vector<1x64xf32>
    %525 = vector.broadcast %523 : vector<16x1xf32> to vector<16x64xf32>
    %526 = vector.broadcast %524 : vector<1x64xf32> to vector<16x64xf32>
    %527 = arith.mulf %525, %526 : vector<16x64xf32>
    %528 = vector.extract_strided_slice %464 {offsets = [0, 3], sizes = [16, 1], strides = [1, 1]} : vector<16x8xf32> to vector<16x1xf32>
    %529 = vector.extract_strided_slice %460 {offsets = [3, 64], sizes = [1, 64], strides = [1, 1]} : vector<8x128xf32> to vector<1x64xf32>
    %530 = vector.broadcast %528 : vector<16x1xf32> to vector<16x64xf32>
    %531 = vector.broadcast %529 : vector<1x64xf32> to vector<16x64xf32>
    %532 = arith.mulf %530, %531 : vector<16x64xf32>
    %533 = tpu.concatenate %527, %532 in 1 : vector<16x64xf32>, vector<16x64xf32> -> vector<16x128xf32>
    %534 = vector.extract_strided_slice %466 {offsets = [0, 3], sizes = [16, 1], strides = [1, 1]} : vector<16x8xf32> to vector<16x1xf32>
    %535 = vector.shape_cast %534 : vector<16x1xf32> to vector<16x1xf32>
    %536 = vector.broadcast %535 : vector<16x1xf32> to vector<16x64xf32>
    %537 = vector.extract_strided_slice %468 {offsets = [0, 3], sizes = [16, 1], strides = [1, 1]} : vector<16x8xf32> to vector<16x1xf32>
    %538 = vector.shape_cast %537 : vector<16x1xf32> to vector<16x1xf32>
    %539 = vector.broadcast %538 : vector<16x1xf32> to vector<16x64xf32>
    %540 = tpu.concatenate %536, %539 in 1 : vector<16x64xf32>, vector<16x64xf32> -> vector<16x128xf32>
    %541 = vector.extract_strided_slice %462 {offsets = [0, 4], sizes = [16, 1], strides = [1, 1]} : vector<16x8xf32> to vector<16x1xf32>
    %542 = vector.extract_strided_slice %460 {offsets = [4, 0], sizes = [1, 64], strides = [1, 1]} : vector<8x128xf32> to vector<1x64xf32>
    %543 = vector.broadcast %541 : vector<16x1xf32> to vector<16x64xf32>
    %544 = vector.broadcast %542 : vector<1x64xf32> to vector<16x64xf32>
    %545 = arith.mulf %543, %544 : vector<16x64xf32>
    %546 = vector.extract_strided_slice %464 {offsets = [0, 4], sizes = [16, 1], strides = [1, 1]} : vector<16x8xf32> to vector<16x1xf32>
    %547 = vector.extract_strided_slice %460 {offsets = [4, 64], sizes = [1, 64], strides = [1, 1]} : vector<8x128xf32> to vector<1x64xf32>
    %548 = vector.broadcast %546 : vector<16x1xf32> to vector<16x64xf32>
    %549 = vector.broadcast %547 : vector<1x64xf32> to vector<16x64xf32>
    %550 = arith.mulf %548, %549 : vector<16x64xf32>
    %551 = tpu.concatenate %545, %550 in 1 : vector<16x64xf32>, vector<16x64xf32> -> vector<16x128xf32>
    %552 = vector.extract_strided_slice %466 {offsets = [0, 4], sizes = [16, 1], strides = [1, 1]} : vector<16x8xf32> to vector<16x1xf32>
    %553 = vector.shape_cast %552 : vector<16x1xf32> to vector<16x1xf32>
    %554 = vector.broadcast %553 : vector<16x1xf32> to vector<16x64xf32>
    %555 = vector.extract_strided_slice %468 {offsets = [0, 4], sizes = [16, 1], strides = [1, 1]} : vector<16x8xf32> to vector<16x1xf32>
    %556 = vector.shape_cast %555 : vector<16x1xf32> to vector<16x1xf32>
    %557 = vector.broadcast %556 : vector<16x1xf32> to vector<16x64xf32>
    %558 = tpu.concatenate %554, %557 in 1 : vector<16x64xf32>, vector<16x64xf32> -> vector<16x128xf32>
    %559 = vector.extract_strided_slice %462 {offsets = [0, 5], sizes = [16, 1], strides = [1, 1]} : vector<16x8xf32> to vector<16x1xf32>
    %560 = vector.extract_strided_slice %460 {offsets = [5, 0], sizes = [1, 64], strides = [1, 1]} : vector<8x128xf32> to vector<1x64xf32>
    %561 = vector.broadcast %559 : vector<16x1xf32> to vector<16x64xf32>
    %562 = vector.broadcast %560 : vector<1x64xf32> to vector<16x64xf32>
    %563 = arith.mulf %561, %562 : vector<16x64xf32>
    %564 = vector.extract_strided_slice %464 {offsets = [0, 5], sizes = [16, 1], strides = [1, 1]} : vector<16x8xf32> to vector<16x1xf32>
    %565 = vector.extract_strided_slice %460 {offsets = [5, 64], sizes = [1, 64], strides = [1, 1]} : vector<8x128xf32> to vector<1x64xf32>
    %566 = vector.broadcast %564 : vector<16x1xf32> to vector<16x64xf32>
    %567 = vector.broadcast %565 : vector<1x64xf32> to vector<16x64xf32>
    %568 = arith.mulf %566, %567 : vector<16x64xf32>
    %569 = tpu.concatenate %563, %568 in 1 : vector<16x64xf32>, vector<16x64xf32> -> vector<16x128xf32>
    %570 = vector.extract_strided_slice %466 {offsets = [0, 5], sizes = [16, 1], strides = [1, 1]} : vector<16x8xf32> to vector<16x1xf32>
    %571 = vector.shape_cast %570 : vector<16x1xf32> to vector<16x1xf32>
    %572 = vector.broadcast %571 : vector<16x1xf32> to vector<16x64xf32>
    %573 = vector.extract_strided_slice %468 {offsets = [0, 5], sizes = [16, 1], strides = [1, 1]} : vector<16x8xf32> to vector<16x1xf32>
    %574 = vector.shape_cast %573 : vector<16x1xf32> to vector<16x1xf32>
    %575 = vector.broadcast %574 : vector<16x1xf32> to vector<16x64xf32>
    %576 = tpu.concatenate %572, %575 in 1 : vector<16x64xf32>, vector<16x64xf32> -> vector<16x128xf32>
    %577 = vector.extract_strided_slice %462 {offsets = [0, 6], sizes = [16, 1], strides = [1, 1]} : vector<16x8xf32> to vector<16x1xf32>
    %578 = vector.extract_strided_slice %460 {offsets = [6, 0], sizes = [1, 64], strides = [1, 1]} : vector<8x128xf32> to vector<1x64xf32>
    %579 = vector.broadcast %577 : vector<16x1xf32> to vector<16x64xf32>
    %580 = vector.broadcast %578 : vector<1x64xf32> to vector<16x64xf32>
    %581 = arith.mulf %579, %580 : vector<16x64xf32>
    %582 = vector.extract_strided_slice %464 {offsets = [0, 6], sizes = [16, 1], strides = [1, 1]} : vector<16x8xf32> to vector<16x1xf32>
    %583 = vector.extract_strided_slice %460 {offsets = [6, 64], sizes = [1, 64], strides = [1, 1]} : vector<8x128xf32> to vector<1x64xf32>
    %584 = vector.broadcast %582 : vector<16x1xf32> to vector<16x64xf32>
    %585 = vector.broadcast %583 : vector<1x64xf32> to vector<16x64xf32>
    %586 = arith.mulf %584, %585 : vector<16x64xf32>
    %587 = tpu.concatenate %581, %586 in 1 : vector<16x64xf32>, vector<16x64xf32> -> vector<16x128xf32>
    %588 = vector.extract_strided_slice %466 {offsets = [0, 6], sizes = [16, 1], strides = [1, 1]} : vector<16x8xf32> to vector<16x1xf32>
    %589 = vector.shape_cast %588 : vector<16x1xf32> to vector<16x1xf32>
    %590 = vector.broadcast %589 : vector<16x1xf32> to vector<16x64xf32>
    %591 = vector.extract_strided_slice %468 {offsets = [0, 6], sizes = [16, 1], strides = [1, 1]} : vector<16x8xf32> to vector<16x1xf32>
    %592 = vector.shape_cast %591 : vector<16x1xf32> to vector<16x1xf32>
    %593 = vector.broadcast %592 : vector<16x1xf32> to vector<16x64xf32>
    %594 = tpu.concatenate %590, %593 in 1 : vector<16x64xf32>, vector<16x64xf32> -> vector<16x128xf32>
    %595 = vector.extract_strided_slice %462 {offsets = [0, 7], sizes = [16, 1], strides = [1, 1]} : vector<16x8xf32> to vector<16x1xf32>
    %596 = vector.extract_strided_slice %460 {offsets = [7, 0], sizes = [1, 64], strides = [1, 1]} : vector<8x128xf32> to vector<1x64xf32>
    %597 = vector.broadcast %595 : vector<16x1xf32> to vector<16x64xf32>
    %598 = vector.broadcast %596 : vector<1x64xf32> to vector<16x64xf32>
    %599 = arith.mulf %597, %598 : vector<16x64xf32>
    %600 = vector.extract_strided_slice %464 {offsets = [0, 7], sizes = [16, 1], strides = [1, 1]} : vector<16x8xf32> to vector<16x1xf32>
    %601 = vector.extract_strided_slice %460 {offsets = [7, 64], sizes = [1, 64], strides = [1, 1]} : vector<8x128xf32> to vector<1x64xf32>
    %602 = vector.broadcast %600 : vector<16x1xf32> to vector<16x64xf32>
    %603 = vector.broadcast %601 : vector<1x64xf32> to vector<16x64xf32>
    %604 = arith.mulf %602, %603 : vector<16x64xf32>
    %605 = tpu.concatenate %599, %604 in 1 : vector<16x64xf32>, vector<16x64xf32> -> vector<16x128xf32>
    %606 = vector.extract_strided_slice %466 {offsets = [0, 7], sizes = [16, 1], strides = [1, 1]} : vector<16x8xf32> to vector<16x1xf32>
    %607 = vector.shape_cast %606 : vector<16x1xf32> to vector<16x1xf32>
    %608 = vector.broadcast %607 : vector<16x1xf32> to vector<16x64xf32>
    %609 = vector.extract_strided_slice %468 {offsets = [0, 7], sizes = [16, 1], strides = [1, 1]} : vector<16x8xf32> to vector<16x1xf32>
    %610 = vector.shape_cast %609 : vector<16x1xf32> to vector<16x1xf32>
    %611 = vector.broadcast %610 : vector<16x1xf32> to vector<16x64xf32>
    %612 = tpu.concatenate %608, %611 in 1 : vector<16x64xf32>, vector<16x64xf32> -> vector<16x128xf32>
    %cst_114 = arith.constant 0.000000e+00 : f32
    %613 = vector.broadcast %cst_114 : f32 to vector<16x128xf32>
    %614 = vector.extract_strided_slice %459 {offsets = [0, 0, 0], sizes = [1, 16, 128], strides = [1, 1, 1]} : vector<8x16x128xf32> to vector<1x16x128xf32>
    %615 = vector.shape_cast %614 : vector<1x16x128xf32> to vector<16x128xf32>
    %616 = arith.mulf %615, %613 : vector<16x128xf32>
    %617 = arith.addf %616, %479 : vector<16x128xf32>
    %618 = arith.mulf %617, %486 : vector<16x128xf32>
    %cst_115 = arith.constant dense<0.000000e+00> : vector<128xf32>
    %619 = vector.multi_reduction <add>, %618, %cst_115 [0] : vector<16x128xf32> to vector<128xf32>
    %620 = vector.shape_cast %619 : vector<128xf32> to vector<1x128xf32>
    %621 = vector.extract_strided_slice %459 {offsets = [1, 0, 0], sizes = [1, 16, 128], strides = [1, 1, 1]} : vector<8x16x128xf32> to vector<1x16x128xf32>
    %622 = vector.shape_cast %621 : vector<1x16x128xf32> to vector<16x128xf32>
    %623 = arith.mulf %622, %617 : vector<16x128xf32>
    %624 = arith.addf %623, %497 : vector<16x128xf32>
    %625 = arith.mulf %624, %504 : vector<16x128xf32>
    %cst_116 = arith.constant dense<0.000000e+00> : vector<128xf32>
    %626 = vector.multi_reduction <add>, %625, %cst_116 [0] : vector<16x128xf32> to vector<128xf32>
    %627 = vector.shape_cast %626 : vector<128xf32> to vector<1x128xf32>
    %628 = vector.extract_strided_slice %459 {offsets = [2, 0, 0], sizes = [1, 16, 128], strides = [1, 1, 1]} : vector<8x16x128xf32> to vector<1x16x128xf32>
    %629 = vector.shape_cast %628 : vector<1x16x128xf32> to vector<16x128xf32>
    %630 = arith.mulf %629, %624 : vector<16x128xf32>
    %631 = arith.addf %630, %515 : vector<16x128xf32>
    %632 = arith.mulf %631, %522 : vector<16x128xf32>
    %cst_117 = arith.constant dense<0.000000e+00> : vector<128xf32>
    %633 = vector.multi_reduction <add>, %632, %cst_117 [0] : vector<16x128xf32> to vector<128xf32>
    %634 = vector.shape_cast %633 : vector<128xf32> to vector<1x128xf32>
    %635 = vector.extract_strided_slice %459 {offsets = [3, 0, 0], sizes = [1, 16, 128], strides = [1, 1, 1]} : vector<8x16x128xf32> to vector<1x16x128xf32>
    %636 = vector.shape_cast %635 : vector<1x16x128xf32> to vector<16x128xf32>
    %637 = arith.mulf %636, %631 : vector<16x128xf32>
    %638 = arith.addf %637, %533 : vector<16x128xf32>
    %639 = arith.mulf %638, %540 : vector<16x128xf32>
    %cst_118 = arith.constant dense<0.000000e+00> : vector<128xf32>
    %640 = vector.multi_reduction <add>, %639, %cst_118 [0] : vector<16x128xf32> to vector<128xf32>
    %641 = vector.shape_cast %640 : vector<128xf32> to vector<1x128xf32>
    %642 = vector.extract_strided_slice %459 {offsets = [4, 0, 0], sizes = [1, 16, 128], strides = [1, 1, 1]} : vector<8x16x128xf32> to vector<1x16x128xf32>
    %643 = vector.shape_cast %642 : vector<1x16x128xf32> to vector<16x128xf32>
    %644 = arith.mulf %643, %638 : vector<16x128xf32>
    %645 = arith.addf %644, %551 : vector<16x128xf32>
    %646 = arith.mulf %645, %558 : vector<16x128xf32>
    %cst_119 = arith.constant dense<0.000000e+00> : vector<128xf32>
    %647 = vector.multi_reduction <add>, %646, %cst_119 [0] : vector<16x128xf32> to vector<128xf32>
    %648 = vector.shape_cast %647 : vector<128xf32> to vector<1x128xf32>
    %649 = vector.extract_strided_slice %459 {offsets = [5, 0, 0], sizes = [1, 16, 128], strides = [1, 1, 1]} : vector<8x16x128xf32> to vector<1x16x128xf32>
    %650 = vector.shape_cast %649 : vector<1x16x128xf32> to vector<16x128xf32>
    %651 = arith.mulf %650, %645 : vector<16x128xf32>
    %652 = arith.addf %651, %569 : vector<16x128xf32>
    %653 = arith.mulf %652, %576 : vector<16x128xf32>
    %cst_120 = arith.constant dense<0.000000e+00> : vector<128xf32>
    %654 = vector.multi_reduction <add>, %653, %cst_120 [0] : vector<16x128xf32> to vector<128xf32>
    %655 = vector.shape_cast %654 : vector<128xf32> to vector<1x128xf32>
    %656 = vector.extract_strided_slice %459 {offsets = [6, 0, 0], sizes = [1, 16, 128], strides = [1, 1, 1]} : vector<8x16x128xf32> to vector<1x16x128xf32>
    %657 = vector.shape_cast %656 : vector<1x16x128xf32> to vector<16x128xf32>
    %658 = arith.mulf %657, %652 : vector<16x128xf32>
    %659 = arith.addf %658, %587 : vector<16x128xf32>
    %660 = arith.mulf %659, %594 : vector<16x128xf32>
    %cst_121 = arith.constant dense<0.000000e+00> : vector<128xf32>
    %661 = vector.multi_reduction <add>, %660, %cst_121 [0] : vector<16x128xf32> to vector<128xf32>
    %662 = vector.shape_cast %661 : vector<128xf32> to vector<1x128xf32>
    %663 = vector.extract_strided_slice %459 {offsets = [7, 0, 0], sizes = [1, 16, 128], strides = [1, 1, 1]} : vector<8x16x128xf32> to vector<1x16x128xf32>
    %664 = vector.shape_cast %663 : vector<1x16x128xf32> to vector<16x128xf32>
    %665 = arith.mulf %664, %659 : vector<16x128xf32>
    %666 = arith.addf %665, %605 : vector<16x128xf32>
    %667 = arith.mulf %666, %612 : vector<16x128xf32>
    %cst_122 = arith.constant dense<0.000000e+00> : vector<128xf32>
    %668 = vector.multi_reduction <add>, %667, %cst_122 [0] : vector<16x128xf32> to vector<128xf32>
    %669 = vector.shape_cast %668 : vector<128xf32> to vector<1x128xf32>
    %670 = tpu.concatenate %620, %627, %634, %641, %648, %655, %662, %669 in 0 : vector<1x128xf32>, vector<1x128xf32>, vector<1x128xf32>, vector<1x128xf32>, vector<1x128xf32>, vector<1x128xf32>, vector<1x128xf32>, vector<1x128xf32> -> vector<8x128xf32>
    %c1_123 = arith.constant 1 : index
    %c0_124 = arith.constant 0 : index
    %c0_125 = arith.constant 0 : index
    %671 = vector.load %arg11[%c1_123, %c0_124, %c0_125] : memref<2x1x128xf32, #tpu.memory_space<vmem>>, vector<1x1x128xf32>
    %672 = vector.shape_cast %671 : vector<1x1x128xf32> to vector<1x128xf32>
    %673 = vector.broadcast %672 : vector<1x128xf32> to vector<8x128xf32>
    %674 = arith.mulf %434, %673 : vector<8x128xf32>
    %675 = arith.addf %670, %674 : vector<8x128xf32>
    %676 = vector.extract_strided_slice %675 {offsets = [0, 0], sizes = [8, 64], strides = [1, 1]} : vector<8x128xf32> to vector<8x64xf32>
    %677 = vector.extract_strided_slice %675 {offsets = [0, 64], sizes = [8, 64], strides = [1, 1]} : vector<8x128xf32> to vector<8x64xf32>
    %678 = tpu.concatenate %676, %677 in 0 : vector<8x64xf32>, vector<8x64xf32> -> vector<16x64xf32>
    %679 = math.absf %383 : vector<16x64xf32>
    %cst_126 = arith.constant 0.000000e+00 : f32
    %680 = vector.broadcast %cst_126 : f32 to vector<16x64xf32>
    %681 = arith.subf %680, %679 : vector<16x64xf32>
    %682 = math.exp %681 : vector<16x64xf32>
    %cst_127 = arith.constant 0.000000e+00 : f32
    %683 = vector.broadcast %cst_127 : f32 to vector<16x64xf32>
    %684 = arith.cmpf oge, %383, %683 : vector<16x64xf32>
    %cst_128 = arith.constant 1.000000e+00 : f32
    %685 = vector.broadcast %cst_128 : f32 to vector<16x64xf32>
    %686 = arith.select %684, %685, %682 : vector<16x64xi1>, vector<16x64xf32>
    %cst_129 = arith.constant 1.000000e+00 : f32
    %687 = vector.broadcast %cst_129 : f32 to vector<16x64xf32>
    %688 = arith.addf %687, %682 : vector<16x64xf32>
    %689 = arith.divf %686, %688 : vector<16x64xf32>
    %690 = arith.mulf %383, %689 : vector<16x64xf32>
    %691 = arith.mulf %678, %690 : vector<16x64xf32>
    %c1_130 = arith.constant 1 : index
    %c0_131 = arith.constant 0 : index
    %c0_132 = arith.constant 0 : index
    %692 = vector.load %arg12[%c1_130, %c0_131, %c0_132] : memref<2x64x32xf32, #tpu.memory_space<vmem>>, vector<1x64x32xf32>
    %693 = vector.shape_cast %692 : vector<1x64x32xf32> to vector<64x32xf32>
    %cst_133 = arith.constant dense<0.000000e+00> : vector<16x32xf32>
    %694 = tpu.matmul %691, %693, %cst_133 {dimension_numbers = #tpu.dot_dimension_numbers<[1], [0], [0], [1], [0, 0, 1, 1], [], []>} : vector<16x64xf32>, vector<64x32xf32>, vector<16x32xf32> -> vector<16x32xf32>
    %695 = arith.addf %694, %353 : vector<16x32xf32>
    %c0_134 = arith.constant 0 : index
    %c0_135 = arith.constant 0 : index
    %696 = vector.load %arg13[%c0_134, %c0_135] : memref<1x32xf32, #tpu.memory_space<vmem>>, vector<1x32xf32>
    %c0_136 = arith.constant 0 : index
    %c0_137 = arith.constant 0 : index
    %697 = vector.load %arg14[%c0_136, %c0_137] : memref<1x32xf32, #tpu.memory_space<vmem>>, vector<1x32xf32>
    %cst_138 = arith.constant dense<0.000000e+00> : vector<16xf32>
    %698 = vector.multi_reduction <add>, %695, %cst_138 [1] : vector<16x32xf32> to vector<16xf32>
    %699 = vector.shape_cast %698 : vector<16xf32> to vector<16x1xf32>
    %cst_139 = arith.constant 3.200000e+01 : f32
    %700 = vector.broadcast %cst_139 : f32 to vector<16x1xf32>
    %701 = arith.divf %699, %700 : vector<16x1xf32>
    %702 = vector.broadcast %701 : vector<16x1xf32> to vector<16x32xf32>
    %703 = arith.subf %695, %702 : vector<16x32xf32>
    %704 = arith.mulf %703, %703 : vector<16x32xf32>
    %cst_140 = arith.constant dense<0.000000e+00> : vector<16xf32>
    %705 = vector.multi_reduction <add>, %704, %cst_140 [1] : vector<16x32xf32> to vector<16xf32>
    %706 = vector.shape_cast %705 : vector<16xf32> to vector<16x1xf32>
    %cst_141 = arith.constant 3.200000e+01 : f32
    %707 = vector.broadcast %cst_141 : f32 to vector<16x1xf32>
    %708 = arith.divf %706, %707 : vector<16x1xf32>
    %709 = vector.broadcast %701 : vector<16x1xf32> to vector<16x32xf32>
    %710 = arith.subf %695, %709 : vector<16x32xf32>
    %cst_142 = arith.constant 9.99999974E-6 : f32
    %711 = vector.broadcast %cst_142 : f32 to vector<16x1xf32>
    %712 = arith.addf %708, %711 : vector<16x1xf32>
    %713 = math.rsqrt %712 : vector<16x1xf32>
    %714 = vector.broadcast %713 : vector<16x1xf32> to vector<16x32xf32>
    %715 = arith.mulf %710, %714 : vector<16x32xf32>
    %716 = vector.broadcast %696 : vector<1x32xf32> to vector<16x32xf32>
    %717 = arith.mulf %715, %716 : vector<16x32xf32>
    %718 = vector.broadcast %697 : vector<1x32xf32> to vector<16x32xf32>
    %719 = arith.addf %717, %718 : vector<16x32xf32>
    %720 = vector.shape_cast %719 : vector<16x32xf32> to vector<2x8x32xf32>
    %721 = vector.extract_strided_slice %720 {offsets = [0, 0, 0], sizes = [2, 1, 32], strides = [1, 1, 1]} : vector<2x8x32xf32> to vector<2x1x32xf32>
    %722 = vector.shape_cast %721 : vector<2x1x32xf32> to vector<2x32xf32>
    %723 = vector.extract_strided_slice %720 {offsets = [0, 1, 0], sizes = [2, 1, 32], strides = [1, 1, 1]} : vector<2x8x32xf32> to vector<2x1x32xf32>
    %724 = vector.shape_cast %723 : vector<2x1x32xf32> to vector<2x32xf32>
    %725 = vector.extract_strided_slice %720 {offsets = [0, 2, 0], sizes = [2, 1, 32], strides = [1, 1, 1]} : vector<2x8x32xf32> to vector<2x1x32xf32>
    %726 = vector.shape_cast %725 : vector<2x1x32xf32> to vector<2x32xf32>
    %727 = vector.extract_strided_slice %720 {offsets = [0, 3, 0], sizes = [2, 1, 32], strides = [1, 1, 1]} : vector<2x8x32xf32> to vector<2x1x32xf32>
    %728 = vector.shape_cast %727 : vector<2x1x32xf32> to vector<2x32xf32>
    %729 = vector.extract_strided_slice %720 {offsets = [0, 4, 0], sizes = [2, 1, 32], strides = [1, 1, 1]} : vector<2x8x32xf32> to vector<2x1x32xf32>
    %730 = vector.shape_cast %729 : vector<2x1x32xf32> to vector<2x32xf32>
    %731 = vector.extract_strided_slice %720 {offsets = [0, 5, 0], sizes = [2, 1, 32], strides = [1, 1, 1]} : vector<2x8x32xf32> to vector<2x1x32xf32>
    %732 = vector.shape_cast %731 : vector<2x1x32xf32> to vector<2x32xf32>
    %733 = vector.extract_strided_slice %720 {offsets = [0, 6, 0], sizes = [2, 1, 32], strides = [1, 1, 1]} : vector<2x8x32xf32> to vector<2x1x32xf32>
    %734 = vector.shape_cast %733 : vector<2x1x32xf32> to vector<2x32xf32>
    %735 = vector.extract_strided_slice %720 {offsets = [0, 7, 0], sizes = [2, 1, 32], strides = [1, 1, 1]} : vector<2x8x32xf32> to vector<2x1x32xf32>
    %736 = vector.shape_cast %735 : vector<2x1x32xf32> to vector<2x32xf32>
    %737 = tpu.concatenate %722, %724, %726, %728, %730, %732, %734, %736 in 1 : vector<2x32xf32>, vector<2x32xf32>, vector<2x32xf32>, vector<2x32xf32>, vector<2x32xf32>, vector<2x32xf32>, vector<2x32xf32>, vector<2x32xf32> -> vector<2x256xf32>
    %c0_143 = arith.constant 0 : index
    %c0_144 = arith.constant 0 : index
    %738 = vector.load %arg15[%c0_143, %c0_144] : memref<2x256xf32, #tpu.memory_space<vmem>>, vector<2x256xf32>
    tpu.vector_store %arg15[%c0_143, %c0_144], %737 {strides = array<i32>} : memref<2x256xf32, #tpu.memory_space<vmem>>, vector<2x256xf32>,
    return
  }
  func.func @transform_0(%arg0: i32) -> (i32, i32) {
    %c0_i32 = arith.constant 0 : i32
    %c0_i32_0 = arith.constant 0 : i32
    %c0_i32_1 = arith.constant 0 : i32
    return %c0_i32, %c0_i32_0 : i32, i32
  }
  func.func @transform_1(%arg0: i32) -> (i32, i32) {
    %c0_i32 = arith.constant 0 : i32
    %c0_i32_0 = arith.constant 0 : i32
    %c0_i32_1 = arith.constant 0 : i32
    return %c0_i32, %c0_i32_0 : i32, i32
  }
  func.func @transform_2(%arg0: i32) -> (i32, i32, i32) {
    %c0_i32 = arith.constant 0 : i32
    %c0_i32_0 = arith.constant 0 : i32
    %c0_i32_1 = arith.constant 0 : i32
    %c0_i32_2 = arith.constant 0 : i32
    return %c0_i32, %c0_i32_0, %c0_i32_1 : i32, i32, i32
  }
  func.func @transform_3(%arg0: i32) -> (i32, i32, i32) {
    %c0_i32 = arith.constant 0 : i32
    %c0_i32_0 = arith.constant 0 : i32
    %c0_i32_1 = arith.constant 0 : i32
    %c0_i32_2 = arith.constant 0 : i32
    return %c0_i32, %c0_i32_0, %c0_i32_1 : i32, i32, i32
  }
  func.func @transform_4(%arg0: i32) -> (i32, i32, i32) {
    %c0_i32 = arith.constant 0 : i32
    %c0_i32_0 = arith.constant 0 : i32
    %c0_i32_1 = arith.constant 0 : i32
    %c0_i32_2 = arith.constant 0 : i32
    return %c0_i32, %c0_i32_0, %c0_i32_1 : i32, i32, i32
  }
  func.func @transform_5(%arg0: i32) -> (i32, i32, i32) {
    %c0_i32 = arith.constant 0 : i32
    %c0_i32_0 = arith.constant 0 : i32
    %c0_i32_1 = arith.constant 0 : i32
    %c0_i32_2 = arith.constant 0 : i32
    return %c0_i32, %c0_i32_0, %c0_i32_1 : i32, i32, i32
  }
  func.func @transform_6(%arg0: i32) -> (i32, i32, i32) {
    %c0_i32 = arith.constant 0 : i32
    %c0_i32_0 = arith.constant 0 : i32
    %c0_i32_1 = arith.constant 0 : i32
    %c0_i32_2 = arith.constant 0 : i32
    return %c0_i32, %c0_i32_0, %c0_i32_1 : i32, i32, i32
  }
  func.func @transform_7(%arg0: i32) -> (i32, i32, i32) {
    %c0_i32 = arith.constant 0 : i32
    %c0_i32_0 = arith.constant 0 : i32
    %c0_i32_1 = arith.constant 0 : i32
    %c0_i32_2 = arith.constant 0 : i32
    return %c0_i32, %c0_i32_0, %c0_i32_1 : i32, i32, i32
  }
  func.func @transform_8(%arg0: i32) -> (i32, i32, i32) {
    %c0_i32 = arith.constant 0 : i32
    %c0_i32_0 = arith.constant 0 : i32
    %c0_i32_1 = arith.constant 0 : i32
    %c0_i32_2 = arith.constant 0 : i32
    return %c0_i32, %c0_i32_0, %c0_i32_1 : i32, i32, i32
  }
  func.func @transform_9(%arg0: i32) -> (i32, i32, i32) {
    %c0_i32 = arith.constant 0 : i32
    %c0_i32_0 = arith.constant 0 : i32
    %c0_i32_1 = arith.constant 0 : i32
    %c0_i32_2 = arith.constant 0 : i32
    return %c0_i32, %c0_i32_0, %c0_i32_1 : i32, i32, i32
  }
  func.func @transform_10(%arg0: i32) -> (i32, i32, i32) {
    %c0_i32 = arith.constant 0 : i32
    %c0_i32_0 = arith.constant 0 : i32
    %c0_i32_1 = arith.constant 0 : i32
    %c0_i32_2 = arith.constant 0 : i32
    return %c0_i32, %c0_i32_0, %c0_i32_1 : i32, i32, i32
  }
  func.func @transform_11(%arg0: i32) -> (i32, i32, i32) {
    %c0_i32 = arith.constant 0 : i32
    %c0_i32_0 = arith.constant 0 : i32
    %c0_i32_1 = arith.constant 0 : i32
    %c0_i32_2 = arith.constant 0 : i32
    return %c0_i32, %c0_i32_0, %c0_i32_1 : i32, i32, i32
  }
  func.func @transform_12(%arg0: i32) -> (i32, i32) {
    %c0_i32 = arith.constant 0 : i32
    %c0_i32_0 = arith.constant 0 : i32
    %c0_i32_1 = arith.constant 0 : i32
    return %c0_i32, %c0_i32_0 : i32, i32
  }
  func.func @transform_13(%arg0: i32) -> (i32, i32) {
    %c0_i32 = arith.constant 0 : i32
    %c0_i32_0 = arith.constant 0 : i32
    %c0_i32_1 = arith.constant 0 : i32
    return %c0_i32, %c0_i32_0 : i32, i32
  }
  func.func @transform_14(%arg0: i32) -> (i32, i32) {
    %c0_i32 = arith.constant 0 : i32
    %c0_i32_0 = arith.constant 0 : i32
    %c0_i32_1 = arith.constant 0 : i32
    return %c0_i32, %c0_i32_0 : i32, i32
  }
}

</mosaic_0001>

<bundles_post_ra>
// kernel: mixer_model_forward.1
= control target key start
LH: loop header
LB: loop body
LE: loop exit
PB: predicated region body
PF: predicated region fallthrough
CT: control target
= control target key end

     0   :  { %19 = vsyncpa [#allocation3], 0  ;;  %s2564_s16 = smov [#allocation2]   ;;  %s2565_s18 = smov 256   ;;  %s3757_s0 = inlined_call_operand.vmem [shape: s32[16,1], index: 0, kind: input, shape index: {}]   ;;  %s3758_s1 = inlined_call_operand.vmem [shape: f32[80,32], index: 1, kind: input, shape index: {}]   ;;  %s3759_s2 = inlined_call_operand.vmem [shape: f32[2,1,32], index: 2, kind: input, shape index: {}]   ;;  %s3760_s3 = inlined_call_operand.vmem [shape: f32[2,1,32], index: 3, kind: input, shape index: {}]   ;;  %s3761_s4 = inlined_call_operand.vmem [shape: f32[2,32,128], index: 4, kind: input, shape index: {}]   ;;  %s3762_s5 = inlined_call_operand.vmem [shape: f32[2,4,128], index: 5, kind: input, shape index: {}]   ;;  %s3763_s6 = inlined_call_operand.vmem [shape: f32[2,1,128], index: 6, kind: input, shape index: {}]   ;;  %s3764_s7 = inlined_call_operand.hbm [shape: f32[2,128,256], index: 7, kind: input, shape index: {}]   ;;  %s3765_s8 = inlined_call_operand.vmem [shape: f32[2,1,128], index: 8, kind: input, shape index: {}]   ;;  %s3766_s9 = inlined_call_operand.vmem [shape: f32[2,16,128], index: 9, kind: input, shape index: {}]   ;;  %s3767_s10 = inlined_call_operand.vmem [shape: f32[2,1,128], index: 10, kind: input, shape index: {}]   ;;  %s3768_s11 = inlined_call_operand.vmem [shape: f32[2,64,32], index: 11, kind: input, shape index: {}]   ;;  %s3769_s12 = inlined_call_operand.vmem [shape: f32[1,32], index: 12, kind: input, shape index: {}]   ;;  %s3770_s13 = inlined_call_operand.vmem [shape: f32[1,32], index: 13, kind: input, shape index: {}]   ;;  %s3771_s14 = inlined_call_operand.vmem [shape: f32[2,256], index: 14, kind: output, shape index: {}]  }
   0x1   :  { %s38_s15 = sshll.u32 %s3764_s7, 4  ;;  %s40_s17 = sshll.u32 %s2564_s16, 4  ;;  %s39_s15 = int_to_ptr.hbm [resolvable:$true] %s38_s15  ;;  %s41_s17 = int_to_ptr.vmem [resolvable:$true] %s40_s17 }
   0x2   :  { %s2566_s19 = smov 16  }
   0x3   :  { %46 = dma.hbm_to_vmem [thread:$0]  %s39_s15, 8192, %s41_s17, [#allocation3], %s2565_s18, %s2565_s18, %s2566_s19  }
   0x4   :  { %2562 = dma.done.wait [#allocation3], 8192  }
   0x5   :  { %2563 = vsyncadd [#allocation3], 4294959104  ;;  %v3785_v0 = vmov 0   ;;  %v65_v1 = vld [vmem:[%s3757_s0] sm:$0xff]  ;;  %v90_v2 = vld [vmem:[%s3758_s1 + $0x48] sm:$0xff]  ;;  %v63_v13 = vlaneseq  ;;  %vm91_vm0 = vcmask 654336  }
   0x6   :  { %2299 = vset.pattern.permute.xlu0 %v3785_v0  ;;  %2300 = vset.pattern.permute.xlu1 %v3785_v0  ;;  %v89_v3 = vld [vmem:[%s3758_s1 + $0x40] sm:$0xff]  ;;  %v88_v4 = vld [vmem:[%s3758_s1 + $0x38] sm:$0xff]  ;;  %v87_v5 = vld [vmem:[%s3758_s1 + $0x30] sm:$0xff]  ;;  %v2568_v16 = vmov 0.0   ;;  %vm127_vm3 = vcmask 261120   ;;  %v2569_v26 = vmov 32.0  }
   0x7   :  { %70 = vperm.xlu0 %2299, %v65_v1   ;;  %104 = vmatpush.msra.mxu0 %v90_v2  ;;  %v66_v6 = vld [vmem:[%s3757_s0 + $0x8] sm:$0xff]  ;;  %v85_v8 = vld [vmem:[%s3758_s1 + $0x20] sm:$0xff]  ;;  %v84_v9 = vld [vmem:[%s3758_s1 + $0x18] sm:$0xff]  ;;  %v68_v14 = vand.u32 127, %v63_v13  ;;  %s2570_s20 = smov 64   ;;  %vm226_vm11 = vcmask 523264  }
   0x8   :  { %v86_v7 = vld [vmem:[%s3758_s1 + $0x28] sm:$0xff]  ;;  %v83_v10 = vld [vmem:[%s3758_s1 + $0x10] sm:$0xff]  ;;  %v81_v12 = vld [vmem:[%s3758_s1] sm:$0xff]  ;;  %s2571_s23 = smov 112   ;;  %s2572_s24 = smov 96  }
   0x9   :  { %105 = vmatpush.msra.mxu0 %v89_v3  ;;  %v82_v11 = vld [vmem:[%s3758_s1 + $0x8] sm:$0xff]  ;;  %v192_v43 = vld [vmem:[%s3761_s4 + $0x18] sm:$0xff]  ;;  %v191_v44 = vld [vmem:[%s3761_s4 + $0x10] sm:$0xff]  ;;  %s2573_s1 = smov 80  }
   0xa   :  { %211 = vmatpush.msra.mxu1 %v192_v43  ;;  %v190_v45 = vld [vmem:[%s3761_s4 + $0x8] sm:$0xff]  ;;  %v189_v46 = vld [vmem:[%s3761_s4] sm:$0xff] }
   0xb   :  { %106 = vmatpush.msra.mxu0 %v88_v4  ;;  %v2412_v61 = vld [vmem:[%s3759_s2] ss:$0 sm:$0xff]  ;;  %v286_v43 = vld [vmem:[#allocation2 + $0x48] sm:$0xff] }
   0xc   :  { %212 = vmatpush.msra.mxu1 %v191_v44  ;;  %v2413_v2 = vld [vmem:[%s3760_s3] ss:$0 sm:$0xff] }
   0xd   :  { %107 = vmatpush.msra.mxu0 %v87_v5 }
   0xe   :  { %213 = vmatpush.msra.mxu1 %v190_v45 }
   0xf   :  { %73 = vperm.xlu0 %2299, %v66_v6   ;;  %108 = vmatpush.msra.mxu0 %v86_v7 }
  0x10   :  { %214 = vmatpush.msra.mxu1 %v189_v46 }
  0x11   :  { %109 = vmatpush.msra.mxu0 %v85_v8 }
  0x13   :  { %110 = vmatpush.msra.mxu0 %v84_v9 }
  0x15   :  { %111 = vmatpush.msra.mxu0 %v83_v10 }
  0x17   :  { %112 = vmatpush.msra.mxu0 %v82_v11 }
  0x19   :  { %113 = vmatpush.msra.mxu0 %v81_v12 }
  0x79   :  { %v71_v15 = vpop.permute.xlu0 %70 }
  0x7a   :  { %vm75_vm1 = vcmp.eq.s32.totalorder %v71_v15, %v68_v14  ;;  %v307_v15 = vld [vmem:[#allocation2 + $0xf0] sm:$0xff] }
  0x7b   :  { %v2249_v17 = vsel %vm75_vm1, 1.0, %v2568_v16  ;;  %309 = vmatpush.msra.mxu2 %v307_v15 }
  0x7c   :  { %2251 = vmatmul.msk.f32.vlgmr.msra.gmra.mxu0 %vm91_vm0, %v2249_v17  ;;  %v305_v17 = vld [vmem:[#allocation2 + $0xe0] sm:$0xff] }
  0x7d   :  { %310 = vmatpush.msra.mxu2 %v305_v17 }
  0x81   :  { %v74_v18 = vpop.permute.xlu0 %73 }
  0x82   :  { %vm76_vm2 = vcmp.eq.s32.totalorder %v74_v18, %v68_v14  ;;  %v306_v18 = vld [vmem:[#allocation2 + $0xe8] sm:$0xff] }
  0x83   :  { %v2250_v19 = vsel %vm76_vm2, 1.0, %v2568_v16  ;;  %v308_v16 = vld [vmem:[#allocation2 + $0xf8] sm:$0xff] }
  0x84   :  { %2252 = vmatmul.msk.f32.gmra.mxu0 %vm91_vm0, %v2250_v19  ;;  %329 = vmatpush.msra.mxu3 %v308_v16  ;;  %v303_v19 = vld [vmem:[#allocation2 + $0xd0] sm:$0xff] }
  0x85   :  { %311 = vmatpush.msra.mxu2 %v303_v19 }
  0x86   :  { %330 = vmatpush.msra.mxu3 %v306_v18 }
  0xf9   :  { %v115_v20 = vpop.f32.mrf.mxu0 }
  0xfa   :  { %2424 = vtanh.f32 %v115_v20  ;;  %v304_v20 = vld [vmem:[#allocation2 + $0xd8] sm:$0xff] }
  0xfb   :  { %331 = vmatpush.msra.mxu3 %v304_v20 }
 0x100   :  { %v2699_v21 = vpop.eup %2424 }
 0x101   :  { %v118_v22 = vpop.f32.mrf.mxu0  ;;  %v128_v23 = vsel %vm127_vm3, %v2699_v21, 0.0 }
 0x102   :  { %2426 = vtanh.f32 %v118_v22  ;;  %129 = vadd.xlane.f32.xlu1 %v128_v23  ;;  %v301_v22 = vld [vmem:[#allocation2 + $0xc0] sm:$0xff]  ;;  %v302_v23 = vld [vmem:[#allocation2 + $0xc8] sm:$0xff] }
 0x103   :  { %2428 = vrcp.f32 %v2569_v26  ;;  %v300_v26 = vld [vmem:[#allocation2 + $0xb8] sm:$0xff]  ;;  %312 = vmatpush.msra.mxu2 %v301_v22  ;;  %332 = vmatpush.msra.mxu3 %v302_v23 }
 0x105   :  { %333 = vmatpush.msra.mxu3 %v300_v26 }
 0x108   :  { %v2703_v24 = vpop.eup %2426 }
 0x109   :  { %v131_v25 = vsel %vm127_vm3, %v2703_v24, 0.0  ;;  %v2429_v27 = vpop.eup %2428 }
 0x10a   :  { %132 = vadd.xlane.f32.xlu1 %v131_v25  ;;  %v135_v28 = vmul.f32 32.0, %v2429_v27  ;;  %vm139_vm4 = vweird.f32 %v2429_v27  ;;  %v299_v25 = vld [vmem:[#allocation2 + $0xb0] sm:$0xff] }
 0x10b   :  { %313 = vmatpush.msra.mxu2 %v299_v25 }
 0x10c   :  { %v136_v29 = vsub.f32 1.0, %v135_v28  ;;  %v298_v28 = vld [vmem:[#allocation2 + $0xa8] sm:$0xff] }
 0x10d   :  { %334 = vmatpush.msra.mxu3 %v298_v28 }
 0x10e   :  { %v137_v30 = vmul.f32 %v2429_v27, %v136_v29  ;;  %v295_v29 = vld [vmem:[#allocation2 + $0x90] sm:$0xff] }
 0x110   :  { %v138_v31 = vadd.f32 %v2429_v27, %v137_v30  ;;  %v296_v30 = vld [vmem:[#allocation2 + $0x98] sm:$0xff] }
 0x111   :  { %335 = vmatpush.msra.mxu3 %v296_v30 }
 0x112   :  { %v2707_v32 = vsel %vm139_vm4, %v2429_v27, %v138_v31  ;;  %v297_v27 = vld [vmem:[#allocation2 + $0xa0] sm:$0xff] }
 0x113   :  { %3797 = vst [vmem:[#allocation5_spill] sm:$0xff] %v2707_v32  ;;  %314 = vmatpush.msra.mxu2 %v297_v27  ;;  %v293_v31 = vld [vmem:[#allocation2 + $0x80] sm:$0xff] }
 0x115   :  { %315 = vmatpush.msra.mxu2 %v295_v29 }
 0x117   :  { %316 = vmatpush.msra.mxu2 %v293_v31 }
 0x175   :  { %v130_v33 = vpop.xlane.xlu1 %129 }
 0x176   :  { %v141_v34 = vmul.f32 %v2707_v32, %v130_v33  ;;  %v294_v33 = vld [vmem:[#allocation2 + $0x88] sm:$0xff] }
 0x177   :  { %336 = vmatpush.msra.mxu3 %v294_v33 }
 0x178   :  { %v143_v35 = vsub.f32 %v2699_v21, %v141_v34  ;;  %v291_v34 = vld [vmem:[#allocation2 + $0x70] sm:$0xff] }
 0x179   :  { %317 = vmatpush.msra.mxu2 %v291_v34  ;;  %v3779_v34 = vmov 4  }
 0x17a   :  { %v145_v36 = vmul.f32 %v143_v35, %v143_v35  ;;  %2304 = vset.pattern.permute.xlu0 %v3779_v34 }
 0x17c   :  { %v147_v37 = vsel %vm127_vm3, %v145_v36, 0.0  ;;  %v289_v36 = vld [vmem:[#allocation2 + $0x60] sm:$0xff] }
 0x17d   :  { %148 = vadd.xlane.f32.xlu2 %v147_v37  ;;  %v133_v38 = vpop.xlane.xlu1 %132  ;;  %v290_v37 = vld [vmem:[#allocation2 + $0x68] sm:$0xff]  ;;  %318 = vmatpush.msra.mxu2 %v289_v36 }
 0x17e   :  { %v142_v39 = vmul.f32 %v2707_v32, %v133_v38  ;;  %v2744_v38 = vshrl.u32 %v63_v13, 7 }
 0x180   :  { %v144_v40 = vsub.f32 %v2703_v24, %v142_v39  ;;  %v287_v39 = vld [vmem:[#allocation2 + $0x50] sm:$0xff]  ;;  %vm232_vm12 = vcmp.ge.s32.totalorder %v2744_v38, 1  ;;  %vm238_vm13 = vcmp.ge.s32.totalorder %v2744_v38, 2  ;;  %vm244_vm14 = vcmp.ge.s32.totalorder %v2744_v38, 3 }
 0x181   :  { %319 = vmatpush.msra.mxu2 %v287_v39  ;;  %v3783_v39 = vmov 3  }
 0x182   :  { %v146_v41 = vmul.f32 %v144_v40, %v144_v40 }
 0x184   :  { %v150_v42 = vsel %vm127_vm3, %v146_v41, 0.0  ;;  %v228_v41 = vld [vmem:[%s3762_s5] sm:$0xf] }
 0x185   :  { %151 = vadd.xlane.f32.xlu2 %v150_v42  ;;  %v285_v42 = vld [vmem:[#allocation2 + $0x40] sm:$0xff]  ;;  %v229_v13 = vperm.slane %v228_v41, 3  ;;  %v234_v45 = vperm.slane %v228_v41, 2 }
 0x186   :  { %320 = vmatpush.msra.mxu2 %v285_v42  ;;  %v3787_v42 = vmov 7  }
 0x1f0   :  { %v149_v47 = vpop.xlane.xlu2 %148 }
 0x1f1   :  { %v153_v48 = vmul.f32 %v149_v47, %v2707_v32  ;;  %v283_v47 = vld [vmem:[#allocation2 + $0x30] sm:$0xff] }
 0x1f2   :  { %321 = vmatpush.msra.mxu2 %v283_v47 }
 0x1f3   :  { %v155_v49 = vadd.f32 1e-05, %v153_v48  ;;  %v284_v48 = vld [vmem:[#allocation2 + $0x38] sm:$0xff] }
 0x1f5   :  { %2430 = vrsqrt.f32 %v155_v49  ;;  %vm163_vm6 = vweird.f32 %v155_v49 }
 0x1f8   :  { %v152_v50 = vpop.xlane.xlu2 %151 }
 0x1f9   :  { %v154_v51 = vmul.f32 %v152_v50, %v2707_v32 }
 0x1fb   :  { %v2431_v52 = vpop.eup %2430  ;;  %v156_v53 = vadd.f32 1e-05, %v154_v51 }
 0x1fc   :  { %v158_v54 = vmul.f32 %v2431_v52, %v155_v49  ;;  %vm164_vm5 = vweird.f32 %v2431_v52 }
 0x1fd   :  { %2432 = vrsqrt.f32 %v156_v53  ;;  %vm165_vm7 = vmor %vm163_vm6, %vm164_vm5  ;;  %vm173_vm9 = vweird.f32 %v156_v53 }
 0x1fe   :  { %v159_v55 = vmul.f32 %v2431_v52, %v158_v54  ;;  %v282_v54 = vld [vmem:[#allocation2 + $0x28] sm:$0xff] }
 0x200   :  { %v160_v56 = vmul.f32 0.5, %v159_v55 }
 0x202   :  { %v161_v57 = vsub.f32 1.5, %v160_v56 }
 0x203   :  { %v2433_v58 = vpop.eup %2432 }
 0x204   :  { %v162_v59 = vmul.f32 %v2431_v52, %v161_v57  ;;  %v168_v60 = vmul.f32 %v2433_v58, %v156_v53  ;;  %vm174_vm8 = vweird.f32 %v2433_v58  ;;  %v281_v53 = vld [vmem:[#allocation2 + $0x20] sm:$0xff]  ;;  %v246_v57 = vperm.slane %v228_v41, 0 }
 0x205   :  { %vm175_vm10 = vmor %vm173_vm9, %vm174_vm8  ;;  %322 = vmatpush.msra.mxu2 %v281_v53 }
 0x206   :  { %v169_v62 = vmul.f32 %v2433_v58, %v168_v60  ;;  %v166_v63 = vsel %vm165_vm7, %v2431_v52, %v162_v59  ;;  %v240_v52 = vperm.slane %v228_v41, 1  ;;  %v279_v60 = vld [vmem:[#allocation2 + $0x10] sm:$0xff] }
 0x207   :  { %v177_v1 = vmul.f32 %v166_v63, %v143_v35  ;;  %v292_v35 = vld [vmem:[#allocation2 + $0x78] sm:$0xff]  ;;  %323 = vmatpush.msra.mxu2 %v279_v60 }
 0x208   :  { %v170_v3 = vmul.f32 0.5, %v169_v62  ;;  %337 = vmatpush.msra.mxu3 %v292_v35  ;;  %v3772_v35 = vmov 2  }
 0x209   :  { %v182_v4 = vmul.f32 %v2412_v61, %v177_v1 }
 0x20a   :  { %v171_v5 = vsub.f32 1.5, %v170_v3  ;;  %338 = vmatpush.msra.mxu3 %v290_v37  ;;  %v278_v3 = vld [vmem:[#allocation2 + $0x8] sm:$0xff]  ;;  %v3781_v37 = vmov 6  }
 0x20b   :  { %v187_v6 = vadd.f32 %v2413_v2, %v182_v4 }
 0x20c   :  { %v172_v7 = vmul.f32 %v2433_v58, %v171_v5 }
 0x20d   :  { %2253 = vmatmul.msk.f32.vlgmr.msra.gmra.mxu1 %vm127_vm3, %v187_v6  ;;  %v2414_v6 = vld [vmem:[%s3763_s6] ss:$0 sm:$0xff] }
 0x20e   :  { %v176_v8 = vsel %vm175_vm10, %v2433_v58, %v172_v7 }
 0x20f   :  { %v178_v9 = vmul.f32 %v176_v8, %v144_v40  ;;  %v288_v40 = vld [vmem:[#allocation2 + $0x58] sm:$0xff] }
 0x210   :  { %339 = vmatpush.msra.mxu3 %v288_v40  ;;  %v3775_v40 = vmov 1  }
 0x211   :  { %v183_v10 = vmul.f32 %v2412_v61, %v178_v9  ;;  %v280_v61 = vld [vmem:[#allocation2 + $0x18] sm:$0xff] }
 0x212   :  { %340 = vmatpush.msra.mxu3 %v286_v43  ;;  %v3777_v43 = vmov 5  }
 0x213   :  { %v188_v11 = vadd.f32 %v2413_v2, %v183_v10  ;;  %v277_v2 = vld [vmem:[#allocation2] sm:$0xff] }
 0x214   :  { %341 = vmatpush.msra.mxu3 %v284_v48  ;;  %324 = vmatpush.msra.mxu2 %v277_v2  ;;  %v2415_v2 = vld [vmem:[%s3765_s8] ss:$0 sm:$0xff] }
 0x215   :  { %2254 = vmatmul.msk.f32.gmra.mxu1 %vm127_vm3, %v188_v11 }
 0x216   :  { %342 = vmatpush.msra.mxu3 %v282_v54 }
 0x218   :  { %343 = vmatpush.msra.mxu3 %v280_v61 }
 0x21a   :  { %344 = vmatpush.msra.mxu3 %v278_v3 }
 0x28a   :  { %v2737_v12 = vpop.f32.mrf.mxu1 }
 0x28b   :  { %vm1047_vm10 = vcmp.ge.f32.partialorder %v2737_v12, 0.0 }
 0x292   :  { %v2739_v14 = vpop.f32.mrf.mxu1 }
 0x293   :  { %223 = vrot.lane.b32.xlu0 %v2739_v14, %s2570_s20 }
 0x305   :  { %v224_v44 = vpop.permute.xlu0 %223 }
 0x306   :  { %v227_v46 = vsel %vm226_vm11, %v2737_v12, %v224_v44 }
 0x307   :  { %v231_v49 = vrot.slane %v227_v46, 7  ;;  %v237_v50 = vrot.slane %v227_v46, 6  ;;  %v243_v51 = vrot.slane %v227_v46, 5  ;;  %v230_v58 = vmul.f32 %v229_v13, %v227_v46 }
 0x309   :  { %v233_v55 = vsel %vm232_vm12, %v231_v49, 0.0  ;;  %v239_v56 = vsel %vm238_vm13, %v237_v50, 0.0  ;;  %v245_v62 = vsel %vm244_vm14, %v243_v51, 0.0 }
 0x30a   :  { %v235_v59 = vmul.f32 %v234_v45, %v233_v55  ;;  %v241_v1 = vmul.f32 %v240_v52, %v239_v56  ;;  %v247_v5 = vmul.f32 %v246_v57, %v245_v62  ;;  %v1039_v62 = vand.u32 2147483647, %v2737_v12 }
 0x30c   :  { %v236_v63 = vadd.f32 %v235_v59, %v230_v58 }
 0x30e   :  { %v242_v4 = vadd.f32 %v241_v1, %v236_v63  ;;  %v1041_v63 = vsub.f32 0.0, %v1039_v62 }
 0x310   :  { %v248_v7 = vadd.f32 %v247_v5, %v242_v4  ;;  %v1043_v4 = vmul.f32 1.442695, %v1041_v63 }
 0x312   :  { %v253_v8 = vadd.f32 %v2414_v6, %v248_v7 }
 0x314   :  { %v254_v9 = vand.u32 2147483647, %v253_v8  ;;  %vm258_vm2 = vcmp.ge.f32.partialorder %v253_v8, 0.0 }
 0x316   :  { %v255_v10 = vsub.f32 0.0, %v254_v9 }
 0x318   :  { %v256_v11 = vmul.f32 1.442695, %v255_v10 }
 0x31a   :  { %2434 = vpow2.f32 %v256_v11 }
 0x320   :  { %v2435_v15 = vpop.eup %2434 }
 0x321   :  { %v260_v16 = vadd.f32 1.0, %v2435_v15  ;;  %v259_v28 = vsel %vm258_vm2, 1.0, %v2435_v15 }
 0x323   :  { %2436 = vrcp.f32 %v260_v16  ;;  %v272_v20 = vand.u32 2147483648, %v260_v16  ;;  %v270_v23 = vand.u32 2147483647, %v260_v16  ;;  %vm266_vm0 = vweird.f32 %v260_v16 }
 0x324   :  { %2438 = vpow2.f32 %v1043_v4 }
 0x325   :  { %v273_v26 = vor.u32 1.1754944e-38, %v272_v20  ;;  %vm271_vm4 = vcmp.eq.f32.partialorder %v270_v23, 8.507059e+37 }
 0x329   :  { %v2437_v17 = vpop.eup %2436 }
 0x32a   :  { %v262_v18 = vmul.f32 %v2437_v17, %v260_v16  ;;  %vm267_vm15 = vweird.f32 %v2437_v17 }
 0x32b   :  { %vm268_vm1 = vmor %vm266_vm0, %vm267_vm15 }
 0x32c   :  { %v263_v19 = vsub.f32 1.0, %v262_v18 }
 0x32e   :  { %v264_v22 = vmul.f32 %v2437_v17, %v263_v19 }
 0x330   :  { %v265_v25 = vadd.f32 %v2437_v17, %v264_v22 }
 0x332   :  { %v269_v27 = vsel %vm268_vm1, %v2437_v17, %v265_v25 }
 0x333   :  { %v274_v29 = vsel %vm271_vm4, %v273_v26, %v269_v27  ;;  %vm1048_vm4 = vcmp.ge.f32.partialorder %v2739_v14, 0.0 }
 0x334   :  { %v275_v30 = vmul.f32 %v274_v29, %v259_v28 }
 0x336   :  { %v2763_v31 = vmul.f32 %v275_v30, %v253_v8  ;;  %v2439_v8 = vpop.eup %2438 }
 0x337   :  { %v1051_v11 = vadd.f32 1.0, %v2439_v8  ;;  %v1049_v63 = vsel %vm1047_vm10, 1.0, %v2439_v8  ;;  %vm1025_vm10 = vcmask 1045504  }
 0x338   :  { %325 = vmatmul.f32.vlgmr.msra.gmra.mxu2 %v2763_v31  ;;  %345 = vmatmul.f32.vlgmr.msra.gmra.mxu3 %v2763_v31 }
 0x339   :  { %v1064_v30 = vand.u32 2147483648, %v1051_v11  ;;  %vm1058_vm7 = vweird.f32 %v1051_v11 }
 0x3bb   :  { %v346_v33 = vpop.f32.mrf.mxu3  ;;  %v326_v3 = vpop.f32.mrf.mxu2 }
 0x3bc   :  { %437 = vxpose.xlu2.b32.start.end [1/1] (short) (narrow) %v346_v33, 16  ;;  %470 = vrot.lane.b32.xlu1 %v346_v33, %s2571_s23  ;;  %v353_v6 = vadd.f32 %v2415_v2, %v326_v3 }
 0x3be   :  { %v354_v7 = vmin.f32 %v353_v6, 20.0  ;;  %vm355_vm6 = vcmp.gt.f32.partialorder %v353_v6, 20.0 }
 0x3c0   :  { %v356_v9 = vmul.f32 1.442695, %v354_v7 }
 0x3c2   :  { %2440 = vpow2.f32 %v356_v9 }
 0x3c3   :  { %2442 = vrcp.f32 %v1051_v11 }
 0x3c4   :  { %505 = vrot.lane.b32.xlu1 %v346_v33, %s2572_s24 }
 0x3c8   :  { %v2441_v15 = vpop.eup %2440 }
 0x3c9   :  { %v2443_v17 = vpop.eup %2442  ;;  %v358_v18 = vadd.f32 1.0, %v2441_v15 }
 0x3ca   :  { %v1054_v20 = vmul.f32 %v2443_v17, %v1051_v11  ;;  %vm1059_vm5 = vweird.f32 %v2443_v17 }
 0x3cb   :  { %2444 = vlog2.f32 %v358_v18  ;;  %vm1060_vm8 = vmor %vm1058_vm7, %vm1059_vm5  ;;  %vm1015_vm5 = vcmask 1040384   ;;  %vm1019_vm7 = vcmask 1042432  }
 0x3cc   :  { %540 = vrot.lane.b32.xlu1 %v346_v33, %s2573_s1  ;;  %v1055_v23 = vsub.f32 1.0, %v1054_v20 }
 0x3ce   :  { %v1056_v26 = vmul.f32 %v2443_v17, %v1055_v23 }
 0x3d0   :  { %v1057_v29 = vadd.f32 %v2443_v17, %v1056_v26 }
 0x3d1   :  { %v2445_v25 = vpop.eup %2444 }
 0x3d2   :  { %v360_v27 = vmul.f32 0.6931472, %v2445_v25 }
 0x3d4   :  { %v2877_v33 = vsel %vm355_vm6, %v353_v6, %v360_v27  ;;  %vm1017_vm6 = vcmask 1041408  }
 0x3d5   :  { %v363_v62 = vrot.slane %v2877_v33, 1  ;;  %v364_v7 = vrot.slane %v2877_v33, 2  ;;  %v366_v25 = vrot.slane %v2877_v33, 4 }
 0x3d7   :  { %v2898_v6 = vperm.slane %v363_v62, 0  ;;  %v2906_v15 = vperm.slane %v364_v7, 0 }
 0x41e   :  { %2302 = vset.pattern.permute.xlu2 %v3772_v35 }
 0x42e   :  { %v471_v44 = vpop.permute.xlu1 %470 }
 0x436   :  { %v506_v13 = vpop.permute.xlu1 %505 }
 0x43e   :  { %v541_v45 = vpop.permute.xlu1 %540 }
 0x455   :  { %v453_v36 = vpop.trf.xlu2 }
 0x456   :  { %748 = vperm.xlu0 %2304, %v453_v36   ;;  %666 = vperm.xlu2 %2302, %v453_v36  }
 0x457   :  { %577 = vperm.xlu1 %2300, %v453_v36  }
 0x45d   :  { %v454_v41 = vpop.trf.xlu2 }
 0x45e   :  { %2306 = vset.pattern.permute.xlu0 %v3781_v37  ;;  %2303 = vset.pattern.permute.xlu2 %v3783_v39 }
 0x45f   :  { %2301 = vset.pattern.permute.xlu1 %v3775_v40  ;;  %830 = vperm.xlu0 %2306, %v453_v36  }
 0x460   :  { %707 = vperm.xlu2 %2303, %v453_v36   ;;  %625 = vperm.xlu1 %2301, %v453_v36  }
 0x467   :  { %2307 = vset.pattern.permute.xlu0 %v3787_v42 }
 0x468   :  { %2305 = vset.pattern.permute.xlu2 %v3777_v43  ;;  %629 = vperm.xlu1 %2301, %v454_v41  }
 0x469   :  { %871 = vperm.xlu0 %2307, %v453_v36   ;;  %789 = vperm.xlu2 %2305, %v453_v36   ;;  %v1062_v36 = vand.u32 2147483647, %v1051_v11 }
 0x46b   :  { %vm1063_vm9 = vcmp.eq.f32.partialorder %v1062_v36, 8.507059e+37 }
 0x470   :  { %2309 = vset.pattern.permute.xlu1 %v3772_v35 }
 0x471   :  { %2310 = vset.pattern.permute.xlu0 %v3783_v39  ;;  %2308 = vset.pattern.permute.xlu2 %v3785_v0 }
 0x472   :  { %670 = vperm.xlu1 %2309, %v454_v41   ;;  %711 = vperm.xlu0 %2310, %v454_v41  }
 0x473   :  { %582 = vperm.xlu2 %2308, %v454_v41  }
 0x47a   :  { %2314 = vset.pattern.permute.xlu1 %v3787_v42  ;;  %2312 = vset.pattern.permute.xlu0 %v3777_v43 }
 0x47b   :  { %2311 = vset.pattern.permute.xlu2 %v3779_v34  ;;  %875 = vperm.xlu1 %2314, %v454_v41  }
 0x47c   :  { %793 = vperm.xlu0 %2312, %v454_v41   ;;  %752 = vperm.xlu2 %2311, %v454_v41  }
 0x484   :  { %2313 = vset.pattern.permute.xlu2 %v3781_v37 }
 0x485   :  { %834 = vperm.xlu2 %2313, %v454_v41   ;;  %v1061_v41 = vsel %vm1060_vm8, %v2443_v17, %v1057_v29  ;;  %v365_v17 = vrot.slane %v2877_v33, 3  ;;  %vm1021_vm8 = vcmask 1043456  }
 0x487   :  { %v2921_v26 = vperm.slane %v365_v17, 0  ;;  %v368_v17 = vrot.slane %v2877_v33, 6 }
 0x48d   :  { %2318 = vset.pattern.permute.xlu2 %v3783_v39 }
 0x49e   :  { %473 = vxpose.xlu0.b32.start.end [1/1] (short) (narrow) %v471_v44, 16  ;;  %v1065_v44 = vor.u32 1.1754944e-38, %v1064_v30 }
 0x4b0   :  { %508 = vxpose.xlu1.b32.start.end [1/1] (short) (narrow) %v506_v13, 16  ;;  %v2817_v59 = vpop.permute.xlu2 %666  ;;  %v3774_v13 = vperm.slane %v2877_v33, 0 }
 0x4ba   :  { %v2825_v61 = vpop.permute.xlu2 %707 }
 0x4c0   :  { %543 = vxpose.xlu1.b32.start.end [1/1] (short) (narrow) %v541_v45, 16  ;;  %v2886_v45 = vld [vmem:[%s3766_s9] sm:$0xff] }
 0x4c1   :  { %v388_v3 = vmul.f32 %v3774_v13, %v2886_v45  ;;  %v390_v8 = vmul.f32 %v2898_v6, %v2886_v45  ;;  %v392_v23 = vmul.f32 %v2906_v15, %v2886_v45 }
 0x4c3   :  { %v2841_v5 = vpop.permute.xlu2 %789  ;;  %v404_v9 = vmul.f32 1.442695, %v388_v3  ;;  %v408_v20 = vmul.f32 1.442695, %v390_v8  ;;  %v412_v30 = vmul.f32 1.442695, %v392_v23 }
 0x4c5   :  { %2446 = vpow2.f32 %v404_v9 }
 0x4c6   :  { %2448 = vpow2.f32 %v408_v20 }
 0x4c7   :  { %2450 = vpow2.f32 %v412_v30 }
 0x4c8   :  { %v2786_v46 = vpop.permute.xlu0 %748 }
 0x4c9   :  { %v2791_v48 = vpop.permute.xlu1 %577 }
 0x4cb   :  { %v2447_v27 = vpop.eup %2446 }
 0x4cc   :  { %v911_v7 = vmul.f32 0.0, %v2447_v27 }
 0x4cd   :  { %v2850_v10 = vpop.permute.xlu2 %582 }
 0x4d1   :  { %v2789_v47 = vpop.permute.xlu0 %830 }
 0x4d2   :  { %v2795_v50 = vpop.permute.xlu1 %625 }
 0x4d6   :  { %v2858_v16 = vpop.permute.xlu2 %752 }
 0x4da   :  { %v2799_v52 = vpop.permute.xlu1 %629 }
 0x4db   :  { %v2793_v49 = vpop.permute.xlu0 %871 }
 0x4df   :  { %v2868_v22 = vpop.permute.xlu2 %834 }
 0x4e4   :  { %v2797_v51 = vpop.permute.xlu0 %711  ;;  %v2803_v54 = vpop.permute.xlu1 %670 }
 0x4ed   :  { %v2807_v56 = vpop.permute.xlu1 %875 }
 0x4ee   :  { %v2801_v53 = vpop.permute.xlu0 %793 }
 0x505   :  { %2315 = vset.pattern.permute.xlu0 %v3785_v0 }
 0x513   :  { %2316 = vset.pattern.permute.xlu1 %v3775_v40 }
 0x542   :  { %v489_v55 = vpop.trf.xlu0 }
 0x543   :  { %718 = vperm.xlu2 %2318, %v489_v55   ;;  %590 = vperm.xlu0 %2315, %v489_v55  }
 0x544   :  { %636 = vperm.xlu1 %2316, %v489_v55  }
 0x54a   :  { %v2834_v1 = vpop.trf.xlu0 }
 0x54b   :  { %2319 = vset.pattern.permute.xlu2 %v3779_v34  ;;  %2317 = vset.pattern.permute.xlu0 %v3772_v35 }
 0x54c   :  { %759 = vperm.xlu2 %2319, %v489_v55   ;;  %677 = vperm.xlu0 %2317, %v489_v55  }
 0x54d   :  { %2323 = vset.pattern.permute.xlu1 %v3785_v0 }
 0x554   :  { %2320 = vset.pattern.permute.xlu2 %v3777_v43  ;;  %v2811_v57 = vpop.trf.xlu1  ;;  %2325 = vset.pattern.permute.xlu0 %v3775_v40 }
 0x555   :  { %800 = vperm.xlu2 %2320, %v489_v55  }
 0x55c   :  { %v2814_v58 = vpop.trf.xlu1 }
 0x55d   :  { %2321 = vset.pattern.permute.xlu2 %v3781_v37 }
 0x55e   :  { %841 = vperm.xlu2 %2321, %v489_v55  }
 0x564   :  { %v2819_v60 = vpop.trf.xlu1 }
 0x565   :  { %656 = vperm.xlu0 %2325, %v2819_v60   ;;  %614 = vperm.xlu1 %2323, %v2819_v60  }
 0x566   :  { %2322 = vset.pattern.permute.xlu2 %v3785_v0 }
 0x567   :  { %604 = vperm.xlu2 %2322, %v2811_v57  }
 0x56c   :  { %v2860_v19 = vpop.trf.xlu1 }
 0x56d   :  { %2332 = vset.pattern.permute.xlu0 %v3777_v43  ;;  %2324 = vset.pattern.permute.xlu1 %v3775_v40 }
 0x56e   :  { %820 = vperm.xlu0 %2332, %v2819_v60   ;;  %648 = vperm.xlu1 %2324, %v2811_v57  }
 0x56f   :  { %2326 = vset.pattern.permute.xlu2 %v3772_v35 }
 0x570   :  { %689 = vperm.xlu2 %2326, %v2811_v57  }
 0x576   :  { %2338 = vset.pattern.permute.xlu0 %v3779_v34  ;;  %2327 = vset.pattern.permute.xlu1 %v3783_v39 }
 0x577   :  { %763 = vperm.xlu0 %2338, %v2834_v1   ;;  %730 = vperm.xlu1 %2327, %v2811_v57  }
 0x578   :  { %697 = vperm.xlu2 %2326, %v2819_v60  }
 0x57f   :  { %2340 = vset.pattern.permute.xlu0 %v3781_v37  ;;  %738 = vperm.xlu1 %2327, %v2819_v60  }
 0x580   :  { %2328 = vset.pattern.permute.xlu2 %v3787_v42  ;;  %845 = vperm.xlu0 %2340, %v2834_v1  }
 0x581   :  { %882 = vperm.xlu2 %2328, %v489_v55   ;;  %v1066_v55 = vsel %vm1063_vm9, %v1065_v44, %v1061_v41  ;;  %v2929_v41 = vperm.slane %v366_v25, 0  ;;  %v394_v44 = vmul.f32 %v2921_v26, %v2886_v45  ;;  %vm1023_vm9 = vcmask 1044480  }
 0x582   :  { %v1067_v4 = vmul.f32 %v1066_v55, %v1049_v63  ;;  %v367_v55 = vrot.slane %v2877_v33, 5 }
 0x583   :  { %v416_v23 = vmul.f32 1.442695, %v394_v44 }
 0x584   :  { %v1083_v11 = vmul.f32 %v1067_v4, %v2737_v12  ;;  %v2916_v12 = vmul.f32 %v2877_v33, %v2763_v31  ;;  %v2950_v25 = vperm.slane %v367_v55, 0 }
 0x585   :  { %2452 = vpow2.f32 %v416_v23 }
 0x586   :  { %v2925_v29 = vperm.slane %v2916_v12, 0  ;;  %v2937_v63 = vperm.slane %v2916_v12, 1 }
 0x587   :  { %2330 = vset.pattern.permute.xlu1 %v3779_v34 }
 0x588   :  { %2341 = vset.pattern.permute.xlu0 %v3785_v0  ;;  %779 = vperm.xlu1 %2330, %v2819_v60   ;;  %v586_v62 = vmul.f32 %v2925_v29, %v2791_v48  ;;  %v396_v48 = vmul.f32 %v2929_v41, %v2886_v45  ;;  %v633_v27 = vmul.f32 %v2937_v63, %v2795_v50 }
 0x589   :  { %2329 = vset.pattern.permute.xlu2 %v3779_v34  ;;  %609 = vperm.xlu0 %2341, %v2814_v58   ;;  %v398_v50 = vmul.f32 %v2950_v25, %v2886_v45 }
 0x58a   :  { %771 = vperm.xlu2 %2329, %v2811_v57   ;;  %v420_v44 = vmul.f32 1.442695, %v396_v48 }
 0x58c   :  { %2454 = vpow2.f32 %v420_v44 }
 0x590   :  { %2331 = vset.pattern.permute.xlu1 %v3777_v43 }
 0x591   :  { %2345 = vset.pattern.permute.xlu0 %v3772_v35  ;;  %812 = vperm.xlu1 %2331, %v2811_v57  }
 0x592   :  { %2333 = vset.pattern.permute.xlu2 %v3781_v37  ;;  %701 = vperm.xlu0 %2345, %v2860_v19  }
 0x593   :  { %853 = vperm.xlu2 %2333, %v2811_v57  }
 0x599   :  { %2334 = vset.pattern.permute.xlu1 %v3785_v0 }
 0x59a   :  { %595 = vperm.xlu1 %2334, %v2834_v1   ;;  %2348 = vset.pattern.permute.xlu0 %v3779_v34 }
 0x59b   :  { %861 = vperm.xlu2 %2333, %v2819_v60   ;;  %775 = vperm.xlu0 %2348, %v2814_v58  }
 0x59d   :  { %v2875_v28 = vpop.permute.xlu2 %718 }
 0x5a2   :  { %2335 = vset.pattern.permute.xlu1 %v3775_v40 }
 0x5a3   :  { %2336 = vset.pattern.permute.xlu2 %v3772_v35  ;;  %640 = vperm.xlu1 %2335, %v2834_v1  }
 0x5a4   :  { %2353 = vset.pattern.permute.xlu0 %v3781_v37  ;;  %681 = vperm.xlu2 %2336, %v2834_v1  }
 0x5a5   :  { %865 = vperm.xlu0 %2353, %v2860_v19  }
 0x5a6   :  { %v2893_v2 = vpop.permute.xlu2 %759 }
 0x5ab   :  { %660 = vperm.xlu1 %2335, %v2860_v19  }
 0x5ac   :  { %2337 = vset.pattern.permute.xlu2 %v3783_v39 }
 0x5ad   :  { %1087 = vrot.lane.b32.xlu0 %v1083_v11, %s2570_s20  ;;  %722 = vperm.xlu2 %2337, %v2834_v1  }
 0x5ae   :  { %2361 = vset.pattern.permute.xlu0 %v3777_v43 }
 0x5af   :  { %v2912_v18 = vpop.permute.xlu2 %800 }
 0x5b3   :  { %2344 = vset.pattern.permute.xlu1 %v3772_v35 }
 0x5b4   :  { %693 = vperm.xlu1 %2344, %v2814_v58  }
 0x5b5   :  { %v591_v36 = vpop.permute.xlu0 %590  ;;  %2339 = vset.pattern.permute.xlu2 %v3777_v43 }
 0x5b6   :  { %v598_v3 = vmul.f32 %v591_v36, %v2925_v29  ;;  %v637_v4 = vpop.permute.xlu1 %636  ;;  %804 = vperm.xlu2 %2339, %v2834_v1   ;;  %v2449_v36 = vpop.eup %2448 }
 0x5b7   :  { %v643_v11 = vmul.f32 %v637_v4, %v2937_v63  ;;  %v2960_v4 = vperm.slane %v368_v17, 0  ;;  %v2451_v55 = vpop.eup %2450 }
 0x5b8   :  { %v600_v9 = vsel %vm226_vm11, %v586_v62, %v598_v3  ;;  %v2943_v8 = vpop.permute.xlu2 %841  ;;  %v2956_v3 = vperm.slane %v2916_v12, 2  ;;  %v2453_v35 = vpop.eup %2452 }
 0x5b9   :  { %v2946_v20 = vadd.f32 %v911_v7, %v600_v9  ;;  %v645_v30 = vsel %vm226_vm11, %v633_v27, %v643_v11  ;;  %v400_v48 = vmul.f32 %v2960_v4, %v2886_v45 }
 0x5ba   :  { %v674_v11 = vmul.f32 %v2956_v3, %v2817_v59  ;;  %v424_v59 = vmul.f32 1.442695, %v398_v50  ;;  %v1040_v50 = vand.u32 2147483647, %v2739_v14 }
 0x5bb   :  { %v924_v62 = vmul.f32 %v2449_v36, %v2946_v20  ;;  %v2971_v36 = vperm.slane %v2916_v12, 3  ;;  %v428_v44 = vmul.f32 1.442695, %v400_v48 }
 0x5bc   :  { %2347 = vset.pattern.permute.xlu1 %v3787_v42  ;;  %2456 = vpow2.f32 %v424_v59 }
 0x5bd   :  { %v2962_v7 = vadd.f32 %v924_v62, %v645_v30  ;;  %886 = vperm.xlu1 %2347, %v2834_v1   ;;  %v725_v23 = vmul.f32 %v2875_v28, %v2971_v36  ;;  %2458 = vpow2.f32 %v428_v44 }
 0x5be   :  { %v678_v9 = vpop.permute.xlu0 %677  ;;  %2342 = vset.pattern.permute.xlu2 %v3785_v0 }
 0x5bf   :  { %v684_v17 = vmul.f32 %v678_v9, %v2956_v3  ;;  %619 = vperm.xlu2 %2342, %v2860_v19   ;;  %v937_v1 = vmul.f32 %v2451_v55, %v2962_v7  ;;  %v715_v9 = vmul.f32 %v2971_v36, %v2825_v61  ;;  %v2988_v55 = vperm.slane %v2916_v12, 4 }
 0x5c0   :  { %v369_v61 = vrot.slane %v2877_v33, 7 }
 0x5c1   :  { %v686_v27 = vsel %vm226_vm11, %v674_v11, %v684_v17  ;;  %v2981_v62 = vpop.permute.xlu2 %604  ;;  %v766_v28 = vmul.f32 %v2893_v2, %v2988_v55  ;;  %v727_v11 = vsel %vm226_vm11, %v715_v9, %v725_v23  ;;  %v756_v2 = vmul.f32 %v2988_v55, %v2786_v46 }
 0x5c2   :  { %v2983_v30 = vadd.f32 %v937_v1, %v686_v27  ;;  %v2455_v1 = vpop.eup %2454  ;;  %v1042_v27 = vsub.f32 0.0, %v1040_v50 }
 0x5c3   :  { %v768_v23 = vsel %vm226_vm11, %v756_v2, %v766_v28  ;;  %v2457_v46 = vpop.eup %2456 }
 0x5c4   :  { %v950_v13 = vmul.f32 %v2453_v35, %v2983_v30  ;;  %v3001_v35 = vperm.slane %v2916_v12, 5  ;;  %v1045_v44 = vmul.f32 1.442695, %v1042_v27  ;;  %v2459_v2 = vpop.eup %2458  ;;  %v3046_v27 = vperm.slane %v2916_v12, 7 }
 0x5c5   :  { %2351 = vset.pattern.permute.xlu1 %v3777_v43  ;;  %v3020_v43 = vperm.slane %v2916_v12, 6 }
 0x5c6   :  { %824 = vperm.xlu1 %2351, %v2860_v19   ;;  %v2997_v17 = vadd.f32 %v950_v13, %v727_v11  ;;  %v807_v13 = vmul.f32 %v2912_v18, %v3001_v35  ;;  %v3015_v11 = vperm.slane %v369_v61, 0  ;;  %2460 = vpow2.f32 %v1045_v44 }
 0x5c7   :  { %2343 = vset.pattern.permute.xlu2 %v3775_v40  ;;  %v797_v40 = vmul.f32 %v3001_v35, %v2841_v5  ;;  %v848_v18 = vmul.f32 %v2943_v8, %v3020_v43  ;;  %v838_v5 = vmul.f32 %v3020_v43, %v2789_v47 }
 0x5c8   :  { %652 = vperm.xlu2 %2343, %v2814_v58   ;;  %v963_v48 = vmul.f32 %v2455_v1, %v2997_v17  ;;  %v402_v61 = vmul.f32 %v3015_v11, %v2886_v45 }
 0x5c9   :  { %v809_v1 = vsel %vm226_vm11, %v797_v40, %v807_v13  ;;  %v850_v8 = vsel %vm226_vm11, %v838_v5, %v848_v18  ;;  %v879_v18 = vmul.f32 %v3046_v27, %v2793_v49 }
 0x5ca   :  { %v3011_v59 = vpop.permute.xlu2 %689  ;;  %v3013_v9 = vadd.f32 %v963_v48, %v768_v23  ;;  %v432_v13 = vmul.f32 1.442695, %v402_v61 }
 0x5cc   :  { %v976_v28 = vmul.f32 %v2457_v46, %v3013_v9  ;;  %2462 = vpow2.f32 %v432_v13  ;;  %v2461_v47 = vpop.eup %2460  ;;  %v3798_v13 = vmov 5  }
 0x5cd   :  { %v1052_v46 = vadd.f32 1.0, %v2461_v47 }
 0x5ce   :  { %2352 = vset.pattern.permute.xlu1 %v3781_v37  ;;  %v3027_v50 = vadd.f32 %v976_v28, %v809_v1 }
 0x5cf   :  { %857 = vperm.xlu1 %2352, %v2814_v58   ;;  %2464 = vrcp.f32 %v1052_v46  ;;  %vm1073_vm0 = vweird.f32 %v1052_v46 }
 0x5d0   :  { %2346 = vset.pattern.permute.xlu2 %v3783_v39  ;;  %v989_v40 = vmul.f32 %v2459_v2, %v3027_v50 }
 0x5d1   :  { %734 = vperm.xlu2 %2346, %v2814_v58  }
 0x5d2   :  { %v3038_v48 = vpop.permute.xlu2 %697  ;;  %v991_v23 = vadd.f32 %v989_v40, %v850_v8  ;;  %v2463_v1 = vpop.eup %2462 }
 0x5d4   :  { %v1002_v61 = vmul.f32 %v2463_v1, %v991_v23 }
 0x5d5   :  { %v2465_v40 = vpop.eup %2464 }
 0x5d6   :  { %v1069_v8 = vmul.f32 %v2465_v40, %v1052_v46  ;;  %vm1074_vm15 = vweird.f32 %v2465_v40 }
 0x5d7   :  { %2354 = vset.pattern.permute.xlu1 %v3787_v42  ;;  %v3041_v45 = vpop.permute.xlu1 %614  ;;  %v3067_v37 = vpop.permute.xlu0 %656  ;;  %vm1075_vm1 = vmor %vm1073_vm0, %vm1074_vm15  ;;  %vm1027_vm15 = vcmask 1046528  }
 0x5d8   :  { %894 = vperm.xlu1 %2354, %v2811_v57  }
 0x5d9   :  { %742 = vperm.xlu2 %2346, %v2860_v19  }
 0x5db   :  { %v883_v28 = vpop.permute.xlu2 %882 }
 0x5dc   :  { %v889_v44 = vmul.f32 %v883_v28, %v3046_v27  ;;  %v1070_v28 = vsub.f32 1.0, %v1069_v8  ;;  %v1077_v8 = vand.u32 2147483647, %v1052_v46 }
 0x5de   :  { %v891_v2 = vsel %vm226_vm11, %v879_v18, %v889_v44  ;;  %v1071_v18 = vmul.f32 %v2465_v40, %v1070_v28  ;;  %vm1078_vm2 = vcmp.eq.f32.partialorder %v1077_v8, 8.507059e+37 }
 0x5df   :  { %v3052_v5 = vadd.f32 %v1002_v61, %v891_v2 }
 0x5e0   :  { %902 = vperm.xlu1 %2354, %v2819_v60   ;;  %v3055_v57 = vpop.permute.xlu1 %648  ;;  %v1072_v61 = vadd.f32 %v2465_v40, %v1071_v18 }
 0x5e1   :  { %2349 = vset.pattern.permute.xlu2 %v3779_v34  ;;  %v1079_v34 = vand.u32 2147483648, %v1052_v46  ;;  %v821_v46 = vpop.permute.xlu0 %820 }
 0x5e2   :  { %783 = vperm.xlu2 %2349, %v2860_v19   ;;  %v1076_v28 = vsel %vm1075_vm1, %v2465_v40, %v1072_v61 }
 0x5e4   :  { %v772_v12 = vpop.permute.xlu2 %771 }
 0x5e8   :  { %2356 = vset.pattern.permute.xlu1 %v3785_v0 }
 0x5e9   :  { %v731_v49 = vpop.permute.xlu1 %730 }
 0x5ea   :  { %2350 = vset.pattern.permute.xlu2 %v3798_v13 }
 0x5eb   :  { %816 = vperm.xlu2 %2350, %v2814_v58  }
 0x5ed   :  { %v854_v1 = vpop.permute.xlu2 %853 }
 0x5f1   :  { %v739_v60 = vpop.permute.xlu1 %738 }
 0x5f2   :  { %v3063_v44 = vsel %vm226_vm11, %v731_v49, %v739_v60  ;;  %v1080_v49 = vor.u32 1.1754944e-38, %v1079_v34 }
 0x5f3   :  { %2355 = vset.pattern.permute.xlu2 %v3787_v42 }
 0x5f4   :  { %898 = vperm.xlu2 %2355, %v2814_v58   ;;  %v1081_v58 = vsel %vm1078_vm2, %v1080_v49, %v1076_v28  ;;  %v3094_v28 = vpop.permute.xlu0 %763 }
 0x5f5   :  { %v862_v2 = vpop.permute.xlu2 %861 }
 0x5f6   :  { %v868_v39 = vsel %vm226_vm11, %v854_v1, %v862_v2  ;;  %v1050_v1 = vsel %vm1048_vm4, 1.0, %v2461_v47 }
 0x5f7   :  { %v3070_v0 = vmul.f32 %v991_v23, %v868_v39  ;;  %v3081_v39 = vld [vmem:[%s3766_s9 + $0x8] sm:$0xff]  ;;  %v1082_v34 = vmul.f32 %v1081_v58, %v1050_v1  ;;  %v587_v58 = vmul.f32 %v2925_v29, %v2850_v10 }
 0x5f8   :  { %v391_v8 = vmul.f32 %v2898_v6, %v3081_v39  ;;  %v393_v1 = vmul.f32 %v2906_v15, %v3081_v39  ;;  %v395_v15 = vmul.f32 %v2921_v26, %v3081_v39 }
 0x5f9   :  { %v1084_v61 = vmul.f32 %v1082_v34, %v2739_v14 }
 0x5fa   :  { %v780_v60 = vpop.permute.xlu1 %779  ;;  %v410_v49 = vmul.f32 1.442695, %v391_v8  ;;  %v414_v6 = vmul.f32 1.442695, %v393_v1 }
 0x5fb   :  { %v786_v42 = vsel %vm226_vm11, %v772_v12, %v780_v60  ;;  %v3799_v12 = vperm.slane %v2877_v33, 0 }
 0x5fc   :  { %v3075_v18 = vmul.f32 %v3013_v9, %v786_v42  ;;  %906 = vperm.xlu2 %2355, %v2860_v19  }
 0x5fd   :  { %v389_v40 = vmul.f32 %v3799_v12, %v3081_v39 }
 0x5fe   :  { %v682_v23 = vpop.permute.xlu2 %681 }
 0x5ff   :  { %v406_v19 = vmul.f32 1.442695, %v389_v40  ;;  %v3104_v40 = vpop.permute.xlu0 %845 }
 0x601   :  { %2466 = vpow2.f32 %v406_v19 }
 0x602   :  { %2468 = vpow2.f32 %v410_v49  ;;  %v418_v49 = vmul.f32 1.442695, %v395_v15  ;;  %v704_v15 = vsel %vm226_vm11, %v3011_v59, %v3038_v48 }
 0x603   :  { %v813_v2 = vpop.permute.xlu1 %812  ;;  %2470 = vpow2.f32 %v414_v6  ;;  %v663_v6 = vsel %vm226_vm11, %v3055_v57, %v3067_v37  ;;  %v941_v59 = vmul.f32 %v2983_v30, %v704_v15  ;;  %v401_v30 = vmul.f32 %v2960_v4, %v3081_v39 }
 0x604   :  { %v827_v42 = vsel %vm226_vm11, %v813_v2, %v821_v46  ;;  %1089 = vrot.lane.b32.xlu2 %v1084_v61, %s2570_s20  ;;  %2472 = vpow2.f32 %v418_v49  ;;  %v928_v37 = vmul.f32 %v2962_v7, %v663_v6  ;;  %v954_v4 = vmul.f32 %v2997_v17, %v3063_v44 }
 0x605   :  { %v3090_v9 = vmul.f32 %v3027_v50, %v827_v42  ;;  %v634_v42 = vmul.f32 %v2937_v63, %v2799_v52  ;;  %v675_v52 = vmul.f32 %v2956_v3, %v2803_v54  ;;  %v622_v54 = vsel %vm226_vm11, %v2981_v62, %v3041_v45 }
 0x606   :  { %v915_v62 = vmul.f32 %v2946_v20, %v622_v54  ;;  %v849_v44 = vmul.f32 %v3104_v40, %v3020_v43 }
 0x607   :  { %v723_v47 = vpop.permute.xlu2 %722  ;;  %v2467_v60 = vpop.eup %2466 }
 0x608   :  { %v912_v46 = vmul.f32 0.0, %v2467_v60  ;;  %v2469_v2 = vpop.eup %2468  ;;  %v685_v60 = vmul.f32 %v682_v23, %v2956_v3 }
 0x60a   :  { %v687_v26 = vsel %vm226_vm11, %v675_v52, %v685_v60 }
 0x60c   :  { %v596_v33 = vpop.permute.xlu1 %595 }
 0x60d   :  { %v599_v14 = vmul.f32 %v596_v33, %v2925_v29 }
 0x60f   :  { %v601_v50 = vsel %vm226_vm11, %v587_v58, %v599_v14  ;;  %v2471_v14 = vpop.eup %2470 }
 0x610   :  { %v3102_v34 = vpop.permute.xlu2 %804  ;;  %v914_v12 = vadd.f32 %v912_v46, %v601_v50  ;;  %v610_v50 = vpop.permute.xlu0 %609 }
 0x612   :  { %v925_v29 = vmul.f32 %v2469_v2, %v914_v12 }
 0x615   :  { %v641_v61 = vpop.permute.xlu1 %640 }
 0x616   :  { %v644_v10 = vmul.f32 %v641_v61, %v2937_v63  ;;  %v397_v63 = vmul.f32 %v2929_v41, %v3081_v39  ;;  %v726_v41 = vmul.f32 %v723_v47, %v2971_v36 }
 0x618   :  { %v646_v19 = vsel %vm226_vm11, %v634_v42, %v644_v10  ;;  %v422_v2 = vmul.f32 1.442695, %v397_v63  ;;  %v2473_v10 = vpop.eup %2472  ;;  %v757_v63 = vmul.f32 %v2988_v55, %v2858_v16 }
 0x619   :  { %v620_v8 = vpop.permute.xlu2 %619  ;;  %v927_v33 = vadd.f32 %v925_v29, %v646_v19  ;;  %v716_v19 = vmul.f32 %v2971_v36, %v2797_v51 }
 0x61a   :  { %v623_v61 = vsel %vm226_vm11, %v610_v50, %v620_v8  ;;  %v702_v8 = vpop.permute.xlu0 %701  ;;  %2474 = vpow2.f32 %v422_v2 }
 0x61b   :  { %v938_v1 = vmul.f32 %v2471_v14, %v927_v33  ;;  %v916_v57 = vmul.f32 %v914_v12, %v623_v61  ;;  %v399_v14 = vmul.f32 %v2950_v25, %v3081_v39  ;;  %v728_v7 = vsel %vm226_vm11, %v716_v19, %v726_v41 }
 0x61c   :  { %v767_v25 = vmul.f32 %v3094_v28, %v2988_v55  ;;  %v808_v41 = vmul.f32 %v3102_v34, %v3001_v35 }
 0x61d   :  { %v661_v58 = vpop.permute.xlu1 %660  ;;  %v940_v46 = vadd.f32 %v938_v1, %v687_v26  ;;  %v917_v12 = vadd.f32 %v916_v57, %v915_v62  ;;  %v426_v51 = vmul.f32 1.442695, %v399_v14  ;;  %v798_v57 = vmul.f32 %v3001_v35, %v2801_v53 }
 0x61e   :  { %v769_v6 = vsel %vm226_vm11, %v757_v63, %v767_v25 }
 0x61f   :  { %v951_v29 = vmul.f32 %v2473_v10, %v940_v46  ;;  %v918_v20 = vrot.slane %v917_v12, 4  ;;  %2476 = vpow2.f32 %v426_v51  ;;  %v839_v51 = vmul.f32 %v3020_v43, %v2868_v22 }
 0x620   :  { %v2475_v1 = vpop.eup %2474 }
 0x621   :  { %v851_v25 = vsel %vm226_vm11, %v839_v51, %v849_v44 }
 0x622   :  { %v653_v23 = vpop.permute.xlu2 %652 }
 0x623   :  { %v664_v42 = vsel %vm226_vm11, %v653_v23, %v661_v58  ;;  %v919_v23 = vadd.f32 %v918_v20, %v917_v12 }
 0x624   :  { %v929_v3 = vmul.f32 %v927_v33, %v664_v42  ;;  %v953_v33 = vadd.f32 %v951_v29, %v728_v7  ;;  %v430_v42 = vmul.f32 1.442695, %v401_v30  ;;  %v776_v29 = vpop.permute.xlu0 %775 }
 0x625   :  { %v2477_v54 = vpop.eup %2476 }
 0x626   :  { %v694_v49 = vpop.permute.xlu1 %693  ;;  %v930_v45 = vadd.f32 %v929_v3, %v928_v37  ;;  %v964_v50 = vmul.f32 %v2475_v1, %v953_v33  ;;  %v920_v3 = vrot.slane %v919_v23, 2  ;;  %2478 = vpow2.f32 %v430_v42 }
 0x627   :  { %v705_v47 = vsel %vm226_vm11, %v694_v49, %v702_v8  ;;  %v810_v49 = vsel %vm226_vm11, %v798_v57, %v808_v41  ;;  %v403_v41 = vmul.f32 %v3015_v11, %v3081_v39 }
 0x628   :  { %v942_v48 = vmul.f32 %v940_v46, %v705_v47  ;;  %v931_v36 = vrot.slane %v930_v45, 4  ;;  %v966_v2 = vadd.f32 %v964_v50, %v769_v6  ;;  %v921_v62 = vadd.f32 %v920_v3, %v919_v23  ;;  %v1100_v3 = vld [vmem:[%s3768_s11 + $0x28] sm:$0xff] }
 0x629   :  { %v434_v39 = vmul.f32 1.442695, %v403_v41 }
 0x62a   :  { %v943_v60 = vadd.f32 %v942_v48, %v941_v59  ;;  %v932_v26 = vadd.f32 %v931_v36, %v930_v45  ;;  %v977_v37 = vmul.f32 %v2477_v54, %v966_v2  ;;  %v922_v53 = vrot.slane %v921_v62, 1 }
 0x62b   :  { %v735_v58 = vpop.permute.xlu2 %734  ;;  %2480 = vpow2.f32 %v434_v39 }
 0x62c   :  { %v944_v52 = vrot.slane %v943_v60, 4  ;;  %v933_v28 = vrot.slane %v932_v26, 2  ;;  %v979_v47 = vadd.f32 %v977_v37, %v810_v49  ;;  %v2479_v17 = vpop.eup %2478  ;;  %v866_v40 = vpop.permute.xlu0 %865  ;;  %v923_v50 = vadd.f32 %v922_v53, %v921_v62  ;;  %v1098_v49 = vld [vmem:[%s3768_s11 + $0x18] sm:$0xff] }
 0x62d   :  { %v880_v53 = vmul.f32 %v3046_v27, %v2807_v56 }
 0x62e   :  { %v945_v61 = vadd.f32 %v944_v52, %v943_v60  ;;  %v934_v19 = vadd.f32 %v933_v28, %v932_v26  ;;  %v990_v60 = vmul.f32 %v2479_v17, %v979_v47  ;;  %v1101_v28 = vld [vmem:[%s3768_s11 + $0x30] sm:$0xff] }
 0x62f   :  { %v3145_v46 = vpop.permute.xlu1 %886 }
 0x630   :  { %v946_v16 = vrot.slane %v945_v61, 2  ;;  %v935_v59 = vrot.slane %v934_v19, 1  ;;  %v992_v26 = vadd.f32 %v990_v60, %v851_v25  ;;  %v890_v44 = vmul.f32 %v3145_v46, %v3046_v27 }
 0x631   :  { %v2481_v51 = vpop.eup %2480 }
 0x632   :  { %v947_v14 = vadd.f32 %v946_v16, %v945_v61 }
 0x633   :  { %v743_v10 = vpop.permute.xlu2 %742 }
 0x634   :  { %v746_v55 = vsel %vm226_vm11, %v735_v58, %v743_v10  ;;  %v948_v48 = vrot.slane %v947_v14, 1  ;;  %v936_v58 = vadd.f32 %v935_v59, %v934_v19 }
 0x635   :  { %v955_v15 = vmul.f32 %v953_v33, %v746_v55 }
 0x636   :  { %v949_v52 = vadd.f32 %v948_v48, %v947_v14  ;;  %v1016_v43 = vsel %vm1015_vm5, %v923_v50, %v936_v58 }
 0x637   :  { %v956_v8 = vadd.f32 %v955_v15, %v954_v4 }
 0x638   :  { %v825_v34 = vpop.permute.xlu1 %824 }
 0x639   :  { %v957_v45 = vrot.slane %v956_v8, 4 }
 0x63b   :  { %v958_v7 = vadd.f32 %v957_v45, %v956_v8  ;;  %v1097_v45 = vld [vmem:[%s3768_s11 + $0x10] sm:$0xff] }
 0x63c   :  { %v784_v12 = vpop.permute.xlu2 %783 }
 0x63d   :  { %v959_v35 = vrot.slane %v958_v7, 2  ;;  %v787_v33 = vsel %vm226_vm11, %v776_v29, %v784_v12  ;;  %v1095_v12 = vld [vmem:[%s3768_s11] sm:$0xff] }
 0x63e   :  { %v968_v36 = vmul.f32 %v966_v2, %v787_v33  ;;  %v1018_v2 = vsel %vm1017_vm6, %v1016_v43, %v949_v52 }
 0x63f   :  { %v960_v1 = vadd.f32 %v959_v35, %v958_v7  ;;  %v1096_v7 = vld [vmem:[%s3768_s11 + $0x8] sm:$0xff] }
 0x640   :  { %v969_v20 = vadd.f32 %v968_v36, %v3075_v18  ;;  %v1102_v18 = vld [vmem:[%s3768_s11 + $0x38] sm:$0xff]  ;;  %v892_v36 = vsel %vm226_vm11, %v880_v53, %v890_v44 }
 0x641   :  { %v961_v63 = vrot.slane %v960_v1, 1  ;;  %v858_v30 = vpop.permute.xlu1 %857  ;;  %1117 = vmatpush.msrb.mxu1 %v1102_v18 }
 0x642   :  { %v970_v6 = vrot.slane %v969_v20, 4  ;;  %v869_v61 = vsel %vm226_vm11, %v858_v30, %v866_v40 }
 0x643   :  { %v962_v22 = vadd.f32 %v961_v63, %v960_v1  ;;  %v994_v23 = vmul.f32 %v992_v26, %v869_v61  ;;  %1118 = vmatpush.msrb.mxu1 %v1101_v28  ;;  %v1003_v1 = vmul.f32 %v2481_v51, %v992_v26 }
 0x644   :  { %v971_v42 = vadd.f32 %v970_v6, %v969_v20 }
 0x645   :  { %v995_v10 = vadd.f32 %v994_v23, %v3070_v0  ;;  %v817_v54 = vpop.permute.xlu2 %816  ;;  %v1020_v16 = vsel %vm1019_vm7, %v1018_v2, %v962_v22  ;;  %v1099_v0 = vld [vmem:[%s3768_s11 + $0x20] sm:$0xff]  ;;  %1119 = vmatpush.msrb.mxu1 %v1100_v3  ;;  %v1005_v40 = vadd.f32 %v1003_v1, %v892_v36 }
 0x646   :  { %v972_v55 = vrot.slane %v971_v42, 2  ;;  %v828_v4 = vsel %vm226_vm11, %v817_v54, %v825_v34  ;;  %v2416_v23 = vld [vmem:[%s3767_s10] ss:$0 sm:$0xff]  ;;  %v2418_v36 = vld [vmem:[%s3760_s3 + $0x1] ss:$0 sm:$0xff] }
 0x647   :  { %v996_v15 = vrot.slane %v995_v10, 4  ;;  %v981_v37 = vmul.f32 %v979_v47, %v828_v4  ;;  %1120 = vmatpush.msrb.mxu1 %v1099_v0  ;;  %v1033_v18 = vmul.f32 %v2416_v23, %v2763_v31  ;;  %v1308_v23 = vld [vmem:[#allocation2 + $0x1f0] sm:$0xff] }
 0x648   :  { %v973_v57 = vadd.f32 %v972_v55, %v971_v42 }
 0x649   :  { %v997_v29 = vadd.f32 %v996_v15, %v995_v10  ;;  %v982_v11 = vadd.f32 %v981_v37, %v3090_v9  ;;  %1121 = vmatpush.msrb.mxu1 %v1098_v49  ;;  %v1088_v10 = vpop.permute.xlu0 %1087 }
 0x64a   :  { %v974_v19 = vrot.slane %v973_v57, 1  ;;  %v895_v8 = vpop.permute.xlu1 %894 }
 0x64b   :  { %v998_v14 = vrot.slane %v997_v29, 2  ;;  %v983_v34 = vrot.slane %v982_v11, 4  ;;  %1122 = vmatpush.msrb.mxu1 %v1097_v45 }
 0x64c   :  { %v975_v62 = vadd.f32 %v974_v19, %v973_v57  ;;  %v2262_v19 = vld [vmem:[%s3761_s4 + $0x38] sm:$0xff] }
 0x64d   :  { %v984_v47 = vadd.f32 %v983_v34, %v982_v11  ;;  %v999_v9 = vadd.f32 %v998_v14, %v997_v29  ;;  %1123 = vmatpush.msrb.mxu1 %v1096_v7  ;;  %1213 = vmatpush.msrb.mxu0 %v2262_v19  ;;  %v2260_v14 = vld [vmem:[%s3761_s4 + $0x28] sm:$0xff]  ;;  %v1288_v19 = vld [vmem:[#allocation2 + $0x150] sm:$0xff] }
 0x64e   :  { %v899_v59 = vpop.permute.xlu2 %898  ;;  %v1022_v17 = vsel %vm1021_vm8, %v1020_v16, %v975_v62  ;;  %v2259_v62 = vld [vmem:[%s3761_s4 + $0x20] sm:$0xff] }
 0x64f   :  { %v985_v48 = vrot.slane %v984_v47, 2  ;;  %v1000_v33 = vrot.slane %v999_v9, 1  ;;  %1124 = vmatpush.msrb.mxu1 %v1095_v12 }
 0x651   :  { %v986_v35 = vadd.f32 %v985_v48, %v984_v47  ;;  %v1001_v52 = vadd.f32 %v1000_v33, %v999_v9  ;;  %v2417_v33 = vld [vmem:[%s3759_s2 + $0x1] ss:$0 sm:$0xff]  ;;  %1310 = vmatpush.msra.mxu1 %v1308_v23 }
 0x652   :  { %v903_v60 = vpop.permute.xlu1 %902 }
 0x653   :  { %v987_v58 = vrot.slane %v986_v35, 1  ;;  %v909_v25 = vsel %vm226_vm11, %v895_v8, %v903_v60 }
 0x654   :  { %v1006_v50 = vmul.f32 %v3052_v5, %v909_v25 }
 0x655   :  { %v988_v46 = vadd.f32 %v987_v58, %v986_v35 }
 0x656   :  { %v907_v20 = vpop.permute.xlu2 %906 }
 0x657   :  { %v910_v56 = vsel %vm226_vm11, %v899_v59, %v907_v20  ;;  %v1024_v27 = vsel %vm1023_vm9, %v1022_v17, %v988_v46 }
 0x658   :  { %v1007_v63 = vmul.f32 %v1005_v40, %v910_v56  ;;  %v1026_v30 = vsel %vm1025_vm10, %v1024_v27, %v1001_v52 }
 0x65a   :  { %v1008_v6 = vadd.f32 %v1007_v63, %v1006_v50 }
 0x65c   :  { %v1009_v61 = vrot.slane %v1008_v6, 4 }
 0x65e   :  { %v1010_v26 = vadd.f32 %v1009_v61, %v1008_v6  ;;  %v1090_v41 = vpop.permute.xlu2 %1089 }
 0x660   :  { %v1011_v43 = vrot.slane %v1010_v26, 2 }
 0x662   :  { %v1012_v22 = vadd.f32 %v1011_v43, %v1010_v26 }
 0x664   :  { %v1013_v2 = vrot.slane %v1012_v22, 1 }
 0x666   :  { %v1014_v42 = vadd.f32 %v1013_v2, %v1012_v22  ;;  %v1309_v2 = vld [vmem:[#allocation2 + $0x1f8] sm:$0xff] }
 0x667   :  { %1330 = vmatpush.msrb.mxu2 %v1309_v2 }
 0x668   :  { %v1028_v28 = vsel %vm1027_vm15, %v1026_v30, %v1014_v42  ;;  %v1306_v42 = vld [vmem:[#allocation2 + $0x1e0] sm:$0xff] }
 0x669   :  { %v1034_v5 = vadd.f32 %v1033_v18, %v1028_v28  ;;  %v1307_v18 = vld [vmem:[#allocation2 + $0x1e8] sm:$0xff]  ;;  %v1304_v28 = vld [vmem:[#allocation2 + $0x1d0] sm:$0xff]  ;;  %1311 = vmatpush.msra.mxu1 %v1306_v42 }
 0x66a   :  { %1331 = vmatpush.msrb.mxu2 %v1307_v18 }
 0x66b   :  { %1036 = vrot.lane.b32.xlu1 %v1034_v5, %s2570_s20  ;;  %v1093_v54 = vmul.f32 %v1088_v10, %v1034_v5  ;;  %v1305_v5 = vld [vmem:[#allocation2 + $0x1d8] sm:$0xff]  ;;  %v1302_v10 = vld [vmem:[#allocation2 + $0x1c0] sm:$0xff]  ;;  %1312 = vmatpush.msra.mxu1 %v1304_v28 }
 0x66c   :  { %1332 = vmatpush.msrb.mxu2 %v1305_v5 }
 0x66d   :  { %2255 = vmatmul.msk.f32.vlgmr.msrb.gmra.mxu1 %vm226_vm11, %v1093_v54  ;;  %v1303_v54 = vld [vmem:[#allocation2 + $0x1c8] sm:$0xff] }
 0x66e   :  { %1313 = vmatpush.msra.mxu1 %v1302_v10  ;;  %1333 = vmatpush.msrb.mxu2 %v1303_v54 }
 0x6dd   :  { %v1037_v16 = vpop.permute.xlu1 %1036 }
 0x6de   :  { %v1094_v55 = vmul.f32 %v1090_v41, %v1037_v16  ;;  %v1300_v41 = vld [vmem:[#allocation2 + $0x1b0] sm:$0xff]  ;;  %v1301_v16 = vld [vmem:[#allocation2 + $0x1b8] sm:$0xff] }
 0x6df   :  { %1314 = vmatpush.msra.mxu1 %v1300_v41  ;;  %1334 = vmatpush.msrb.mxu2 %v1301_v16 }
 0x6e0   :  { %2256 = vmatmul.msk.f32.gmra.mxu1 %vm226_vm11, %v1094_v55  ;;  %v1298_v55 = vld [vmem:[#allocation2 + $0x1a0] sm:$0xff] }
 0x6e1   :  { %1315 = vmatpush.msra.mxu1 %v1298_v55 }
 0x6ea   :  { %v1126_v4 = vpop.f32.mrf.mxu1 }
 0x6eb   :  { %v3216_v3 = vadd.f32 %v2699_v21, %v1126_v4  ;;  %v1299_v4 = vld [vmem:[#allocation2 + $0x1a8] sm:$0xff] }
 0x6ec   :  { %1335 = vmatpush.msrb.mxu2 %v1299_v4 }
 0x6ed   :  { %3800 = vst [vmem:[#allocation6_spill] sm:$0xff] %v3216_v3  ;;  %v1136_v31 = vsel %vm127_vm3, %v3216_v3, 0.0 }
 0x6ee   :  { %1137 = vadd.xlane.f32.xlu0 %v1136_v31  ;;  %v1296_v31 = vld [vmem:[#allocation2 + $0x190] sm:$0xff] }
 0x6ef   :  { %1316 = vmatpush.msra.mxu1 %v1296_v31 }
 0x75d   :  { %v1129_v15 = vpop.f32.mrf.mxu1 }
 0x75e   :  { %v3221_v37 = vadd.f32 %v2703_v24, %v1129_v15  ;;  %v2261_v24 = vld [vmem:[%s3761_s4 + $0x30] sm:$0xff]  ;;  %v1297_v15 = vld [vmem:[#allocation2 + $0x198] sm:$0xff] }
 0x75f   :  { %1214 = vmatpush.msrb.mxu0 %v2261_v24  ;;  %1336 = vmatpush.msrb.mxu2 %v1297_v15  ;;  %v1289_v24 = vld [vmem:[#allocation2 + $0x158] sm:$0xff] }
 0x760   :  { %3801 = vst [vmem:[#allocation7_spill] sm:$0xff] %v3221_v37  ;;  %v1139_v57 = vsel %vm127_vm3, %v3221_v37, 0.0 }
 0x761   :  { %v1138_v0 = vpop.xlane.xlu0 %1137  ;;  %1140 = vadd.xlane.f32.xlu1 %v1139_v57  ;;  %1215 = vmatpush.msrb.mxu0 %v2260_v14  ;;  %v1294_v57 = vld [vmem:[#allocation2 + $0x180] sm:$0xff]  ;;  %v1287_v14 = vld [vmem:[#allocation2 + $0x148] sm:$0xff] }
 0x762   :  { %v1142_v29 = vmul.f32 %v1138_v0, %v2707_v32  ;;  %v1295_v0 = vld [vmem:[#allocation2 + $0x188] sm:$0xff]  ;;  %1317 = vmatpush.msra.mxu1 %v1294_v57 }
 0x763   :  { %1216 = vmatpush.msrb.mxu0 %v2259_v62  ;;  %1337 = vmatpush.msrb.mxu2 %v1295_v0  ;;  %v3803_v0 = vmov 1  }
 0x764   :  { %v1144_v11 = vsub.f32 %v3216_v3, %v1142_v29  ;;  %v1292_v29 = vld [vmem:[#allocation2 + $0x170] sm:$0xff] }
 0x765   :  { %1318 = vmatpush.msra.mxu1 %v1292_v29 }
 0x766   :  { %v1146_v39 = vmul.f32 %v1144_v11, %v1144_v11 }
 0x768   :  { %v1148_v21 = vsel %vm127_vm3, %v1146_v39, 0.0  ;;  %v1290_v39 = vld [vmem:[#allocation2 + $0x160] sm:$0xff] }
 0x769   :  { %1149 = vadd.xlane.f32.xlu2 %v1148_v21  ;;  %v1291_v21 = vld [vmem:[#allocation2 + $0x168] sm:$0xff]  ;;  %1319 = vmatpush.msra.mxu1 %v1290_v39  ;;  %v3804_v39 = vmov 0  }
 0x76b   :  { %1320 = vmatpush.msra.mxu1 %v1288_v19  ;;  %v3806_v19 = vmov 2  }
 0x7d4   :  { %v1141_v8 = vpop.xlane.xlu1 %1140 }
 0x7d5   :  { %v1143_v49 = vmul.f32 %v1141_v8, %v2707_v32  ;;  %v2265_v8 = vld [vmem:[%s3762_s5 + $0x4] sm:$0xf] }
 0x7d6   :  { %v1231_v62 = vperm.slane %v2265_v8, 3 }
 0x7d7   :  { %v1145_v34 = vsub.f32 %v3221_v37, %v1143_v49  ;;  %v1286_v49 = vld [vmem:[#allocation2 + $0x140] sm:$0xff] }
 0x7d8   :  { %1321 = vmatpush.msra.mxu1 %v1286_v49  ;;  %v3809_v49 = vmov 7  }
 0x7d9   :  { %v1147_v45 = vmul.f32 %v1145_v34, %v1145_v34 }
 0x7db   :  { %v1151_v47 = vsel %vm127_vm3, %v1147_v45, 0.0  ;;  %v1235_v45 = vperm.slane %v2265_v8, 2 }
 0x7dc   :  { %1152 = vadd.xlane.f32.xlu0 %v1151_v47  ;;  %v1150_v9 = vpop.xlane.xlu2 %1149 }
 0x7dd   :  { %v1154_v59 = vmul.f32 %v1150_v9, %v2707_v32  ;;  %v1284_v9 = vld [vmem:[#allocation2 + $0x130] sm:$0xff] }
 0x7de   :  { %1322 = vmatpush.msra.mxu1 %v1284_v9 }
 0x7df   :  { %v1156_v7 = vadd.f32 1e-05, %v1154_v59  ;;  %v1285_v59 = vld [vmem:[#allocation2 + $0x138] sm:$0xff] }
 0x7e1   :  { %2482 = vrsqrt.f32 %v1156_v7  ;;  %vm1164_vm1 = vweird.f32 %v1156_v7 }
 0x7e7   :  { %v2483_v17 = vpop.eup %2482 }
 0x7e8   :  { %v1159_v44 = vmul.f32 %v2483_v17, %v1156_v7  ;;  %vm1165_vm0 = vweird.f32 %v2483_v17 }
 0x7e9   :  { %vm1166_vm2 = vmor %vm1164_vm1, %vm1165_vm0 }
 0x7ea   :  { %v1160_v48 = vmul.f32 %v2483_v17, %v1159_v44 }
 0x7ec   :  { %v1161_v12 = vmul.f32 0.5, %v1160_v48  ;;  %v1240_v48 = vperm.slane %v2265_v8, 1 }
 0x7ee   :  { %v1162_v53 = vsub.f32 1.5, %v1161_v12  ;;  %v1282_v12 = vld [vmem:[#allocation2 + $0x120] sm:$0xff] }
 0x7ef   :  { %1323 = vmatpush.msra.mxu1 %v1282_v12 }
 0x7f0   :  { %v1163_v35 = vmul.f32 %v2483_v17, %v1162_v53  ;;  %v1283_v53 = vld [vmem:[#allocation2 + $0x128] sm:$0xff] }
 0x7f2   :  { %v1167_v60 = vsel %vm1166_vm2, %v2483_v17, %v1163_v35 }
 0x7f3   :  { %v1178_v51 = vmul.f32 %v1167_v60, %v1144_v11  ;;  %v1293_v11 = vld [vmem:[#allocation2 + $0x178] sm:$0xff]  ;;  %v1245_v60 = vperm.slane %v2265_v8, 0  ;;  %v3808_v8 = vmov 4  }
 0x7f4   :  { %1338 = vmatpush.msrb.mxu2 %v1293_v11 }
 0x7f5   :  { %v1183_v58 = vmul.f32 %v2417_v33, %v1178_v51 }
 0x7f6   :  { %1339 = vmatpush.msrb.mxu2 %v1291_v21  ;;  %v3805_v21 = vmov 3  }
 0x7f7   :  { %v1188_v1 = vadd.f32 %v2418_v36, %v1183_v58  ;;  %v1280_v58 = vld [vmem:[#allocation2 + $0x110] sm:$0xff] }
 0x7f8   :  { %1340 = vmatpush.msrb.mxu2 %v1289_v24  ;;  %1324 = vmatpush.msra.mxu1 %v1280_v58  ;;  %v3807_v24 = vmov 6   ;;  %v2420_v58 = vld [vmem:[%s3765_s8 + $0x1] ss:$0 sm:$0xff] }
 0x7f9   :  { %2263 = vmatmul.msk.f32.vlgmr.msrb.gmra.mxu0 %vm127_vm3, %v1188_v1  ;;  %v1281_v1 = vld [vmem:[#allocation2 + $0x118] sm:$0xff] }
 0x7fa   :  { %1341 = vmatpush.msrb.mxu2 %v1287_v14 }
 0x7fc   :  { %1342 = vmatpush.msrb.mxu2 %v1285_v59 }
 0x7fe   :  { %1343 = vmatpush.msrb.mxu2 %v1283_v53 }
 0x800   :  { %1344 = vmatpush.msrb.mxu2 %v1281_v1 }
 0x84f   :  { %v1153_v46 = vpop.xlane.xlu0 %1152 }
 0x850   :  { %v1155_v25 = vmul.f32 %v1153_v46, %v2707_v32 }
 0x852   :  { %v1157_v52 = vadd.f32 1e-05, %v1155_v25 }
 0x854   :  { %2484 = vrsqrt.f32 %v1157_v52  ;;  %vm1174_vm0 = vweird.f32 %v1157_v52 }
 0x85a   :  { %v2485_v20 = vpop.eup %2484 }
 0x85b   :  { %v1169_v40 = vmul.f32 %v2485_v20, %v1157_v52  ;;  %vm1175_vm4 = vweird.f32 %v2485_v20 }
 0x85c   :  { %vm1176_vm1 = vmor %vm1174_vm0, %vm1175_vm4 }
 0x85d   :  { %v1170_v56 = vmul.f32 %v2485_v20, %v1169_v40  ;;  %v1279_v40 = vld [vmem:[#allocation2 + $0x108] sm:$0xff] }
 0x85e   :  { %1345 = vmatpush.msrb.mxu2 %v1279_v40 }
 0x85f   :  { %v1171_v27 = vmul.f32 0.5, %v1170_v56 }
 0x861   :  { %v1172_v50 = vsub.f32 1.5, %v1171_v27 }
 0x863   :  { %v1173_v63 = vmul.f32 %v2485_v20, %v1172_v50  ;;  %v2419_v50 = vld [vmem:[%s3763_s6 + $0x1] ss:$0 sm:$0xff] }
 0x865   :  { %v1177_v30 = vsel %vm1176_vm1, %v2485_v20, %v1173_v63  ;;  %v1278_v20 = vld [vmem:[#allocation2 + $0x100] sm:$0xff] }
 0x866   :  { %v1179_v6 = vmul.f32 %v1177_v30, %v1145_v34  ;;  %1325 = vmatpush.msra.mxu1 %v1278_v20 }
 0x868   :  { %v1184_v61 = vmul.f32 %v2417_v33, %v1179_v6 }
 0x86a   :  { %v1189_v26 = vadd.f32 %v2418_v36, %v1184_v61 }
 0x86c   :  { %2264 = vmatmul.msk.f32.gmra.mxu0 %vm127_vm3, %v1189_v26 }
 0x876   :  { %v3253_v43 = vpop.f32.mrf.mxu0 }
 0x8e9   :  { %v3255_v22 = vpop.f32.mrf.mxu0 }
 0x8ea   :  { %1225 = vrot.lane.b32.xlu1 %v3255_v22, %s2570_s20 }
 0x95c   :  { %v1226_v34 = vpop.permute.xlu1 %1225 }
 0x95d   :  { %v1228_v47 = vsel %vm226_vm11, %v3253_v43, %v1226_v34 }
 0x95e   :  { %v1233_v7 = vrot.slane %v1228_v47, 7  ;;  %v1238_v17 = vrot.slane %v1228_v47, 6  ;;  %v1243_v44 = vrot.slane %v1228_v47, 5  ;;  %v1232_v51 = vmul.f32 %v1231_v62, %v1228_v47 }
 0x960   :  { %v1234_v35 = vsel %vm232_vm12, %v1233_v7, 0.0  ;;  %v1239_v33 = vsel %vm238_vm13, %v1238_v17, 0.0  ;;  %v1244_v46 = vsel %vm244_vm14, %v1243_v44, 0.0 }
 0x961   :  { %v1236_v36 = vmul.f32 %v1235_v45, %v1234_v35  ;;  %v1241_v52 = vmul.f32 %v1240_v48, %v1239_v33  ;;  %v1246_v27 = vmul.f32 %v1245_v60, %v1244_v46 }
 0x963   :  { %v1237_v25 = vadd.f32 %v1236_v36, %v1232_v51 }
 0x965   :  { %v1242_v56 = vadd.f32 %v1241_v52, %v1237_v25 }
 0x967   :  { %v1247_v63 = vadd.f32 %v1246_v27, %v1242_v56 }
 0x969   :  { %v1253_v30 = vadd.f32 %v2419_v50, %v1247_v63 }
 0x96b   :  { %v1254_v38 = vand.u32 2147483647, %v1253_v30  ;;  %vm1258_vm2 = vcmp.ge.f32.partialorder %v1253_v30, 0.0 }
 0x96d   :  { %v1255_v6 = vsub.f32 0.0, %v1254_v38 }
 0x96f   :  { %v1256_v61 = vmul.f32 1.442695, %v1255_v6 }
 0x971   :  { %2486 = vpow2.f32 %v1256_v61 }
 0x977   :  { %v2487_v26 = vpop.eup %2486 }
 0x978   :  { %v1260_v23 = vadd.f32 1.0, %v2487_v26  ;;  %v1259_v55 = vsel %vm1258_vm2, 1.0, %v2487_v26  ;;  %vm2044_vm2 = vcmp.ge.f32.partialorder %v3253_v43, 0.0 }
 0x97a   :  { %2488 = vrcp.f32 %v1260_v23  ;;  %v1272_v28 = vand.u32 2147483648, %v1260_v23  ;;  %v1270_v10 = vand.u32 2147483647, %v1260_v23  ;;  %vm1266_vm13 = vweird.f32 %v1260_v23 }
 0x97c   :  { %v1273_v41 = vor.u32 1.1754944e-38, %v1272_v28  ;;  %vm1271_vm4 = vcmp.eq.f32.partialorder %v1270_v10, 8.507059e+37 }
 0x980   :  { %v2489_v2 = vpop.eup %2488 }
 0x981   :  { %v1262_v42 = vmul.f32 %v2489_v2, %v1260_v23  ;;  %vm1267_vm12 = vweird.f32 %v2489_v2 }
 0x982   :  { %vm1268_vm14 = vmor %vm1266_vm13, %vm1267_vm12 }
 0x983   :  { %v1263_v18 = vsub.f32 1.0, %v1262_v42  ;;  %v3390_v42 = vld [vmem:[%s3766_s9 + $0x10] sm:$0xff] }
 0x985   :  { %v1264_v5 = vmul.f32 %v2489_v2, %v1263_v18 }
 0x987   :  { %v1265_v54 = vadd.f32 %v2489_v2, %v1264_v5  ;;  %v2036_v5 = vand.u32 2147483647, %v3253_v43 }
 0x989   :  { %v1269_v16 = vsel %vm1268_vm14, %v2489_v2, %v1265_v54 }
 0x98a   :  { %v1274_v4 = vsel %vm1271_vm4, %v1273_v41, %v1269_v16 }
 0x98b   :  { %v1275_v31 = vmul.f32 %v1274_v4, %v1259_v55  ;;  %v2038_v4 = vsub.f32 0.0, %v2036_v5 }
 0x98d   :  { %v3273_v15 = vmul.f32 %v1275_v31, %v1253_v30 }
 0x98f   :  { %3802 = vst [vmem:[#allocation8_spill] sm:$0xff] %v3273_v15  ;;  %1326 = vmatmul.f32.vlgmr.msra.gmra.mxu1 %v3273_v15  ;;  %1346 = vmatmul.f32.vlgmr.msrb.gmra.mxu2 %v3273_v15 }
 0xa0c   :  { %v1327_v1 = vpop.f32.mrf.mxu1 }
 0xa0d   :  { %v1355_v25 = vadd.f32 %v2420_v58, %v1327_v1 }
 0xa0f   :  { %v1356_v20 = vmin.f32 %v1355_v25, 20.0  ;;  %vm1357_vm0 = vcmp.gt.f32.partialorder %v1355_v25, 20.0 }
 0xa11   :  { %v1358_v56 = vmul.f32 1.442695, %v1356_v20 }
 0xa12   :  { %v1347_v57 = vpop.f32.mrf.mxu2 }
 0xa13   :  { %1473 = vrot.lane.b32.xlu0 %v1347_v57, %s2571_s23  ;;  %1440 = vxpose.xlu2.b32.start.end [1/1] (short) (narrow) %v1347_v57, 16  ;;  %2490 = vpow2.f32 %v1358_v56 }
 0xa19   :  { %v2491_v50 = vpop.eup %2490 }
 0xa1a   :  { %v1360_v30 = vadd.f32 1.0, %v2491_v50 }
 0xa1b   :  { %1508 = vrot.lane.b32.xlu0 %v1347_v57, %s2572_s24 }
 0xa1c   :  { %2492 = vlog2.f32 %v1360_v30 }
 0xa22   :  { %v2493_v6 = vpop.eup %2492 }
 0xa23   :  { %v1362_v61 = vmul.f32 0.6931472, %v2493_v6 }
 0xa25   :  { %v3380_v26 = vsel %vm1357_vm0, %v1355_v25, %v1362_v61 }
 0xa26   :  { %v3789_v2 = vperm.slane %v3380_v26, 0  ;;  %v3394_v18 = vmul.f32 %v3380_v26, %v3273_v15 }
 0xa28   :  { %v1391_v28 = vmul.f32 %v3390_v42, %v3789_v2  ;;  %v3403_v10 = vperm.slane %v3394_v18, 0 }
 0xa2a   :  { %v1407_v55 = vmul.f32 1.442695, %v1391_v28 }
 0xa2c   :  { %2494 = vpow2.f32 %v1407_v55 }
 0xa75   :  { %2357 = vset.pattern.permute.xlu2 %v3803_v0 }
 0xa84   :  { %1543 = vrot.lane.b32.xlu2 %v1347_v57, %s2573_s1  ;;  %v1365_v57 = vrot.slane %v3380_v26, 1 }
 0xa85   :  { %v1474_v14 = vpop.permute.xlu0 %1473 }
 0xa8d   :  { %v1509_v34 = vpop.permute.xlu0 %1508 }
 0xaac   :  { %v1456_v29 = vpop.trf.xlu2 }
 0xaad   :  { %1792 = vperm.xlu0 %2361, %v1456_v29   ;;  %1628 = vperm.xlu2 %2357, %v1456_v29  }
 0xaae   :  { %1580 = vperm.xlu1 %2356, %v1456_v29  }
 0xab4   :  { %v1457_v11 = vpop.trf.xlu2 }
 0xab5   :  { %2364 = vset.pattern.permute.xlu0 %v3804_v39  ;;  %2359 = vset.pattern.permute.xlu2 %v3805_v21 }
 0xab6   :  { %2358 = vset.pattern.permute.xlu1 %v3806_v19  ;;  %1710 = vperm.xlu2 %2359, %v1456_v29  }
 0xab7   :  { %1669 = vperm.xlu1 %2358, %v1456_v29   ;;  %1585 = vperm.xlu0 %2364, %v1457_v11  }
 0xabe   :  { %2362 = vset.pattern.permute.xlu2 %v3807_v24 }
 0xabf   :  { %2360 = vset.pattern.permute.xlu1 %v3808_v8  ;;  %2370 = vset.pattern.permute.xlu0 %v3807_v24 }
 0xac0   :  { %1833 = vperm.xlu2 %2362, %v1456_v29   ;;  %1751 = vperm.xlu1 %2360, %v1456_v29  }
 0xac1   :  { %1837 = vperm.xlu0 %2370, %v1457_v11  }
 0xac8   :  { %2366 = vset.pattern.permute.xlu2 %v3806_v19  ;;  %2363 = vset.pattern.permute.xlu1 %v3809_v49 }
 0xac9   :  { %1874 = vperm.xlu1 %2363, %v1456_v29   ;;  %1673 = vperm.xlu2 %2366, %v1457_v11   ;;  %v2040_v29 = vmul.f32 1.442695, %v2038_v4 }
 0xacb   :  { %2496 = vpow2.f32 %v2040_v29 }
 0xad1   :  { %2365 = vset.pattern.permute.xlu1 %v3803_v0  ;;  %2368 = vset.pattern.permute.xlu2 %v3808_v8 }
 0xad2   :  { %1755 = vperm.xlu2 %2368, %v1457_v11   ;;  %1632 = vperm.xlu1 %2365, %v1457_v11  }
 0xada   :  { %2371 = vset.pattern.permute.xlu2 %v3809_v49  ;;  %2367 = vset.pattern.permute.xlu1 %v3805_v21 }
 0xadb   :  { %1878 = vperm.xlu2 %2371, %v1457_v11   ;;  %1714 = vperm.xlu1 %2367, %v1457_v11  }
 0xade   :  { %v1544_v62 = vpop.permute.xlu2 %1543 }
 0xae3   :  { %1511 = vxpose.xlu0.b32.start.end [1/1] (short) (narrow) %v1509_v34, 16  ;;  %2369 = vset.pattern.permute.xlu1 %v3798_v13  ;;  %v3416_v34 = vperm.slane %v1365_v57, 0 }
 0xae4   :  { %1796 = vperm.xlu1 %2369, %v1457_v11   ;;  %2372 = vset.pattern.permute.xlu2 %v3804_v39  ;;  %v2037_v11 = vand.u32 2147483647, %v3255_v22 }
 0xae5   :  { %v1393_v58 = vmul.f32 %v3390_v42, %v3416_v34 }
 0xae7   :  { %v1411_v6 = vmul.f32 1.442695, %v1393_v58 }
 0xaf3   :  { %1546 = vxpose.xlu0.b32.start.end [1/1] (short) (narrow) %v1544_v62, 16  ;;  %v1366_v62 = vrot.slane %v3380_v26, 2 }
 0xb07   :  { %v3337_v36 = vpop.permute.xlu2 %1628 }
 0xb10   :  { %v3350_v52 = vpop.permute.xlu2 %1710 }
 0xb19   :  { %1476 = vxpose.xlu1.b32.start.end [1/1] (short) (narrow) %v1474_v14, 16 }
 0xb1a   :  { %v3359_v27 = vpop.permute.xlu2 %1833 }
 0xb1f   :  { %v3296_v45 = vpop.permute.xlu0 %1792 }
 0xb20   :  { %v3301_v9 = vpop.permute.xlu1 %1580 }
 0xb21   :  { %v1589_v41 = vmul.f32 %v3403_v10, %v3301_v9  ;;  %v2495_v9 = vpop.eup %2494 }
 0xb22   :  { %v1914_v1 = vmul.f32 0.0, %v2495_v9  ;;  %v3426_v56 = vpop.eup %2496 }
 0xb23   :  { %v3368_v63 = vpop.permute.xlu2 %1673 }
 0xb29   :  { %v3299_v47 = vpop.permute.xlu0 %1585  ;;  %v3305_v7 = vpop.permute.xlu1 %1669 }
 0xb2c   :  { %v3375_v38 = vpop.permute.xlu2 %1755 }
 0xb32   :  { %v3309_v44 = vpop.permute.xlu1 %1751 }
 0xb33   :  { %v3303_v59 = vpop.permute.xlu0 %1837 }
 0xb34   :  { %3810 = vst [vmem:[#allocation9_spill] sm:$0xff] %v3303_v59 }
 0xb35   :  { %v3384_v23 = vpop.permute.xlu2 %1878 }
 0xb36   :  { %3811 = vst [vmem:[#allocation10_spill] sm:$0xff] %v3384_v23 }
 0xb3b   :  { %v3313_v12 = vpop.permute.xlu1 %1874 }
 0xb44   :  { %v3319_v35 = vpop.permute.xlu1 %1632 }
 0xb4d   :  { %v3321_v33 = vpop.permute.xlu1 %1714 }
 0xb56   :  { %v3323_v60 = vpop.permute.xlu1 %1796 }
 0xb5a   :  { %2375 = vset.pattern.permute.xlu0 %v3806_v19 }
 0xb6c   :  { %2374 = vset.pattern.permute.xlu1 %v3803_v0 }
 0xb87   :  { %v3307_v17 = vpop.trf.xlu0 }
 0xb8f   :  { %v3311_v48 = vpop.trf.xlu0 }
 0xb97   :  { %v3315_v53 = vpop.trf.xlu0 }
 0xb98   :  { %1659 = vperm.xlu1 %2374, %v3315_v53  }
 0xb9f   :  { %v3356_v40 = vpop.trf.xlu0 }
 0xba0   :  { %2377 = vset.pattern.permute.xlu1 %v3808_v8 }
 0xbbd   :  { %v1492_v51 = vpop.trf.xlu1 }
 0xbbe   :  { %1593 = vperm.xlu2 %2372, %v1492_v51   ;;  %1680 = vperm.xlu0 %2375, %v1492_v51  }
 0xbbf   :  { %1762 = vperm.xlu1 %2377, %v1492_v51  }
 0xbc5   :  { %v3348_v46 = vpop.trf.xlu1 }
 0xbc6   :  { %1607 = vperm.xlu2 %2372, %v3307_v17   ;;  %1700 = vperm.xlu0 %2375, %v3315_v53  }
 0xbc7   :  { %2379 = vset.pattern.permute.xlu1 %v3807_v24 }
 0xbc8   :  { %1844 = vperm.xlu1 %2379, %v1492_v51  }
 0xbce   :  { %2383 = vset.pattern.permute.xlu0 %v3808_v8  ;;  %1617 = vperm.xlu2 %2372, %v3315_v53  }
 0xbcf   :  { %1774 = vperm.xlu0 %2383, %v3307_v17  }
 0xbd0   :  { %2380 = vset.pattern.permute.xlu1 %v3806_v19 }
 0xbd1   :  { %1692 = vperm.xlu1 %2380, %v3307_v17  }
 0xbd6   :  { %2373 = vset.pattern.permute.xlu2 %v3803_v0 }
 0xbd7   :  { %2388 = vset.pattern.permute.xlu0 %v3807_v24  ;;  %1639 = vperm.xlu2 %2373, %v1492_v51  }
 0xbd8   :  { %1864 = vperm.xlu0 %2388, %v3315_v53  }
 0xbd9   :  { %2382 = vset.pattern.permute.xlu1 %v3809_v49 }
 0xbda   :  { %1885 = vperm.xlu1 %2382, %v1492_v51  }
 0xbdf   :  { %1651 = vperm.xlu2 %2373, %v3307_v17  }
 0xbe0   :  { %2393 = vset.pattern.permute.xlu0 %v3803_v0 }
 0xbe1   :  { %1655 = vperm.xlu0 %2393, %v3311_v48  }
 0xbe2   :  { %2386 = vset.pattern.permute.xlu1 %v3798_v13 }
 0xbe3   :  { %1823 = vperm.xlu1 %2386, %v3315_v53  }
 0xbe7   :  { %2376 = vset.pattern.permute.xlu2 %v3805_v21 }
 0xbe8   :  { %1721 = vperm.xlu2 %2376, %v1492_v51  }
 0xbe9   :  { %2396 = vset.pattern.permute.xlu0 %v3805_v21 }
 0xbea   :  { %1725 = vperm.xlu0 %2396, %v3348_v46  }
 0xbeb   :  { %2387 = vset.pattern.permute.xlu1 %v3807_v24 }
 0xbec   :  { %1856 = vperm.xlu1 %2387, %v3307_v17  }
 0xbf0   :  { %2378 = vset.pattern.permute.xlu2 %v3798_v13 }
 0xbf1   :  { %1803 = vperm.xlu2 %2378, %v1492_v51   ;;  %v2039_v51 = vsub.f32 0.0, %v2037_v11 }
 0xbf2   :  { %1745 = vperm.xlu0 %2396, %v3356_v40  }
 0xbf3   :  { %v2042_v25 = vmul.f32 1.442695, %v2039_v51 }
 0xbf4   :  { %2391 = vset.pattern.permute.xlu1 %v3804_v39 }
 0xbf5   :  { %1612 = vperm.xlu1 %2391, %v3311_v48   ;;  %2498 = vpow2.f32 %v2042_v25 }
 0xbf6   :  { %2500 = vpow2.f32 %v1411_v6 }
 0xbf9   :  { %2381 = vset.pattern.permute.xlu2 %v3805_v21 }
 0xbfa   :  { %1733 = vperm.xlu2 %2381, %v3307_v17   ;;  %2405 = vset.pattern.permute.xlu0 %v3798_v13 }
 0xbfb   :  { %1819 = vperm.xlu0 %2405, %v3311_v48   ;;  %v3448_v4 = vpop.eup %2498 }
 0xbfc   :  { %v3465_v25 = vadd.f32 1.0, %v3448_v4 }
 0xbfd   :  { %1622 = vperm.xlu1 %2391, %v3356_v40  }
 0xbfe   :  { %vm2070_vm0 = vweird.f32 %v3465_v25 }
 0xc02   :  { %1741 = vperm.xlu2 %2381, %v3315_v53  }
 0xc03   :  { %2411 = vset.pattern.permute.xlu0 %v3809_v49 }
 0xc04   :  { %1909 = vperm.xlu0 %2411, %v3356_v40  }
 0xc05   :  { %2392 = vset.pattern.permute.xlu1 %v3803_v0 }
 0xc06   :  { %1643 = vperm.xlu1 %2392, %v3348_v46  }
 0xc0a   :  { %2384 = vset.pattern.permute.xlu2 %v3808_v8  ;;  %v1660_v20 = vpop.permute.xlu1 %1659 }
 0xc0b   :  { %1782 = vperm.xlu2 %2384, %v3315_v53  }
 0xc0e   :  { %2395 = vset.pattern.permute.xlu1 %v3806_v19 }
 0xc0f   :  { %1684 = vperm.xlu1 %2395, %v3348_v46  }
 0xc13   :  { %2385 = vset.pattern.permute.xlu2 %v3798_v13 }
 0xc14   :  { %1815 = vperm.xlu2 %2385, %v3307_v17  }
 0xc17   :  { %2398 = vset.pattern.permute.xlu1 %v3798_v13 }
 0xc18   :  { %1807 = vperm.xlu1 %2398, %v3348_v46   ;;  %v1594_v54 = vpop.permute.xlu2 %1593 }
 0xc19   :  { %v1601_v16 = vmul.f32 %v1594_v54, %v3403_v10 }
 0xc1b   :  { %v1603_v31 = vsel %vm226_vm11, %v1589_v41, %v1601_v16  ;;  %v1367_v41 = vrot.slane %v3380_v26, 3  ;;  %v3446_v16 = vperm.slane %v3394_v18, 4 }
 0xc1c   :  { %2389 = vset.pattern.permute.xlu2 %v3809_v49  ;;  %v1916_v30 = vadd.f32 %v1914_v1, %v1603_v31  ;;  %v3451_v31 = vperm.slane %v3394_v18, 2 }
 0xc1d   :  { %1897 = vperm.xlu2 %2389, %v3307_v17   ;;  %v3422_v17 = vperm.slane %v1366_v62, 0  ;;  %v3454_v11 = vperm.slane %v1367_v41, 0  ;;  %v1759_v9 = vmul.f32 %v3446_v16, %v3309_v44 }
 0xc1f   :  { %v1395_v61 = vmul.f32 %v3390_v42, %v3422_v17 }
 0xc20   :  { %2401 = vset.pattern.permute.xlu1 %v3806_v19  ;;  %v1608_v14 = vpop.permute.xlu2 %1607 }
 0xc21   :  { %1704 = vperm.xlu1 %2401, %v3356_v40   ;;  %v1415_v54 = vmul.f32 1.442695, %v1395_v61 }
 0xc25   :  { %2390 = vset.pattern.permute.xlu2 %v3804_v39  ;;  %v3436_v39 = vadd.f32 1.0, %v3426_v56 }
 0xc26   :  { %1598 = vperm.xlu2 %2390, %v3348_v46  }
 0xc27   :  { %2502 = vrcp.f32 %v3436_v39  ;;  %vm2055_vm12 = vweird.f32 %v3436_v39 }
 0xc28   :  { %v1618_v50 = vpop.permute.xlu2 %1617  ;;  %2504 = vpow2.f32 %v1415_v54  ;;  %v1397_v54 = vmul.f32 %v3390_v42, %v3454_v11 }
 0xc29   :  { %2402 = vset.pattern.permute.xlu1 %v3805_v21  ;;  %v1625_v28 = vsel %vm226_vm11, %v1608_v14, %v1618_v50  ;;  %v3443_v21 = vperm.slane %v3394_v18, 1  ;;  %v2501_v14 = vpop.eup %2500  ;;  %2506 = vrcp.f32 %v3465_v25 }
 0xc2a   :  { %v3432_v5 = vmul.f32 %v1916_v30, %v1625_v28  ;;  %1737 = vperm.xlu1 %2402, %v3311_v48   ;;  %v1927_v1 = vmul.f32 %v2501_v14, %v1916_v30  ;;  %v1369_v30 = vrot.slane %v3380_v26, 5 }
 0xc2b   :  { %v1636_v62 = vmul.f32 %v3443_v21, %v3337_v36 }
 0xc2d   :  { %v3472_v44 = vpop.eup %2502 }
 0xc2e   :  { %2394 = vset.pattern.permute.xlu2 %v3803_v0  ;;  %v1368_v0 = vrot.slane %v3380_v26, 4  ;;  %v2505_v41 = vpop.eup %2504  ;;  %vm2056_vm1 = vweird.f32 %v3472_v44 }
 0xc2f   :  { %1663 = vperm.xlu2 %2394, %v3356_v40   ;;  %vm2057_vm13 = vmor %vm2055_vm12, %vm2056_vm1 }
 0xc30   :  { %v1681_v55 = vpop.permute.xlu0 %1680  ;;  %v3474_v28 = vperm.slane %v1368_v0, 0  ;;  %v3486_v0 = vperm.slane %v3394_v18, 6 }
 0xc31   :  { %v1763_v57 = vpop.permute.xlu1 %1762  ;;  %v1640_v29 = vpop.permute.xlu2 %1639  ;;  %v1687_v36 = vmul.f32 %v1681_v55, %v3451_v31  ;;  %v2051_v55 = vmul.f32 %v3472_v44, %v3436_v39 }
 0xc32   :  { %v1769_v51 = vmul.f32 %v1763_v57, %v3446_v16  ;;  %2404 = vset.pattern.permute.xlu1 %v3808_v8  ;;  %v1646_v58 = vmul.f32 %v1640_v29, %v3443_v21  ;;  %v1677_v57 = vmul.f32 %v3451_v31, %v3305_v7  ;;  %3812 = vst [vmem:[#allocation11_spill] sm:$0xff] %v3486_v0 }
 0xc33   :  { %1778 = vperm.xlu1 %2404, %v3311_v48   ;;  %v1399_v7 = vmul.f32 %v3390_v42, %v3474_v28 }
 0xc34   :  { %v3468_v50 = vsel %vm226_vm11, %v1759_v9, %v1769_v51  ;;  %v1648_v6 = vsel %vm226_vm11, %v1636_v62, %v1646_v58  ;;  %v1689_v14 = vsel %vm226_vm11, %v1677_v57, %v1687_v36  ;;  %v1419_v51 = vmul.f32 1.442695, %v1397_v54 }
 0xc35   :  { %v1929_v61 = vadd.f32 %v1927_v1, %v1648_v6  ;;  %v1370_v6 = vrot.slane %v3380_v26, 6  ;;  %v1423_v54 = vmul.f32 1.442695, %v1399_v7 }
 0xc36   :  { %2508 = vpow2.f32 %v1419_v51 }
 0xc37   :  { %2397 = vset.pattern.permute.xlu2 %v3808_v8  ;;  %v1940_v29 = vmul.f32 %v2505_v41, %v1929_v61  ;;  %v3492_v8 = vperm.slane %v1369_v30, 0  ;;  %v1841_v41 = vmul.f32 %v3486_v0, %v3359_v27  ;;  %v3507_v30 = vpop.eup %2506  ;;  %v1371_v27 = vrot.slane %v3380_v26, 7 }
 0xc38   :  { %1766 = vperm.xlu2 %2397, %v3348_v46   ;;  %2510 = vpow2.f32 %v1423_v54  ;;  %v1701_v32 = vpop.permute.xlu0 %1700  ;;  %vm2071_vm4 = vweird.f32 %v3507_v30 }
 0xc39   :  { %v1652_v62 = vpop.permute.xlu2 %1651  ;;  %v1942_v9 = vadd.f32 %v1940_v29, %v1689_v14  ;;  %v2052_v29 = vsub.f32 1.0, %v2051_v55  ;;  %v2066_v55 = vmul.f32 %v3507_v30, %v3465_v25  ;;  %vm2072_vm1 = vmor %vm2070_vm0, %vm2071_vm4 }
 0xc3a   :  { %v1845_v58 = vpop.permute.xlu1 %1844  ;;  %v1666_v1 = vsel %vm226_vm11, %v1652_v62, %v1660_v20  ;;  %v1401_v20 = vmul.f32 %v3390_v42, %v3492_v8  ;;  %v3509_v62 = vperm.slane %v1370_v6, 0  ;;  %v3522_v6 = vperm.slane %v1371_v27, 0 }
 0xc3b   :  { %v1851_v36 = vmul.f32 %v1845_v58, %v3486_v0  ;;  %v3499_v57 = vmul.f32 %v1929_v61, %v1666_v1  ;;  %1786 = vperm.xlu1 %2404, %v3356_v40   ;;  %v2053_v61 = vmul.f32 %v3472_v44, %v2052_v29  ;;  %v3517_v58 = vperm.slane %v3394_v18, 3 }
 0xc3c   :  { %v1427_v7 = vmul.f32 1.442695, %v1401_v20  ;;  %v1403_v1 = vmul.f32 %v3390_v42, %v3509_v62  ;;  %v2061_v29 = vand.u32 2147483648, %v3436_v39  ;;  %v2067_v15 = vsub.f32 1.0, %v2066_v55 }
 0xc3d   :  { %v3503_v14 = vsel %vm226_vm11, %v1841_v41, %v1851_v36  ;;  %v2509_v41 = vpop.eup %2508  ;;  %v2059_v36 = vand.u32 2147483647, %v3436_v39  ;;  %v1718_v2 = vmul.f32 %v3517_v58, %v3350_v52  ;;  %v2054_v20 = vadd.f32 %v3472_v44, %v2053_v61 }
 0xc3e   :  { %v1953_v3 = vmul.f32 %v2509_v41, %v1942_v9  ;;  %2512 = vpow2.f32 %v1427_v7  ;;  %v1405_v61 = vmul.f32 %v3390_v42, %v3522_v6  ;;  %v2511_v0 = vpop.eup %2510  ;;  %v2068_v55 = vmul.f32 %v3507_v30, %v2067_v15 }
 0xc3f   :  { %vm2060_vm14 = vcmp.eq.f32.partialorder %v2059_v36, 8.507059e+37 }
 0xc40   :  { %2399 = vset.pattern.permute.xlu2 %v3807_v24  ;;  %v1435_v42 = vmul.f32 1.442695, %v1405_v61  ;;  %v2069_v36 = vadd.f32 %v3507_v30, %v2068_v55 }
 0xc41   :  { %1848 = vperm.xlu2 %2399, %v3348_v46  }
 0xc42   :  { %v1722_v51 = vpop.permute.xlu2 %1721 }
 0xc43   :  { %v1693_v37 = vpop.permute.xlu1 %1692  ;;  %2408 = vset.pattern.permute.xlu1 %v3807_v24  ;;  %v1728_v54 = vmul.f32 %v1722_v51, %v3517_v58  ;;  %v1431_v51 = vmul.f32 1.442695, %v1403_v1 }
 0xc44   :  { %v1707_v27 = vsel %vm226_vm11, %v1693_v37, %v1701_v32  ;;  %1868 = vperm.xlu1 %2408, %v3356_v40   ;;  %v2058_v32 = vsel %vm2057_vm13, %v3472_v44, %v2054_v20  ;;  %v2513_v39 = vpop.eup %2512  ;;  %v2074_v20 = vand.u32 2147483647, %v3465_v25  ;;  %vm2045_vm13 = vcmp.ge.f32.partialorder %v3255_v22, 0.0 }
 0xc45   :  { %v3534_v23 = vmul.f32 %v1942_v9, %v1707_v27  ;;  %v1730_v52 = vsel %vm226_vm11, %v1718_v2, %v1728_v54  ;;  %v2062_v9 = vor.u32 1.1754944e-38, %v2061_v29  ;;  %v3547_v2 = vperm.slane %v3394_v18, 5 }
 0xc46   :  { %v3538_v59 = vadd.f32 %v1953_v3, %v1730_v52  ;;  %2514 = vpow2.f32 %v1431_v51  ;;  %vm2075_vm12 = vcmp.eq.f32.partialorder %v2074_v20, 8.507059e+37 }
 0xc47   :  { %v2063_v44 = vsel %vm2060_vm14, %v2062_v9, %v2058_v32  ;;  %v1800_v7 = vmul.f32 %v3547_v2, %v3296_v45  ;;  %v2076_v45 = vand.u32 2147483648, %v3465_v25  ;;  %2516 = vpow2.f32 %v1435_v42  ;;  %v1775_v42 = vpop.permute.xlu0 %1774 }
 0xc48   :  { %v1966_v37 = vmul.f32 %v2511_v0, %v3538_v59  ;;  %v3555_v0 = vperm.slane %v3394_v18, 7  ;;  %vm2189_vm14 = vcmask 1041409  }
 0xc49   :  { %2400 = vset.pattern.permute.xlu2 %v3806_v19  ;;  %v2046_v19 = vsel %vm2044_vm2, 1.0, %v3426_v56  ;;  %v2077_v32 = vor.u32 1.1754944e-38, %v2076_v45  ;;  %vm2233_vm2 = vcmask 785408  }
 0xc4a   :  { %1696 = vperm.xlu2 %2400, %v3311_v48   ;;  %v3551_v3 = vadd.f32 %v1966_v37, %v3468_v50  ;;  %v1882_v18 = vmul.f32 %v3555_v0, %v3313_v12  ;;  %v2064_v56 = vmul.f32 %v2063_v44, %v2046_v19  ;;  %v2073_v12 = vsel %vm2072_vm1, %v3507_v30, %v2069_v36 }
 0xc4b   :  { %v1804_v15 = vpop.permute.xlu2 %1803  ;;  %v2078_v25 = vsel %vm2075_vm12, %v2077_v32, %v2073_v12 }
 0xc4c   :  { %v1886_v1 = vpop.permute.xlu1 %1885  ;;  %2409 = vset.pattern.permute.xlu1 %v3809_v49  ;;  %v1810_v50 = vmul.f32 %v1804_v15, %v3547_v2  ;;  %v1979_v41 = vmul.f32 %v2513_v39, %v3551_v3  ;;  %v2515_v51 = vpop.eup %2514  ;;  %v2080_v37 = vmul.f32 %v2064_v56, %v3253_v43  ;;  %v2047_v15 = vsel %vm2045_vm13, 1.0, %v3448_v4 }
 0xc4d   :  { %v1892_v29 = vmul.f32 %v1886_v1, %v3555_v0  ;;  %1901 = vperm.xlu1 %2409, %v3311_v48   ;;  %v2517_v55 = vpop.eup %2516  ;;  %v2079_v19 = vmul.f32 %v2078_v25, %v2047_v15  ;;  %v1637_v15 = vmul.f32 %v3443_v21, %v3319_v35 }
 0xc4e   :  { %v1812_v54 = vsel %vm226_vm11, %v1800_v7, %v1810_v50 }
 0xc4f   :  { %v1894_v27 = vsel %vm226_vm11, %v1882_v18, %v1892_v29  ;;  %v1981_v52 = vadd.f32 %v1979_v41, %v1812_v54  ;;  %v2081_v43 = vmul.f32 %v2079_v19, %v3255_v22  ;;  %v1865_v1 = vpop.permute.xlu0 %1864  ;;  %v3606_v29 = vld [vmem:[%s3766_s9 + $0x18] sm:$0xff] }
 0xc51   :  { %v1992_v61 = vmul.f32 %v2515_v51, %v1981_v52  ;;  %v1396_v51 = vmul.f32 %v3606_v29, %v3422_v17 }
 0xc52   :  { %2403 = vset.pattern.permute.xlu2 %v3809_v49 }
 0xc53   :  { %1889 = vperm.xlu2 %2403, %v3348_v46   ;;  %v1994_v9 = vadd.f32 %v1992_v61, %v3503_v14 }
 0xc54   :  { %v1734_v39 = vpop.permute.xlu2 %1733 }
 0xc55   :  { %v1824_v44 = vpop.permute.xlu1 %1823  ;;  %2084 = vrot.lane.b32.xlu1 %v2080_v37, %s2570_s20  ;;  %v2005_v30 = vmul.f32 %v2517_v55, %v1994_v9 }
 0xc57   :  { %v3582_v7 = vadd.f32 %v2005_v30, %v1894_v27  ;;  %v1656_v61 = vpop.permute.xlu0 %1655 }
 0xc5b   :  { %2406 = vset.pattern.permute.xlu2 %v3798_v13 }
 0xc5c   :  { %1827 = vperm.xlu2 %2406, %v3356_v40   ;;  %v1742_v46 = vpop.permute.xlu2 %1741 }
 0xc5d   :  { %v1748_v14 = vsel %vm226_vm11, %v1734_v39, %v1742_v46  ;;  %2086 = vrot.lane.b32.xlu1 %v2081_v43, %s2570_s20 }
 0xc5e   :  { %v3590_v50 = vmul.f32 %v3538_v59, %v1748_v14  ;;  %v1857_v41 = vpop.permute.xlu1 %1856 }
 0xc5f   :  { %v1871_v4 = vsel %vm226_vm11, %v1857_v41, %v1865_v1  ;;  %v1726_v46 = vpop.permute.xlu0 %1725 }
 0xc60   :  { %v3593_v36 = vmul.f32 %v1994_v9, %v1871_v4  ;;  %v1590_v9 = vmul.f32 %v3403_v10, %v3299_v47  ;;  %v1678_v4 = vmul.f32 %v3451_v31, %v3368_v63 }
 0xc64   :  { %2407 = vset.pattern.permute.xlu2 %v3807_v24 }
 0xc65   :  { %1860 = vperm.xlu2 %2407, %v3311_v48   ;;  %v1783_v13 = vpop.permute.xlu2 %1782 }
 0xc66   :  { %v1789_v22 = vsel %vm226_vm11, %v1775_v42, %v1783_v13 }
 0xc67   :  { %v3599_v40 = vmul.f32 %v3551_v3, %v1789_v22  ;;  %v1613_v18 = vpop.permute.xlu1 %1612  ;;  %v3813_v3 = vperm.slane %v3380_v26, 0  ;;  %v1398_v26 = vmul.f32 %v3606_v29, %v3454_v11  ;;  %v1400_v11 = vmul.f32 %v3606_v29, %v3474_v28 }
 0xc69   :  { %v1392_v54 = vmul.f32 %v3606_v29, %v3813_v3  ;;  %v1421_v39 = vmul.f32 1.442695, %v1398_v26  ;;  %v1425_v35 = vmul.f32 1.442695, %v1400_v11  ;;  %v1760_v26 = vmul.f32 %v3446_v16, %v3375_v38 }
 0xc6d   :  { %2410 = vset.pattern.permute.xlu2 %v3809_v49  ;;  %v1409_v49 = vmul.f32 1.442695, %v1392_v54  ;;  %v1719_v54 = vmul.f32 %v3517_v58, %v3321_v33 }
 0xc6e   :  { %1905 = vperm.xlu2 %2410, %v3315_v53   ;;  %v1816_v59 = vpop.permute.xlu2 %1815  ;;  %v1394_v53 = vmul.f32 %v3606_v29, %v3416_v34 }
 0xc6f   :  { %v1623_v24 = vpop.permute.xlu1 %1622  ;;  %v1830_v48 = vsel %vm226_vm11, %v1816_v59, %v1824_v44  ;;  %2518 = vpow2.f32 %v1409_v49  ;;  %v1729_v59 = vmul.f32 %v1726_v46, %v3517_v58 }
 0xc70   :  { %v1626_v56 = vsel %vm226_vm11, %v1613_v18, %v1623_v24  ;;  %v3610_v45 = vmul.f32 %v1981_v52, %v1830_v48  ;;  %v1413_v12 = vmul.f32 1.442695, %v1394_v53  ;;  %v1417_v52 = vmul.f32 1.442695, %v1396_v51 }
 0xc71   :  { %v1731_v53 = vsel %vm226_vm11, %v1719_v54, %v1729_v59 }
 0xc72   :  { %2520 = vpow2.f32 %v1413_v12 }
 0xc73   :  { %2522 = vpow2.f32 %v1417_v52 }
 0xc74   :  { %2524 = vpow2.f32 %v1421_v39 }
 0xc75   :  { %v2519_v32 = vpop.eup %2518  ;;  %2526 = vpow2.f32 %v1425_v35 }
 0xc76   :  { %v1915_v25 = vmul.f32 0.0, %v2519_v32 }
 0xc77   :  { %v3615_v20 = vpop.permute.xlu2 %1897 }
 0xc78   :  { %v1644_v27 = vpop.permute.xlu1 %1643  ;;  %v2521_v30 = vpop.eup %2520 }
 0xc79   :  { %v1647_v42 = vmul.f32 %v1644_v27, %v3443_v21  ;;  %v2523_v41 = vpop.eup %2522 }
 0xc7a   :  { %v2525_v3 = vpop.eup %2524 }
 0xc7b   :  { %v1649_v43 = vsel %vm226_vm11, %v1637_v15, %v1647_v42  ;;  %v2527_v52 = vpop.eup %2526  ;;  %v1746_v15 = vpop.permute.xlu0 %1745 }
 0xc80   :  { %v1599_v37 = vpop.permute.xlu2 %1598 }
 0xc81   :  { %v1685_v55 = vpop.permute.xlu1 %1684  ;;  %v1602_v34 = vmul.f32 %v1599_v37, %v3403_v10 }
 0xc82   :  { %v1688_v10 = vmul.f32 %v1685_v55, %v3451_v31 }
 0xc83   :  { %v1604_v17 = vsel %vm226_vm11, %v1590_v9, %v1602_v34 }
 0xc84   :  { %v1917_v44 = vadd.f32 %v1915_v25, %v1604_v17  ;;  %v1690_v24 = vsel %vm226_vm11, %v1678_v4, %v1688_v10 }
 0xc86   :  { %v1919_v19 = vmul.f32 %v1917_v44, %v1626_v56  ;;  %v1928_v47 = vmul.f32 %v2521_v30, %v1917_v44 }
 0xc88   :  { %v1920_v14 = vadd.f32 %v1919_v19, %v3432_v5  ;;  %v1930_v1 = vadd.f32 %v1928_v47, %v1649_v43  ;;  %v1402_v43 = vmul.f32 %v3606_v29, %v3492_v8 }
 0xc89   :  { %v1664_v13 = vpop.permute.xlu2 %1663 }
 0xc8a   :  { %v1921_v21 = vrot.slane %v1920_v14, 4  ;;  %v3637_v22 = vpop.permute.xlu1 %1807  ;;  %v1667_v28 = vsel %vm226_vm11, %v1656_v61, %v1664_v13  ;;  %v1941_v18 = vmul.f32 %v2523_v41, %v1930_v1  ;;  %v1429_v4 = vmul.f32 1.442695, %v1402_v43 }
 0xc8b   :  { %v1932_v48 = vmul.f32 %v1930_v1, %v1667_v28 }
 0xc8c   :  { %v1922_v56 = vadd.f32 %v1921_v21, %v1920_v14  ;;  %v1943_v5 = vadd.f32 %v1941_v18, %v1690_v24  ;;  %2528 = vpow2.f32 %v1429_v4  ;;  %v2273_v4 = vld [vmem:[%s3768_s11 + $0x50] sm:$0xff] }
 0xc8d   :  { %v1933_v63 = vadd.f32 %v1932_v48, %v3499_v57 }
 0xc8e   :  { %v1923_v31 = vrot.slane %v1922_v56, 2  ;;  %v1954_v49 = vmul.f32 %v2525_v3, %v1943_v5 }
 0xc8f   :  { %v1934_v27 = vrot.slane %v1933_v63, 4 }
 0xc90   :  { %v1956_v51 = vadd.f32 %v1954_v49, %v1731_v53  ;;  %v1924_v12 = vadd.f32 %v1923_v31, %v1922_v56 }
 0xc91   :  { %v1935_v61 = vadd.f32 %v1934_v27, %v1933_v63 }
 0xc92   :  { %v1767_v32 = vpop.permute.xlu2 %1766  ;;  %v1967_v58 = vmul.f32 %v2527_v52, %v1956_v51  ;;  %v1925_v57 = vrot.slane %v1924_v12, 1  ;;  %v1820_v52 = vpop.permute.xlu0 %1819 }
 0xc93   :  { %v1936_v37 = vrot.slane %v1935_v61, 2  ;;  %v1705_v9 = vpop.permute.xlu1 %1704  ;;  %v1770_v33 = vmul.f32 %v1767_v32, %v3446_v16 }
 0xc94   :  { %v1926_v17 = vadd.f32 %v1925_v57, %v1924_v12 }
 0xc95   :  { %v1937_v55 = vadd.f32 %v1936_v37, %v1935_v61  ;;  %v1772_v34 = vsel %vm226_vm11, %v1760_v26, %v1770_v33  ;;  %v1406_v33 = vmul.f32 %v3606_v29, %v3522_v6 }
 0xc96   :  { %v1969_v25 = vadd.f32 %v1967_v58, %v1772_v34  ;;  %v2277_v34 = vld [vmem:[%s3768_s11 + $0x70] sm:$0xff] }
 0xc97   :  { %v1938_v42 = vrot.slane %v1937_v55, 1 }
 0xc99   :  { %v1939_v39 = vadd.f32 %v1938_v42, %v1937_v55  ;;  %v2278_v55 = vld [vmem:[%s3768_s11 + $0x78] sm:$0xff] }
 0xc9a   :  { %2115 = vmatpush.msrb.mxu3 %v2278_v55 }
 0xc9b   :  { %v2018_v44 = vsel %vm1015_vm5, %v1926_v17, %v1939_v39  ;;  %v1849_v30 = vpop.permute.xlu2 %1848  ;;  %v3815_v17 = vld [vmem:[#allocation9_spill] sm:$0xff] }
 0xc9c   :  { %v1738_v11 = vpop.permute.xlu1 %1737  ;;  %2116 = vmatpush.msrb.mxu3 %v2277_v34 }
 0xc9d   :  { %v1749_v38 = vsel %vm226_vm11, %v1738_v11, %v1746_v15  ;;  %v1437_v11 = vmul.f32 1.442695, %v1406_v33 }
 0xc9e   :  { %v1958_v19 = vmul.f32 %v1956_v51, %v1749_v38 }
 0xca0   :  { %v1959_v47 = vadd.f32 %v1958_v19, %v3590_v50  ;;  %v1404_v50 = vmul.f32 %v3606_v29, %v3509_v62  ;;  %v1801_v62 = vmul.f32 %v3547_v2, %v3323_v60 }
 0xca2   :  { %v1960_v16 = vrot.slane %v1959_v47, 4  ;;  %v1433_v54 = vmul.f32 1.442695, %v1404_v50  ;;  %v3816_v50 = vld [vmem:[#allocation10_spill] sm:$0xff] }
 0xca4   :  { %v1697_v10 = vpop.permute.xlu2 %1696  ;;  %v1961_v46 = vadd.f32 %v1960_v16, %v1959_v47  ;;  %2530 = vpow2.f32 %v1433_v54  ;;  %v2275_v47 = vld [vmem:[%s3768_s11 + $0x60] sm:$0xff] }
 0xca5   :  { %v1779_v14 = vpop.permute.xlu1 %1778  ;;  %v1708_v1 = vsel %vm226_vm11, %v1697_v10, %v1705_v9  ;;  %2532 = vpow2.f32 %v1437_v11  ;;  %v3819_v11 = vld [vmem:[#allocation7_spill] sm:$0xff] }
 0xca6   :  { %v1945_v41 = vmul.f32 %v1943_v5, %v1708_v1  ;;  %v1962_v35 = vrot.slane %v1961_v46, 2  ;;  %v2529_v5 = vpop.eup %2528 }
 0xca7   :  { %v1980_v53 = vmul.f32 %v2529_v5, %v1969_v25  ;;  %v1910_v5 = vpop.permute.xlu0 %1909 }
 0xca8   :  { %v1946_v13 = vadd.f32 %v1945_v41, %v3534_v23  ;;  %v1963_v18 = vadd.f32 %v1962_v35, %v1961_v46  ;;  %v1811_v23 = vmul.f32 %v3637_v22, %v3547_v2  ;;  %v3814_v2 = vld [vmem:[#allocation11_spill] sm:$0xff] }
 0xca9   :  { %v1852_v58 = vmul.f32 %v1849_v30, %v3814_v2  ;;  %v1842_v39 = vmul.f32 %v3814_v2, %v3815_v17 }
 0xcaa   :  { %v1947_v21 = vrot.slane %v1946_v13, 4  ;;  %v1964_v63 = vrot.slane %v1963_v18, 1  ;;  %v1813_v12 = vsel %vm226_vm11, %v1801_v62, %v1811_v23  ;;  %v2531_v42 = vpop.eup %2530 }
 0xcab   :  { %v1982_v22 = vadd.f32 %v1980_v53, %v1813_v12  ;;  %v1854_v38 = vsel %vm226_vm11, %v1842_v39, %v1852_v58 }
 0xcac   :  { %v1948_v28 = vadd.f32 %v1947_v21, %v1946_v13  ;;  %v1965_v61 = vadd.f32 %v1964_v63, %v1963_v18  ;;  %v1883_v18 = vmul.f32 %v3555_v0, %v3816_v50 }
 0xcad   :  { %v1787_v59 = vpop.permute.xlu1 %1786  ;;  %v1890_v24 = vpop.permute.xlu2 %1889  ;;  %v1993_v15 = vmul.f32 %v2531_v42, %v1982_v22 }
 0xcae   :  { %v1949_v8 = vrot.slane %v1948_v28, 2  ;;  %v1790_v48 = vsel %vm226_vm11, %v1779_v14, %v1787_v59  ;;  %v1893_v13 = vmul.f32 %v1890_v24, %v3555_v0  ;;  %v2533_v24 = vpop.eup %2532 }
 0xcaf   :  { %v1971_v56 = vmul.f32 %v1969_v25, %v1790_v48  ;;  %v1995_v10 = vadd.f32 %v1993_v15, %v1854_v38 }
 0xcb0   :  { %v1950_v3 = vadd.f32 %v1949_v8, %v1948_v28  ;;  %v2272_v28 = vld [vmem:[%s3768_s11 + $0x48] sm:$0xff] }
 0xcb1   :  { %v1972_v31 = vadd.f32 %v1971_v56, %v3599_v40  ;;  %v2271_v56 = vld [vmem:[%s3768_s11 + $0x40] sm:$0xff]  ;;  %v2006_v63 = vmul.f32 %v2533_v24, %v1995_v10 }
 0xcb2   :  { %v1951_v49 = vrot.slane %v1950_v3, 1 }
 0xcb3   :  { %v1973_v27 = vrot.slane %v1972_v31, 4 }
 0xcb4   :  { %v1952_v51 = vadd.f32 %v1951_v49, %v1950_v3  ;;  %v1895_v3 = vsel %vm226_vm11, %v1883_v18, %v1893_v13 }
 0xcb5   :  { %v1974_v32 = vadd.f32 %v1973_v27, %v1972_v31 }
 0xcb6   :  { %v2019_v26 = vsel %vm1017_vm6, %v2018_v44, %v1952_v51  ;;  %v1828_v37 = vpop.permute.xlu2 %1827  ;;  %v1869_v6 = vpop.permute.xlu1 %1868  ;;  %v2276_v44 = vld [vmem:[%s3768_s11 + $0x68] sm:$0xff] }
 0xcb7   :  { %v1975_v9 = vrot.slane %v1974_v32, 2  ;;  %v1831_v40 = vsel %vm226_vm11, %v1820_v52, %v1828_v37  ;;  %v2020_v60 = vsel %vm1019_vm7, %v2019_v26, %v1965_v61  ;;  %2117 = vmatpush.msrb.mxu3 %v2276_v44 }
 0xcb8   :  { %v1984_v57 = vmul.f32 %v1982_v22, %v1831_v40 }
 0xcb9   :  { %v1976_v25 = vadd.f32 %v1975_v9, %v1974_v32  ;;  %2118 = vmatpush.msrb.mxu3 %v2275_v47 }
 0xcba   :  { %v1985_v29 = vadd.f32 %v1984_v57, %v3610_v45  ;;  %v2274_v45 = vld [vmem:[%s3768_s11 + $0x58] sm:$0xff] }
 0xcbb   :  { %v1977_v30 = vrot.slane %v1976_v25, 1  ;;  %2119 = vmatpush.msrb.mxu3 %v2274_v45 }
 0xcbc   :  { %v1986_v19 = vrot.slane %v1985_v29, 4 }
 0xcbd   :  { %v1978_v16 = vadd.f32 %v1977_v30, %v1976_v25  ;;  %2120 = vmatpush.msrb.mxu3 %v2273_v4 }
 0xcbe   :  { %v1987_v43 = vadd.f32 %v1986_v19, %v1985_v29  ;;  %v3818_v29 = vld [vmem:[#allocation6_spill] sm:$0xff] }
 0xcbf   :  { %v1861_v46 = vpop.permute.xlu2 %1860  ;;  %v2021_v14 = vsel %vm1021_vm8, %v2020_v60, %v1978_v16  ;;  %v1902_v48 = vpop.permute.xlu1 %1901  ;;  %2121 = vmatpush.msrb.mxu3 %v2272_v28  ;;  %v2421_v60 = vld [vmem:[%s3767_s10 + $0x1] ss:$0 sm:$0xff] }
 0xcc0   :  { %v1988_v1 = vrot.slane %v1987_v43, 2  ;;  %v1872_v41 = vsel %vm226_vm11, %v1861_v46, %v1869_v6  ;;  %v1913_v31 = vsel %vm226_vm11, %v1902_v48, %v1910_v5  ;;  %v3820_v16 = vld [vmem:[#allocation5_spill] sm:$0xff] }
 0xcc1   :  { %v1997_v35 = vmul.f32 %v1995_v10, %v1872_v41  ;;  %2122 = vmatpush.msrb.mxu3 %v2271_v56 }
 0xcc2   :  { %v1989_v21 = vadd.f32 %v1988_v1, %v1987_v43 }
 0xcc3   :  { %v1998_v59 = vadd.f32 %v1997_v35, %v3593_v36  ;;  %v2008_v36 = vadd.f32 %v2006_v63, %v1895_v3 }
 0xcc4   :  { %v1990_v8 = vrot.slane %v1989_v21, 1 }
 0xcc5   :  { %v1999_v54 = vrot.slane %v1998_v59, 4  ;;  %v2010_v51 = vmul.f32 %v2008_v36, %v1913_v31 }
 0xcc6   :  { %v1991_v23 = vadd.f32 %v1990_v8, %v1989_v21 }
 0xcc7   :  { %v2000_v0 = vadd.f32 %v1999_v54, %v1998_v59  ;;  %v2085_v34 = vpop.permute.xlu1 %2084 }
 0xcc8   :  { %v1906_v49 = vpop.permute.xlu2 %1905  ;;  %v2022_v53 = vsel %vm1023_vm9, %v2021_v14, %v1991_v23 }
 0xcc9   :  { %v2001_v62 = vrot.slane %v2000_v0, 2  ;;  %v1912_v27 = vsel %vm226_vm11, %v3615_v20, %v1906_v49  ;;  %v3817_v20 = vld [vmem:[#allocation8_spill] sm:$0xff] }
 0xcca   :  { %v2009_v12 = vmul.f32 %v3582_v7, %v1912_v27  ;;  %v2030_v57 = vmul.f32 %v2421_v60, %v3817_v20 }
 0xccb   :  { %v2002_v61 = vadd.f32 %v2001_v62, %v2000_v0  ;;  %v2422_v0 = vld [vmem:[%s3769_s12] ss:$0 sm:$0xff]  ;;  %s2581_s12 = smov 32  }
 0xccc   :  { %v2011_v32 = vadd.f32 %v2010_v51, %v2009_v12  ;;  %v2423_v62 = vld [vmem:[%s3770_s13] ss:$0 sm:$0xff] }
 0xccd   :  { %v2003_v52 = vrot.slane %v2002_v61, 1 }
 0xcce   :  { %v2012_v26 = vrot.slane %v2011_v32, 4 }
 0xccf   :  { %v2004_v37 = vadd.f32 %v2003_v52, %v2002_v61  ;;  %v2087_v42 = vpop.permute.xlu1 %2086 }
 0xcd0   :  { %v2013_v22 = vadd.f32 %v2012_v26, %v2011_v32 }
 0xcd1   :  { %v2023_v9 = vsel %vm1025_vm10, %v2022_v53, %v2004_v37 }
 0xcd2   :  { %v2014_v40 = vrot.slane %v2013_v22, 2 }
 0xcd4   :  { %v2015_v33 = vadd.f32 %v2014_v40, %v2013_v22 }
 0xcd6   :  { %v2016_v2 = vrot.slane %v2015_v33, 1 }
 0xcd8   :  { %v2017_v58 = vadd.f32 %v2016_v2, %v2015_v33 }
 0xcda   :  { %v2024_v7 = vsel %vm1027_vm15, %v2023_v9, %v2017_v58 }
 0xcdb   :  { %v2031_v55 = vadd.f32 %v2030_v57, %v2024_v7 }
 0xcdd   :  { %2033 = vrot.lane.b32.xlu2 %v2031_v55, %s2570_s20  ;;  %v2090_v25 = vmul.f32 %v2085_v34, %v2031_v55 }
 0xcdf   :  { %2279 = vmatmul.msk.f32.vlgmr.msrb.gmra.mxu3 %vm226_vm11, %v2090_v25 }
 0xd37   :  { %v2034_v17 = vpop.permute.xlu2 %2033 }
 0xd38   :  { %v2091_v39 = vmul.f32 %v2087_v42, %v2034_v17 }
 0xd3a   :  { %2280 = vmatmul.msk.f32.gmra.mxu3 %vm226_vm11, %v2091_v39 }
 0xd62   :  { %v2124_v6 = vpop.f32.mrf.mxu3 }
 0xd63   :  { %v2125_v44 = vadd.f32 %v2124_v6, %v3818_v29 }
 0xd65   :  { %v2132_v30 = vsel %vm127_vm3, %v2125_v44, 0.0 }
 0xd66   :  { %2133 = vadd.xlane.f32.xlu2 %v2132_v30 }
 0xdbd   :  { %v2127_v15 = vpop.f32.mrf.mxu3 }
 0xdbe   :  { %v2128_v38 = vadd.f32 %v2127_v15, %v3819_v11 }
 0xdc0   :  { %v2135_v19 = vsel %vm127_vm3, %v2128_v38, 0.0 }
 0xdc1   :  { %2136 = vadd.xlane.f32.xlu0 %v2135_v19 }
 0xdd9   :  { %v2134_v47 = vpop.xlane.xlu2 %2133 }
 0xdda   :  { %v2138_v43 = vmul.f32 %v2134_v47, %v3820_v16 }
 0xddc   :  { %v2140_v45 = vsub.f32 %v2125_v44, %v2138_v43 }
 0xdde   :  { %v2142_v10 = vmul.f32 %v2140_v45, %v2140_v45 }
 0xde0   :  { %v2144_v46 = vsel %vm127_vm3, %v2142_v10, 0.0 }
 0xde1   :  { %2145 = vadd.xlane.f32.xlu1 %v2144_v46 }
 0xe34   :  { %v2137_v14 = vpop.xlane.xlu0 %2136 }
 0xe35   :  { %v2139_v1 = vmul.f32 %v2137_v14, %v3820_v16 }
 0xe37   :  { %v2141_v41 = vsub.f32 %v2128_v38, %v2139_v1 }
 0xe39   :  { %v2143_v4 = vmul.f32 %v2141_v41, %v2141_v41 }
 0xe3b   :  { %v2147_v13 = vsel %vm127_vm3, %v2143_v4, 0.0 }
 0xe3c   :  { %2148 = vadd.xlane.f32.xlu2 %v2147_v13 }
 0xe54   :  { %v2146_v35 = vpop.xlane.xlu1 %2145 }
 0xe55   :  { %v2150_v21 = vmul.f32 %v2146_v35, %v3820_v16 }
 0xe57   :  { %v2152_v28 = vadd.f32 1e-05, %v2150_v21 }
 0xe59   :  { %2534 = vrsqrt.f32 %v2152_v28  ;;  %vm2160_vm7 = vweird.f32 %v2152_v28 }
 0xe5f   :  { %v2535_v50 = vpop.eup %2534 }
 0xe60   :  { %v2155_v18 = vmul.f32 %v2535_v50, %v2152_v28  ;;  %vm2161_vm5 = vweird.f32 %v2535_v50 }
 0xe61   :  { %vm2162_vm8 = vmor %vm2160_vm7, %vm2161_vm5 }
 0xe62   :  { %v2156_v59 = vmul.f32 %v2535_v50, %v2155_v18 }
 0xe64   :  { %v2157_v8 = vmul.f32 0.5, %v2156_v59 }
 0xe66   :  { %v2158_v3 = vsub.f32 1.5, %v2157_v8 }
 0xe68   :  { %v2159_v54 = vmul.f32 %v2535_v50, %v2158_v3 }
 0xe6a   :  { %v2163_v23 = vsel %vm2162_vm8, %v2535_v50, %v2159_v54 }
 0xe6b   :  { %v2174_v36 = vmul.f32 %v2163_v23, %v2140_v45 }
 0xe6d   :  { %v2179_v27 = vmul.f32 %v2422_v0, %v2174_v36 }
 0xe6f   :  { %v2184_v61 = vadd.f32 %v2423_v62, %v2179_v27 }
 0xe71   :  { %v2192_v37 = vrot.slane %v2184_v61, 1  ;;  %v2203_v22 = vrot.slane %v2184_v61, 3  ;;  %v2197_v33 = vrot.slane %v2184_v61, 2  ;;  %v2209_v7 = vrot.slane %v2184_v61, 4 }
 0xe72   :  { %v2213_v42 = vrot.slane %v2184_v61, 5  ;;  %v2225_v6 = vrot.slane %v2184_v61, 7  ;;  %v2219_v30 = vrot.slane %v2184_v61, 6 }
 0xeaf   :  { %v2149_v48 = vpop.xlane.xlu2 %2148 }
 0xeb0   :  { %v2151_v56 = vmul.f32 %v2149_v48, %v3820_v16 }
 0xeb2   :  { %v2153_v24 = vadd.f32 1e-05, %v2151_v56 }
 0xeb4   :  { %2536 = vrsqrt.f32 %v2153_v24  ;;  %vm2170_vm10 = vweird.f32 %v2153_v24 }
 0xeba   :  { %v2537_v5 = vpop.eup %2536 }
 0xebb   :  { %v2165_v63 = vmul.f32 %v2537_v5, %v2153_v24  ;;  %vm2171_vm9 = vweird.f32 %v2537_v5 }
 0xebc   :  { %vm2172_vm15 = vmor %vm2170_vm10, %vm2171_vm9 }
 0xebd   :  { %v2166_v31 = vmul.f32 %v2537_v5, %v2165_v63 }
 0xebf   :  { %v2167_v49 = vmul.f32 0.5, %v2166_v31 }
 0xec1   :  { %v2168_v53 = vsub.f32 1.5, %v2167_v49 }
 0xec3   :  { %v2169_v51 = vmul.f32 %v2537_v5, %v2168_v53 }
 0xec5   :  { %v2173_v12 = vsel %vm2172_vm15, %v2537_v5, %v2169_v51 }
 0xec6   :  { %v2175_v32 = vmul.f32 %v2173_v12, %v2141_v41 }
 0xec8   :  { %v2180_v52 = vmul.f32 %v2422_v0, %v2175_v32 }
 0xeca   :  { %v2185_v26 = vadd.f32 %v2423_v62, %v2180_v52 }
 0xecc   :  { %v2193_v9 = vsel %vm2189_vm14, %v2185_v26, %v2192_v37  ;;  %v2204_v40 = vrot.slane %v2185_v26, 2  ;;  %v2198_v60 = vrot.slane %v2185_v26, 1  ;;  %v2188_v2 = vrot.slane %v2185_v26, 7 }
 0xecd   :  { %2194 = vrot.lane.b32.xlu0 %v2193_v9, %s2581_s12  ;;  %v2210_v58 = vrot.slane %v2185_v26, 3  ;;  %v2214_v34 = vrot.slane %v2185_v26, 4  ;;  %v2226_v17 = vrot.slane %v2185_v26, 6  ;;  %v2220_v44 = vrot.slane %v2185_v26, 5 }
 0xece   :  { %v2205_v20 = vsel %vm2189_vm14, %v2204_v40, %v2203_v22  ;;  %v2199_v57 = vsel %vm2189_vm14, %v2198_v60, %v2197_v33  ;;  %v2190_v55 = vsel %vm2189_vm14, %v2188_v2, %v2184_v61 }
 0xecf   :  { %2206 = vrot.lane.b32.xlu2 %v2205_v20, %s2572_s24  ;;  %2200 = vrot.lane.b32.xlu1 %v2199_v57, %s2570_s20  ;;  %v2211_v25 = vsel %vm2189_vm14, %v2210_v58, %v2209_v7  ;;  %v2215_v39 = vsel %vm2189_vm14, %v2214_v34, %v2213_v42  ;;  %v2227_v29 = vsel %vm2189_vm14, %v2226_v17, %v2225_v6 }
 0xed0   :  { %v2221_v15 = vsel %vm2189_vm14, %v2220_v44, %v2219_v30 }
 0xed5   :  { %2216 = vrot.lane.b32.xlu0 %v2215_v39, %s2581_s12 }
 0xed7   :  { %2228 = vrot.lane.b32.xlu1 %v2227_v29, %s2572_s24 }
 0xedd   :  { %2222 = vrot.lane.b32.xlu0 %v2221_v15, %s2570_s20 }
 0xf29   :  { %v2207_v1 = vpop.permute.xlu2 %2206 }
 0xf3f   :  { %v2195_v11 = vpop.permute.xlu0 %2194 }
 0xf40   :  { %v2231_v47 = vsel %vm127_vm3, %v2190_v55, %v2195_v11 }
 0xf41   :  { %v2201_v38 = vpop.permute.xlu1 %2200 }
 0xf42   :  { %v2232_v45 = vsel %vm226_vm11, %v2231_v47, %v2201_v38 }
 0xf43   :  { %v2234_v4 = vsel %vm2233_vm2, %v2232_v45, %v2207_v1 }
 0xf47   :  { %v2217_v19 = vpop.permute.xlu0 %2216 }
 0xf48   :  { %v2235_v16 = vsel %vm127_vm3, %v2211_v25, %v2217_v19 }
 0xf49   :  { %v2229_v10 = vpop.permute.xlu1 %2228 }
 0xf4f   :  { %v2223_v43 = vpop.permute.xlu0 %2222 }
 0xf50   :  { %v2236_v46 = vsel %vm226_vm11, %v2235_v16, %v2223_v43 }
 0xf51   :  { %v2237_v14 = vsel %vm2233_vm2, %v2236_v46, %v2229_v10 }
 0xf52   :  { %v2240_v41 = vrot.slane %v2237_v14, 6 }
 0xf54   :  { %v2241_v13 = vsel %vm1017_vm6, %v2234_v4, %v2240_v41 }
 0xf55   :  { %2243 = vst [vmem:[%s3771_s14] sm:$0xf] %v2241_v13 }
 0xf56   :  { %2248 = vsyncpa [#allocation3], 1 }

</bundles_post_ra>
